<compile_context>
chip_gen: v7x
topology: tpu7x:2x2x1
jax: 0.10.0
libtpu: 0.0.40
codegen_flags: <defaults>
</compile_context>

<pallas_src>
import functools

import jax
import jax.numpy as jnp
from jax.experimental import pallas as pl
from jax.experimental.pallas import tpu as pltpu


def _gin_fused_kernel(x_ref, w_ref, mask_ref, o_ref, *,
                      num_layers, N, C, W, K, P, Sb, slope):
    """Fused num_layers x (conv2d same-pad + leaky_relu) forward, co packed on sublanes.

    x_ref   : (C*N, Sb) f32 VMEM -- padded-flat, lane-dense input; row = c*N + n;
                                    pad ring and lane tail already zeroed by wrapper.
    w_ref   : (L*C, C*N, K*K) f32 VMEM -- w_ref[l*C+ci, co*N+n, kh*K+kw] = w[l,co,ci,kh,kw]
    mask_ref: (1, Sb) f32 VMEM -- 1 at valid (center) flattened-pad positions.
    o_ref   : (C*N, Sb) f32 VMEM -- last-layer output (pad/tail lanes hold garbage;
                                    the wrapper crop discards them).
    """
    Wp = W + 2 * P
    mask = mask_ref[...]                                     # (1, Sb)
    act = x_ref[...]                                         # (C*N, Sb), 3 vregs

    for l in range(num_layers):
        acc = None                                           # (C*N, Sb) accumulator slab
        for ci in range(C):
            xci = act[ci * N:(ci + 1) * N, :]                # (N, Sb) input-channel block
            xb = jnp.concatenate([xci] * C, axis=0)          # one sublane replicate -> (C*N, Sb)
            wl = w_ref[l * C + ci]                           # (C*N, K*K) weight columns
            for kh in range(K):
                for kw in range(K):
                    # out_pad[p] needs in_pad[p + delta], delta = (kh-P)*Wp + (kw-P).
                    delta = (kh - P) * Wp + (kw - P)
                    win = xb if delta == 0 else pltpu.roll(
                        xb, shift=(-delta) % Sb, axis=1)     # XLU lane rotation
                    t = kh * K + kw
                    wcol = wl[:, t:t + 1]                    # (C*N, 1) column, lane-broadcast
                    term = win * wcol                        # one full-vreg mul for ALL co
                    acc = term if acc is None else acc + term
        y = jnp.where(acc >= 0.0, acc, slope * acc)          # leaky_relu(0.2)
        if l < num_layers - 1:
            # Re-zero the pad ring + lane tail so next layer's shifted reads see zeros.
            act = y * mask
        else:
            # Final layer: skip the mask; the wrapper crop discards pad/tail lanes.
            act = y

    o_ref[...] = act                                         # full-width unmasked store


def random_kernel_gin(x, weights, *, kernel_size=3, slope=0.2):
    """Forward pass of RandomKernelGIN with host-provided per-layer weights.

    x      : (N, C, H, W) activations (NCHW, like PyTorch).
    weights: (num_layers, C, C, K, K) conv weights (OIHW per layer).
    """
    N, C, H, W = x.shape
    L, Cout, Cin, K, K2 = weights.shape
    assert Cout == C and Cin == C and K == kernel_size and K2 == K
    P = K // 2
    assert K % 2 == 1 and P >= 1, "roll-based same-padding requires an odd kernel_size"
    Hp, Wp = H + 2 * P, W + 2 * P
    S = Hp * Wp
    Sb = ((S + 127) // 128) * 128          # lane-dense padded length (multiple of 128)
    CN = C * N

    # Circular-roll safety: the largest |delta| over the K*K taps must never move a
    # read for a VALID output position outside [0, S) (wrap may only land on pad/tail
    # positions, which are later masked / cropped).
    max_shift = P * Wp + P
    min_center = P * Wp + P
    max_center = (P + H - 1) * Wp + (P + W - 1)
    assert Sb >= S and min_center - max_shift >= 0 and max_center + max_shift < S, (
        "circular pltpu.roll would wrap reads into valid output positions")

    # ---- Layout plumbing (cheap XLA ops on tiny tensors) ----
    # Input: channel-major, spatially zero-padded, flattened, lane-tail zeroed.
    xt = jnp.transpose(x.astype(jnp.float32), (1, 0, 2, 3))          # (C, N, H, W)
    xp = jnp.pad(xt, ((0, 0), (0, 0), (P, P), (P, P)))               # (C, N, Hp, Wp)
    x_packed = jnp.pad(xp.reshape(CN, S), ((0, 0), (0, Sb - S)))     # (CN, Sb)

    # Weight columns: w_cols[l*C+ci, co*N+n, kh*K+kw] = weights[l, co, ci, kh, kw].
    wt = jnp.transpose(weights.astype(jnp.float32), (0, 2, 1, 3, 4))  # (L, ci, co, K, K)
    wt = wt.reshape(L, C, C, K * K)                                   # (L, ci, co, KK)
    wt = jnp.repeat(wt, N, axis=2)                                    # repeat co N times
    w_cols = wt.reshape(L * C, CN, K * K)                             # (L*C, CN, KK)

    # Pad-ring / lane-tail mask.
    m2d = jnp.zeros((Hp, Wp), jnp.float32).at[P:P + H, P:P + W].set(1.0)
    mask = jnp.zeros((1, Sb), jnp.float32).at[0, :S].set(m2d.reshape(-1))

    kernel = functools.partial(
        _gin_fused_kernel,
        num_layers=L, N=N, C=C, W=W, K=K, P=P, Sb=Sb, slope=slope)

    flops = 2 * L * N * C * C * K * K * H * W
    bytes_accessed = 4 * (x.size + N * C * H * W + weights.size)

    out_padded = pl.pallas_call(
        kernel,
        out_shape=jax.ShapeDtypeStruct((CN, Sb), jnp.float32),
        in_specs=[
            pl.BlockSpec(memory_space=pltpu.MemorySpace.VMEM),   # x_packed (CN, Sb)
            pl.BlockSpec(memory_space=pltpu.MemorySpace.VMEM),   # weight columns
            pl.BlockSpec(memory_space=pltpu.MemorySpace.VMEM),   # pad-ring mask
        ],
        out_specs=pl.BlockSpec(memory_space=pltpu.MemorySpace.VMEM),
        cost_estimate=pl.CostEstimate(
            flops=flops, transcendentals=0, bytes_accessed=bytes_accessed),
    )(x_packed, w_cols, mask)

    # Undo layout plumbing: (CN, Sb) padded-flat -> (N, C, H, W) center crop.
    out = out_padded[:, :S].reshape(C, N, Hp, Wp)[:, :, P:P + H, P:P + W]
    return jnp.transpose(out, (1, 0, 2, 3))


def _reference(x, weights, *, kernel_size=3, slope=0.2):
    # Pure-JAX reference (lax conv == PyTorch conv2d: cross-correlation, OIHW).
    padding = kernel_size // 2
    out = x.astype(jnp.float32)
    for layer in range(weights.shape[0]):
        out = jax.lax.conv_general_dilated(
            out,
            weights[layer].astype(jnp.float32),
            window_strides=(1, 1),
            padding=[(padding, padding), (padding, padding)],
            dimension_numbers=("NCHW", "OIHW", "NCHW"),
            precision=jax.lax.Precision.HIGHEST,
        )
        out = jnp.where(out >= 0.0, out, slope * out)
    return out


if __name__ == "__main__":
    num_layers = 3
    channels = 4
    kernel_size = 3
    N, H, W = 2, 16, 16

    key = jax.random.PRNGKey(0)
    kx, kw = jax.random.split(key)
    x = jax.random.normal(kx, (N, channels, H, W), dtype=jnp.float32)
    # Deterministic per-layer "random" conv weights (OIHW), like torch.randn(C, C, K, K).
    weights = jax.random.normal(
        kw, (num_layers, channels, channels, kernel_size, kernel_size),
        dtype=jnp.float32,
    )

    fwd = jax.jit(functools.partial(random_kernel_gin, kernel_size=kernel_size))
    out = jax.block_until_ready(fwd(x, weights))

    ref = _reference(x, weights, kernel_size=kernel_size)
    assert out.shape == (N, channels, H, W)
    assert jnp.allclose(out, ref, atol=1e-3, rtol=1e-4), float(
        jnp.max(jnp.abs(out - ref)))

    print("KERNEL_OK")
</pallas_src>

<mosaic_0001>
module attributes {stable_mosaic.version = 11 : i64} {
  func.func @_gin_fused_kernel(%arg0: memref<8x384xf32, #tpu.memory_space<vmem>>, %arg1: memref<12x8x9xf32, #tpu.memory_space<vmem>>, %arg2: memref<1x384xf32, #tpu.memory_space<vmem>>, %arg3: memref<8x384xf32, #tpu.memory_space<vmem>>) attributes {dimension_semantics = [], scalar_prefetch = 0 : i64, scratch_operands = 0 : i64, tpu.core_type = #tpu.core_type<tc>} {
    %c0 = arith.constant 0 : index
    %c0_0 = arith.constant 0 : index
    %0 = vector.load %arg2[%c0, %c0_0] : memref<1x384xf32, #tpu.memory_space<vmem>>, vector<1x384xf32>
    %c0_1 = arith.constant 0 : index
    %c0_2 = arith.constant 0 : index
    %1 = vector.load %arg0[%c0_1, %c0_2] : memref<8x384xf32, #tpu.memory_space<vmem>>, vector<8x384xf32>
    %2 = vector.extract_strided_slice %1 {offsets = [0, 0], sizes = [2, 384], strides = [1, 1]} : vector<8x384xf32> to vector<2x384xf32>
    %3 = tpu.concatenate %2, %2, %2, %2 in 0 : vector<2x384xf32>, vector<2x384xf32>, vector<2x384xf32>, vector<2x384xf32> -> vector<8x384xf32>
    %c0_3 = arith.constant 0 : index
    %c0_4 = arith.constant 0 : index
    %c0_5 = arith.constant 0 : index
    %4 = vector.load %arg1[%c0_3, %c0_4, %c0_5] : memref<12x8x9xf32, #tpu.memory_space<vmem>>, vector<1x8x9xf32>
    %5 = vector.shape_cast %4 : vector<1x8x9xf32> to vector<8x9xf32>
    %c19_i32 = arith.constant 19 : i32
    %6 = tpu.dynamic_rotate %3 by %c19_i32 dim 1 : vector<8x384xf32>, i32 -> vector<8x384xf32>
    %7 = vector.extract_strided_slice %5 {offsets = [0, 0], sizes = [8, 1], strides = [1, 1]} : vector<8x9xf32> to vector<8x1xf32>
    %8 = vector.broadcast %7 : vector<8x1xf32> to vector<8x384xf32>
    %9 = arith.mulf %6, %8 : vector<8x384xf32>
    %c18_i32 = arith.constant 18 : i32
    %10 = tpu.dynamic_rotate %3 by %c18_i32 dim 1 : vector<8x384xf32>, i32 -> vector<8x384xf32>
    %11 = vector.extract_strided_slice %5 {offsets = [0, 1], sizes = [8, 1], strides = [1, 1]} : vector<8x9xf32> to vector<8x1xf32>
    %12 = vector.broadcast %11 : vector<8x1xf32> to vector<8x384xf32>
    %13 = arith.mulf %10, %12 : vector<8x384xf32>
    %14 = arith.addf %9, %13 : vector<8x384xf32>
    %c17_i32 = arith.constant 17 : i32
    %15 = tpu.dynamic_rotate %3 by %c17_i32 dim 1 : vector<8x384xf32>, i32 -> vector<8x384xf32>
    %16 = vector.extract_strided_slice %5 {offsets = [0, 2], sizes = [8, 1], strides = [1, 1]} : vector<8x9xf32> to vector<8x1xf32>
    %17 = vector.broadcast %16 : vector<8x1xf32> to vector<8x384xf32>
    %18 = arith.mulf %15, %17 : vector<8x384xf32>
    %19 = arith.addf %14, %18 : vector<8x384xf32>
    %c1_i32 = arith.constant 1 : i32
    %20 = tpu.dynamic_rotate %3 by %c1_i32 dim 1 : vector<8x384xf32>, i32 -> vector<8x384xf32>
    %21 = vector.extract_strided_slice %5 {offsets = [0, 3], sizes = [8, 1], strides = [1, 1]} : vector<8x9xf32> to vector<8x1xf32>
    %22 = vector.broadcast %21 : vector<8x1xf32> to vector<8x384xf32>
    %23 = arith.mulf %20, %22 : vector<8x384xf32>
    %24 = arith.addf %19, %23 : vector<8x384xf32>
    %25 = vector.extract_strided_slice %5 {offsets = [0, 4], sizes = [8, 1], strides = [1, 1]} : vector<8x9xf32> to vector<8x1xf32>
    %26 = vector.broadcast %25 : vector<8x1xf32> to vector<8x384xf32>
    %27 = arith.mulf %3, %26 : vector<8x384xf32>
    %28 = arith.addf %24, %27 : vector<8x384xf32>
    %c383_i32 = arith.constant 383 : i32
    %29 = tpu.dynamic_rotate %3 by %c383_i32 dim 1 : vector<8x384xf32>, i32 -> vector<8x384xf32>
    %30 = vector.extract_strided_slice %5 {offsets = [0, 5], sizes = [8, 1], strides = [1, 1]} : vector<8x9xf32> to vector<8x1xf32>
    %31 = vector.broadcast %30 : vector<8x1xf32> to vector<8x384xf32>
    %32 = arith.mulf %29, %31 : vector<8x384xf32>
    %33 = arith.addf %28, %32 : vector<8x384xf32>
    %c367_i32 = arith.constant 367 : i32
    %34 = tpu.dynamic_rotate %3 by %c367_i32 dim 1 : vector<8x384xf32>, i32 -> vector<8x384xf32>
    %35 = vector.extract_strided_slice %5 {offsets = [0, 6], sizes = [8, 1], strides = [1, 1]} : vector<8x9xf32> to vector<8x1xf32>
    %36 = vector.broadcast %35 : vector<8x1xf32> to vector<8x384xf32>
    %37 = arith.mulf %34, %36 : vector<8x384xf32>
    %38 = arith.addf %33, %37 : vector<8x384xf32>
    %c366_i32 = arith.constant 366 : i32
    %39 = tpu.dynamic_rotate %3 by %c366_i32 dim 1 : vector<8x384xf32>, i32 -> vector<8x384xf32>
    %40 = vector.extract_strided_slice %5 {offsets = [0, 7], sizes = [8, 1], strides = [1, 1]} : vector<8x9xf32> to vector<8x1xf32>
    %41 = vector.broadcast %40 : vector<8x1xf32> to vector<8x384xf32>
    %42 = arith.mulf %39, %41 : vector<8x384xf32>
    %43 = arith.addf %38, %42 : vector<8x384xf32>
    %c365_i32 = arith.constant 365 : i32
    %44 = tpu.dynamic_rotate %3 by %c365_i32 dim 1 : vector<8x384xf32>, i32 -> vector<8x384xf32>
    %45 = vector.extract_strided_slice %5 {offsets = [0, 8], sizes = [8, 1], strides = [1, 1]} : vector<8x9xf32> to vector<8x1xf32>
    %46 = vector.broadcast %45 : vector<8x1xf32> to vector<8x384xf32>
    %47 = arith.mulf %44, %46 : vector<8x384xf32>
    %48 = arith.addf %43, %47 : vector<8x384xf32>
    %49 = vector.extract_strided_slice %1 {offsets = [2, 0], sizes = [2, 384], strides = [1, 1]} : vector<8x384xf32> to vector<2x384xf32>
    %50 = tpu.concatenate %49, %49, %49, %49 in 0 : vector<2x384xf32>, vector<2x384xf32>, vector<2x384xf32>, vector<2x384xf32> -> vector<8x384xf32>
    %c1 = arith.constant 1 : index
    %c0_6 = arith.constant 0 : index
    %c0_7 = arith.constant 0 : index
    %51 = vector.load %arg1[%c1, %c0_6, %c0_7] : memref<12x8x9xf32, #tpu.memory_space<vmem>>, vector<1x8x9xf32>
    %52 = vector.shape_cast %51 : vector<1x8x9xf32> to vector<8x9xf32>
    %c19_i32_8 = arith.constant 19 : i32
    %53 = tpu.dynamic_rotate %50 by %c19_i32_8 dim 1 : vector<8x384xf32>, i32 -> vector<8x384xf32>
    %54 = vector.extract_strided_slice %52 {offsets = [0, 0], sizes = [8, 1], strides = [1, 1]} : vector<8x9xf32> to vector<8x1xf32>
    %55 = vector.broadcast %54 : vector<8x1xf32> to vector<8x384xf32>
    %56 = arith.mulf %53, %55 : vector<8x384xf32>
    %57 = arith.addf %48, %56 : vector<8x384xf32>
    %c18_i32_9 = arith.constant 18 : i32
    %58 = tpu.dynamic_rotate %50 by %c18_i32_9 dim 1 : vector<8x384xf32>, i32 -> vector<8x384xf32>
    %59 = vector.extract_strided_slice %52 {offsets = [0, 1], sizes = [8, 1], strides = [1, 1]} : vector<8x9xf32> to vector<8x1xf32>
    %60 = vector.broadcast %59 : vector<8x1xf32> to vector<8x384xf32>
    %61 = arith.mulf %58, %60 : vector<8x384xf32>
    %62 = arith.addf %57, %61 : vector<8x384xf32>
    %c17_i32_10 = arith.constant 17 : i32
    %63 = tpu.dynamic_rotate %50 by %c17_i32_10 dim 1 : vector<8x384xf32>, i32 -> vector<8x384xf32>
    %64 = vector.extract_strided_slice %52 {offsets = [0, 2], sizes = [8, 1], strides = [1, 1]} : vector<8x9xf32> to vector<8x1xf32>
    %65 = vector.broadcast %64 : vector<8x1xf32> to vector<8x384xf32>
    %66 = arith.mulf %63, %65 : vector<8x384xf32>
    %67 = arith.addf %62, %66 : vector<8x384xf32>
    %c1_i32_11 = arith.constant 1 : i32
    %68 = tpu.dynamic_rotate %50 by %c1_i32_11 dim 1 : vector<8x384xf32>, i32 -> vector<8x384xf32>
    %69 = vector.extract_strided_slice %52 {offsets = [0, 3], sizes = [8, 1], strides = [1, 1]} : vector<8x9xf32> to vector<8x1xf32>
    %70 = vector.broadcast %69 : vector<8x1xf32> to vector<8x384xf32>
    %71 = arith.mulf %68, %70 : vector<8x384xf32>
    %72 = arith.addf %67, %71 : vector<8x384xf32>
    %73 = vector.extract_strided_slice %52 {offsets = [0, 4], sizes = [8, 1], strides = [1, 1]} : vector<8x9xf32> to vector<8x1xf32>
    %74 = vector.broadcast %73 : vector<8x1xf32> to vector<8x384xf32>
    %75 = arith.mulf %50, %74 : vector<8x384xf32>
    %76 = arith.addf %72, %75 : vector<8x384xf32>
    %c383_i32_12 = arith.constant 383 : i32
    %77 = tpu.dynamic_rotate %50 by %c383_i32_12 dim 1 : vector<8x384xf32>, i32 -> vector<8x384xf32>
    %78 = vector.extract_strided_slice %52 {offsets = [0, 5], sizes = [8, 1], strides = [1, 1]} : vector<8x9xf32> to vector<8x1xf32>
    %79 = vector.broadcast %78 : vector<8x1xf32> to vector<8x384xf32>
    %80 = arith.mulf %77, %79 : vector<8x384xf32>
    %81 = arith.addf %76, %80 : vector<8x384xf32>
    %c367_i32_13 = arith.constant 367 : i32
    %82 = tpu.dynamic_rotate %50 by %c367_i32_13 dim 1 : vector<8x384xf32>, i32 -> vector<8x384xf32>
    %83 = vector.extract_strided_slice %52 {offsets = [0, 6], sizes = [8, 1], strides = [1, 1]} : vector<8x9xf32> to vector<8x1xf32>
    %84 = vector.broadcast %83 : vector<8x1xf32> to vector<8x384xf32>
    %85 = arith.mulf %82, %84 : vector<8x384xf32>
    %86 = arith.addf %81, %85 : vector<8x384xf32>
    %c366_i32_14 = arith.constant 366 : i32
    %87 = tpu.dynamic_rotate %50 by %c366_i32_14 dim 1 : vector<8x384xf32>, i32 -> vector<8x384xf32>
    %88 = vector.extract_strided_slice %52 {offsets = [0, 7], sizes = [8, 1], strides = [1, 1]} : vector<8x9xf32> to vector<8x1xf32>
    %89 = vector.broadcast %88 : vector<8x1xf32> to vector<8x384xf32>
    %90 = arith.mulf %87, %89 : vector<8x384xf32>
    %91 = arith.addf %86, %90 : vector<8x384xf32>
    %c365_i32_15 = arith.constant 365 : i32
    %92 = tpu.dynamic_rotate %50 by %c365_i32_15 dim 1 : vector<8x384xf32>, i32 -> vector<8x384xf32>
    %93 = vector.extract_strided_slice %52 {offsets = [0, 8], sizes = [8, 1], strides = [1, 1]} : vector<8x9xf32> to vector<8x1xf32>
    %94 = vector.broadcast %93 : vector<8x1xf32> to vector<8x384xf32>
    %95 = arith.mulf %92, %94 : vector<8x384xf32>
    %96 = arith.addf %91, %95 : vector<8x384xf32>
    %97 = vector.extract_strided_slice %1 {offsets = [4, 0], sizes = [2, 384], strides = [1, 1]} : vector<8x384xf32> to vector<2x384xf32>
    %98 = tpu.concatenate %97, %97, %97, %97 in 0 : vector<2x384xf32>, vector<2x384xf32>, vector<2x384xf32>, vector<2x384xf32> -> vector<8x384xf32>
    %c2 = arith.constant 2 : index
    %c0_16 = arith.constant 0 : index
    %c0_17 = arith.constant 0 : index
    %99 = vector.load %arg1[%c2, %c0_16, %c0_17] : memref<12x8x9xf32, #tpu.memory_space<vmem>>, vector<1x8x9xf32>
    %100 = vector.shape_cast %99 : vector<1x8x9xf32> to vector<8x9xf32>
    %c19_i32_18 = arith.constant 19 : i32
    %101 = tpu.dynamic_rotate %98 by %c19_i32_18 dim 1 : vector<8x384xf32>, i32 -> vector<8x384xf32>
    %102 = vector.extract_strided_slice %100 {offsets = [0, 0], sizes = [8, 1], strides = [1, 1]} : vector<8x9xf32> to vector<8x1xf32>
    %103 = vector.broadcast %102 : vector<8x1xf32> to vector<8x384xf32>
    %104 = arith.mulf %101, %103 : vector<8x384xf32>
    %105 = arith.addf %96, %104 : vector<8x384xf32>
    %c18_i32_19 = arith.constant 18 : i32
    %106 = tpu.dynamic_rotate %98 by %c18_i32_19 dim 1 : vector<8x384xf32>, i32 -> vector<8x384xf32>
    %107 = vector.extract_strided_slice %100 {offsets = [0, 1], sizes = [8, 1], strides = [1, 1]} : vector<8x9xf32> to vector<8x1xf32>
    %108 = vector.broadcast %107 : vector<8x1xf32> to vector<8x384xf32>
    %109 = arith.mulf %106, %108 : vector<8x384xf32>
    %110 = arith.addf %105, %109 : vector<8x384xf32>
    %c17_i32_20 = arith.constant 17 : i32
    %111 = tpu.dynamic_rotate %98 by %c17_i32_20 dim 1 : vector<8x384xf32>, i32 -> vector<8x384xf32>
    %112 = vector.extract_strided_slice %100 {offsets = [0, 2], sizes = [8, 1], strides = [1, 1]} : vector<8x9xf32> to vector<8x1xf32>
    %113 = vector.broadcast %112 : vector<8x1xf32> to vector<8x384xf32>
    %114 = arith.mulf %111, %113 : vector<8x384xf32>
    %115 = arith.addf %110, %114 : vector<8x384xf32>
    %c1_i32_21 = arith.constant 1 : i32
    %116 = tpu.dynamic_rotate %98 by %c1_i32_21 dim 1 : vector<8x384xf32>, i32 -> vector<8x384xf32>
    %117 = vector.extract_strided_slice %100 {offsets = [0, 3], sizes = [8, 1], strides = [1, 1]} : vector<8x9xf32> to vector<8x1xf32>
    %118 = vector.broadcast %117 : vector<8x1xf32> to vector<8x384xf32>
    %119 = arith.mulf %116, %118 : vector<8x384xf32>
    %120 = arith.addf %115, %119 : vector<8x384xf32>
    %121 = vector.extract_strided_slice %100 {offsets = [0, 4], sizes = [8, 1], strides = [1, 1]} : vector<8x9xf32> to vector<8x1xf32>
    %122 = vector.broadcast %121 : vector<8x1xf32> to vector<8x384xf32>
    %123 = arith.mulf %98, %122 : vector<8x384xf32>
    %124 = arith.addf %120, %123 : vector<8x384xf32>
    %c383_i32_22 = arith.constant 383 : i32
    %125 = tpu.dynamic_rotate %98 by %c383_i32_22 dim 1 : vector<8x384xf32>, i32 -> vector<8x384xf32>
    %126 = vector.extract_strided_slice %100 {offsets = [0, 5], sizes = [8, 1], strides = [1, 1]} : vector<8x9xf32> to vector<8x1xf32>
    %127 = vector.broadcast %126 : vector<8x1xf32> to vector<8x384xf32>
    %128 = arith.mulf %125, %127 : vector<8x384xf32>
    %129 = arith.addf %124, %128 : vector<8x384xf32>
    %c367_i32_23 = arith.constant 367 : i32
    %130 = tpu.dynamic_rotate %98 by %c367_i32_23 dim 1 : vector<8x384xf32>, i32 -> vector<8x384xf32>
    %131 = vector.extract_strided_slice %100 {offsets = [0, 6], sizes = [8, 1], strides = [1, 1]} : vector<8x9xf32> to vector<8x1xf32>
    %132 = vector.broadcast %131 : vector<8x1xf32> to vector<8x384xf32>
    %133 = arith.mulf %130, %132 : vector<8x384xf32>
    %134 = arith.addf %129, %133 : vector<8x384xf32>
    %c366_i32_24 = arith.constant 366 : i32
    %135 = tpu.dynamic_rotate %98 by %c366_i32_24 dim 1 : vector<8x384xf32>, i32 -> vector<8x384xf32>
    %136 = vector.extract_strided_slice %100 {offsets = [0, 7], sizes = [8, 1], strides = [1, 1]} : vector<8x9xf32> to vector<8x1xf32>
    %137 = vector.broadcast %136 : vector<8x1xf32> to vector<8x384xf32>
    %138 = arith.mulf %135, %137 : vector<8x384xf32>
    %139 = arith.addf %134, %138 : vector<8x384xf32>
    %c365_i32_25 = arith.constant 365 : i32
    %140 = tpu.dynamic_rotate %98 by %c365_i32_25 dim 1 : vector<8x384xf32>, i32 -> vector<8x384xf32>
    %141 = vector.extract_strided_slice %100 {offsets = [0, 8], sizes = [8, 1], strides = [1, 1]} : vector<8x9xf32> to vector<8x1xf32>
    %142 = vector.broadcast %141 : vector<8x1xf32> to vector<8x384xf32>
    %143 = arith.mulf %140, %142 : vector<8x384xf32>
    %144 = arith.addf %139, %143 : vector<8x384xf32>
    %145 = vector.extract_strided_slice %1 {offsets = [6, 0], sizes = [2, 384], strides = [1, 1]} : vector<8x384xf32> to vector<2x384xf32>
    %146 = tpu.concatenate %145, %145, %145, %145 in 0 : vector<2x384xf32>, vector<2x384xf32>, vector<2x384xf32>, vector<2x384xf32> -> vector<8x384xf32>
    %c3 = arith.constant 3 : index
    %c0_26 = arith.constant 0 : index
    %c0_27 = arith.constant 0 : index
    %147 = vector.load %arg1[%c3, %c0_26, %c0_27] : memref<12x8x9xf32, #tpu.memory_space<vmem>>, vector<1x8x9xf32>
    %148 = vector.shape_cast %147 : vector<1x8x9xf32> to vector<8x9xf32>
    %c19_i32_28 = arith.constant 19 : i32
    %149 = tpu.dynamic_rotate %146 by %c19_i32_28 dim 1 : vector<8x384xf32>, i32 -> vector<8x384xf32>
    %150 = vector.extract_strided_slice %148 {offsets = [0, 0], sizes = [8, 1], strides = [1, 1]} : vector<8x9xf32> to vector<8x1xf32>
    %151 = vector.broadcast %150 : vector<8x1xf32> to vector<8x384xf32>
    %152 = arith.mulf %149, %151 : vector<8x384xf32>
    %153 = arith.addf %144, %152 : vector<8x384xf32>
    %c18_i32_29 = arith.constant 18 : i32
    %154 = tpu.dynamic_rotate %146 by %c18_i32_29 dim 1 : vector<8x384xf32>, i32 -> vector<8x384xf32>
    %155 = vector.extract_strided_slice %148 {offsets = [0, 1], sizes = [8, 1], strides = [1, 1]} : vector<8x9xf32> to vector<8x1xf32>
    %156 = vector.broadcast %155 : vector<8x1xf32> to vector<8x384xf32>
    %157 = arith.mulf %154, %156 : vector<8x384xf32>
    %158 = arith.addf %153, %157 : vector<8x384xf32>
    %c17_i32_30 = arith.constant 17 : i32
    %159 = tpu.dynamic_rotate %146 by %c17_i32_30 dim 1 : vector<8x384xf32>, i32 -> vector<8x384xf32>
    %160 = vector.extract_strided_slice %148 {offsets = [0, 2], sizes = [8, 1], strides = [1, 1]} : vector<8x9xf32> to vector<8x1xf32>
    %161 = vector.broadcast %160 : vector<8x1xf32> to vector<8x384xf32>
    %162 = arith.mulf %159, %161 : vector<8x384xf32>
    %163 = arith.addf %158, %162 : vector<8x384xf32>
    %c1_i32_31 = arith.constant 1 : i32
    %164 = tpu.dynamic_rotate %146 by %c1_i32_31 dim 1 : vector<8x384xf32>, i32 -> vector<8x384xf32>
    %165 = vector.extract_strided_slice %148 {offsets = [0, 3], sizes = [8, 1], strides = [1, 1]} : vector<8x9xf32> to vector<8x1xf32>
    %166 = vector.broadcast %165 : vector<8x1xf32> to vector<8x384xf32>
    %167 = arith.mulf %164, %166 : vector<8x384xf32>
    %168 = arith.addf %163, %167 : vector<8x384xf32>
    %169 = vector.extract_strided_slice %148 {offsets = [0, 4], sizes = [8, 1], strides = [1, 1]} : vector<8x9xf32> to vector<8x1xf32>
    %170 = vector.broadcast %169 : vector<8x1xf32> to vector<8x384xf32>
    %171 = arith.mulf %146, %170 : vector<8x384xf32>
    %172 = arith.addf %168, %171 : vector<8x384xf32>
    %c383_i32_32 = arith.constant 383 : i32
    %173 = tpu.dynamic_rotate %146 by %c383_i32_32 dim 1 : vector<8x384xf32>, i32 -> vector<8x384xf32>
    %174 = vector.extract_strided_slice %148 {offsets = [0, 5], sizes = [8, 1], strides = [1, 1]} : vector<8x9xf32> to vector<8x1xf32>
    %175 = vector.broadcast %174 : vector<8x1xf32> to vector<8x384xf32>
    %176 = arith.mulf %173, %175 : vector<8x384xf32>
    %177 = arith.addf %172, %176 : vector<8x384xf32>
    %c367_i32_33 = arith.constant 367 : i32
    %178 = tpu.dynamic_rotate %146 by %c367_i32_33 dim 1 : vector<8x384xf32>, i32 -> vector<8x384xf32>
    %179 = vector.extract_strided_slice %148 {offsets = [0, 6], sizes = [8, 1], strides = [1, 1]} : vector<8x9xf32> to vector<8x1xf32>
    %180 = vector.broadcast %179 : vector<8x1xf32> to vector<8x384xf32>
    %181 = arith.mulf %178, %180 : vector<8x384xf32>
    %182 = arith.addf %177, %181 : vector<8x384xf32>
    %c366_i32_34 = arith.constant 366 : i32
    %183 = tpu.dynamic_rotate %146 by %c366_i32_34 dim 1 : vector<8x384xf32>, i32 -> vector<8x384xf32>
    %184 = vector.extract_strided_slice %148 {offsets = [0, 7], sizes = [8, 1], strides = [1, 1]} : vector<8x9xf32> to vector<8x1xf32>
    %185 = vector.broadcast %184 : vector<8x1xf32> to vector<8x384xf32>
    %186 = arith.mulf %183, %185 : vector<8x384xf32>
    %187 = arith.addf %182, %186 : vector<8x384xf32>
    %c365_i32_35 = arith.constant 365 : i32
    %188 = tpu.dynamic_rotate %146 by %c365_i32_35 dim 1 : vector<8x384xf32>, i32 -> vector<8x384xf32>
    %189 = vector.extract_strided_slice %148 {offsets = [0, 8], sizes = [8, 1], strides = [1, 1]} : vector<8x9xf32> to vector<8x1xf32>
    %190 = vector.broadcast %189 : vector<8x1xf32> to vector<8x384xf32>
    %191 = arith.mulf %188, %190 : vector<8x384xf32>
    %192 = arith.addf %187, %191 : vector<8x384xf32>
    %cst = arith.constant 0.000000e+00 : f32
    %193 = vector.broadcast %cst : f32 to vector<8x384xf32>
    %194 = arith.cmpf oge, %192, %193 : vector<8x384xf32>
    %cst_36 = arith.constant 2.000000e-01 : f32
    %195 = vector.broadcast %cst_36 : f32 to vector<8x384xf32>
    %196 = arith.mulf %195, %192 : vector<8x384xf32>
    %197 = arith.select %194, %192, %196 : vector<8x384xi1>, vector<8x384xf32>
    %198 = vector.broadcast %0 : vector<1x384xf32> to vector<8x384xf32>
    %199 = arith.mulf %197, %198 : vector<8x384xf32>
    %200 = vector.extract_strided_slice %199 {offsets = [0, 0], sizes = [2, 384], strides = [1, 1]} : vector<8x384xf32> to vector<2x384xf32>
    %201 = tpu.concatenate %200, %200, %200, %200 in 0 : vector<2x384xf32>, vector<2x384xf32>, vector<2x384xf32>, vector<2x384xf32> -> vector<8x384xf32>
    %c4 = arith.constant 4 : index
    %c0_37 = arith.constant 0 : index
    %c0_38 = arith.constant 0 : index
    %202 = vector.load %arg1[%c4, %c0_37, %c0_38] : memref<12x8x9xf32, #tpu.memory_space<vmem>>, vector<1x8x9xf32>
    %203 = vector.shape_cast %202 : vector<1x8x9xf32> to vector<8x9xf32>
    %c19_i32_39 = arith.constant 19 : i32
    %204 = tpu.dynamic_rotate %201 by %c19_i32_39 dim 1 : vector<8x384xf32>, i32 -> vector<8x384xf32>
    %205 = vector.extract_strided_slice %203 {offsets = [0, 0], sizes = [8, 1], strides = [1, 1]} : vector<8x9xf32> to vector<8x1xf32>
    %206 = vector.broadcast %205 : vector<8x1xf32> to vector<8x384xf32>
    %207 = arith.mulf %204, %206 : vector<8x384xf32>
    %c18_i32_40 = arith.constant 18 : i32
    %208 = tpu.dynamic_rotate %201 by %c18_i32_40 dim 1 : vector<8x384xf32>, i32 -> vector<8x384xf32>
    %209 = vector.extract_strided_slice %203 {offsets = [0, 1], sizes = [8, 1], strides = [1, 1]} : vector<8x9xf32> to vector<8x1xf32>
    %210 = vector.broadcast %209 : vector<8x1xf32> to vector<8x384xf32>
    %211 = arith.mulf %208, %210 : vector<8x384xf32>
    %212 = arith.addf %207, %211 : vector<8x384xf32>
    %c17_i32_41 = arith.constant 17 : i32
    %213 = tpu.dynamic_rotate %201 by %c17_i32_41 dim 1 : vector<8x384xf32>, i32 -> vector<8x384xf32>
    %214 = vector.extract_strided_slice %203 {offsets = [0, 2], sizes = [8, 1], strides = [1, 1]} : vector<8x9xf32> to vector<8x1xf32>
    %215 = vector.broadcast %214 : vector<8x1xf32> to vector<8x384xf32>
    %216 = arith.mulf %213, %215 : vector<8x384xf32>
    %217 = arith.addf %212, %216 : vector<8x384xf32>
    %c1_i32_42 = arith.constant 1 : i32
    %218 = tpu.dynamic_rotate %201 by %c1_i32_42 dim 1 : vector<8x384xf32>, i32 -> vector<8x384xf32>
    %219 = vector.extract_strided_slice %203 {offsets = [0, 3], sizes = [8, 1], strides = [1, 1]} : vector<8x9xf32> to vector<8x1xf32>
    %220 = vector.broadcast %219 : vector<8x1xf32> to vector<8x384xf32>
    %221 = arith.mulf %218, %220 : vector<8x384xf32>
    %222 = arith.addf %217, %221 : vector<8x384xf32>
    %223 = vector.extract_strided_slice %203 {offsets = [0, 4], sizes = [8, 1], strides = [1, 1]} : vector<8x9xf32> to vector<8x1xf32>
    %224 = vector.broadcast %223 : vector<8x1xf32> to vector<8x384xf32>
    %225 = arith.mulf %201, %224 : vector<8x384xf32>
    %226 = arith.addf %222, %225 : vector<8x384xf32>
    %c383_i32_43 = arith.constant 383 : i32
    %227 = tpu.dynamic_rotate %201 by %c383_i32_43 dim 1 : vector<8x384xf32>, i32 -> vector<8x384xf32>
    %228 = vector.extract_strided_slice %203 {offsets = [0, 5], sizes = [8, 1], strides = [1, 1]} : vector<8x9xf32> to vector<8x1xf32>
    %229 = vector.broadcast %228 : vector<8x1xf32> to vector<8x384xf32>
    %230 = arith.mulf %227, %229 : vector<8x384xf32>
    %231 = arith.addf %226, %230 : vector<8x384xf32>
    %c367_i32_44 = arith.constant 367 : i32
    %232 = tpu.dynamic_rotate %201 by %c367_i32_44 dim 1 : vector<8x384xf32>, i32 -> vector<8x384xf32>
    %233 = vector.extract_strided_slice %203 {offsets = [0, 6], sizes = [8, 1], strides = [1, 1]} : vector<8x9xf32> to vector<8x1xf32>
    %234 = vector.broadcast %233 : vector<8x1xf32> to vector<8x384xf32>
    %235 = arith.mulf %232, %234 : vector<8x384xf32>
    %236 = arith.addf %231, %235 : vector<8x384xf32>
    %c366_i32_45 = arith.constant 366 : i32
    %237 = tpu.dynamic_rotate %201 by %c366_i32_45 dim 1 : vector<8x384xf32>, i32 -> vector<8x384xf32>
    %238 = vector.extract_strided_slice %203 {offsets = [0, 7], sizes = [8, 1], strides = [1, 1]} : vector<8x9xf32> to vector<8x1xf32>
    %239 = vector.broadcast %238 : vector<8x1xf32> to vector<8x384xf32>
    %240 = arith.mulf %237, %239 : vector<8x384xf32>
    %241 = arith.addf %236, %240 : vector<8x384xf32>
    %c365_i32_46 = arith.constant 365 : i32
    %242 = tpu.dynamic_rotate %201 by %c365_i32_46 dim 1 : vector<8x384xf32>, i32 -> vector<8x384xf32>
    %243 = vector.extract_strided_slice %203 {offsets = [0, 8], sizes = [8, 1], strides = [1, 1]} : vector<8x9xf32> to vector<8x1xf32>
    %244 = vector.broadcast %243 : vector<8x1xf32> to vector<8x384xf32>
    %245 = arith.mulf %242, %244 : vector<8x384xf32>
    %246 = arith.addf %241, %245 : vector<8x384xf32>
    %247 = vector.extract_strided_slice %199 {offsets = [2, 0], sizes = [2, 384], strides = [1, 1]} : vector<8x384xf32> to vector<2x384xf32>
    %248 = tpu.concatenate %247, %247, %247, %247 in 0 : vector<2x384xf32>, vector<2x384xf32>, vector<2x384xf32>, vector<2x384xf32> -> vector<8x384xf32>
    %c5 = arith.constant 5 : index
    %c0_47 = arith.constant 0 : index
    %c0_48 = arith.constant 0 : index
    %249 = vector.load %arg1[%c5, %c0_47, %c0_48] : memref<12x8x9xf32, #tpu.memory_space<vmem>>, vector<1x8x9xf32>
    %250 = vector.shape_cast %249 : vector<1x8x9xf32> to vector<8x9xf32>
    %c19_i32_49 = arith.constant 19 : i32
    %251 = tpu.dynamic_rotate %248 by %c19_i32_49 dim 1 : vector<8x384xf32>, i32 -> vector<8x384xf32>
    %252 = vector.extract_strided_slice %250 {offsets = [0, 0], sizes = [8, 1], strides = [1, 1]} : vector<8x9xf32> to vector<8x1xf32>
    %253 = vector.broadcast %252 : vector<8x1xf32> to vector<8x384xf32>
    %254 = arith.mulf %251, %253 : vector<8x384xf32>
    %255 = arith.addf %246, %254 : vector<8x384xf32>
    %c18_i32_50 = arith.constant 18 : i32
    %256 = tpu.dynamic_rotate %248 by %c18_i32_50 dim 1 : vector<8x384xf32>, i32 -> vector<8x384xf32>
    %257 = vector.extract_strided_slice %250 {offsets = [0, 1], sizes = [8, 1], strides = [1, 1]} : vector<8x9xf32> to vector<8x1xf32>
    %258 = vector.broadcast %257 : vector<8x1xf32> to vector<8x384xf32>
    %259 = arith.mulf %256, %258 : vector<8x384xf32>
    %260 = arith.addf %255, %259 : vector<8x384xf32>
    %c17_i32_51 = arith.constant 17 : i32
    %261 = tpu.dynamic_rotate %248 by %c17_i32_51 dim 1 : vector<8x384xf32>, i32 -> vector<8x384xf32>
    %262 = vector.extract_strided_slice %250 {offsets = [0, 2], sizes = [8, 1], strides = [1, 1]} : vector<8x9xf32> to vector<8x1xf32>
    %263 = vector.broadcast %262 : vector<8x1xf32> to vector<8x384xf32>
    %264 = arith.mulf %261, %263 : vector<8x384xf32>
    %265 = arith.addf %260, %264 : vector<8x384xf32>
    %c1_i32_52 = arith.constant 1 : i32
    %266 = tpu.dynamic_rotate %248 by %c1_i32_52 dim 1 : vector<8x384xf32>, i32 -> vector<8x384xf32>
    %267 = vector.extract_strided_slice %250 {offsets = [0, 3], sizes = [8, 1], strides = [1, 1]} : vector<8x9xf32> to vector<8x1xf32>
    %268 = vector.broadcast %267 : vector<8x1xf32> to vector<8x384xf32>
    %269 = arith.mulf %266, %268 : vector<8x384xf32>
    %270 = arith.addf %265, %269 : vector<8x384xf32>
    %271 = vector.extract_strided_slice %250 {offsets = [0, 4], sizes = [8, 1], strides = [1, 1]} : vector<8x9xf32> to vector<8x1xf32>
    %272 = vector.broadcast %271 : vector<8x1xf32> to vector<8x384xf32>
    %273 = arith.mulf %248, %272 : vector<8x384xf32>
    %274 = arith.addf %270, %273 : vector<8x384xf32>
    %c383_i32_53 = arith.constant 383 : i32
    %275 = tpu.dynamic_rotate %248 by %c383_i32_53 dim 1 : vector<8x384xf32>, i32 -> vector<8x384xf32>
    %276 = vector.extract_strided_slice %250 {offsets = [0, 5], sizes = [8, 1], strides = [1, 1]} : vector<8x9xf32> to vector<8x1xf32>
    %277 = vector.broadcast %276 : vector<8x1xf32> to vector<8x384xf32>
    %278 = arith.mulf %275, %277 : vector<8x384xf32>
    %279 = arith.addf %274, %278 : vector<8x384xf32>
    %c367_i32_54 = arith.constant 367 : i32
    %280 = tpu.dynamic_rotate %248 by %c367_i32_54 dim 1 : vector<8x384xf32>, i32 -> vector<8x384xf32>
    %281 = vector.extract_strided_slice %250 {offsets = [0, 6], sizes = [8, 1], strides = [1, 1]} : vector<8x9xf32> to vector<8x1xf32>
    %282 = vector.broadcast %281 : vector<8x1xf32> to vector<8x384xf32>
    %283 = arith.mulf %280, %282 : vector<8x384xf32>
    %284 = arith.addf %279, %283 : vector<8x384xf32>
    %c366_i32_55 = arith.constant 366 : i32
    %285 = tpu.dynamic_rotate %248 by %c366_i32_55 dim 1 : vector<8x384xf32>, i32 -> vector<8x384xf32>
    %286 = vector.extract_strided_slice %250 {offsets = [0, 7], sizes = [8, 1], strides = [1, 1]} : vector<8x9xf32> to vector<8x1xf32>
    %287 = vector.broadcast %286 : vector<8x1xf32> to vector<8x384xf32>
    %288 = arith.mulf %285, %287 : vector<8x384xf32>
    %289 = arith.addf %284, %288 : vector<8x384xf32>
    %c365_i32_56 = arith.constant 365 : i32
    %290 = tpu.dynamic_rotate %248 by %c365_i32_56 dim 1 : vector<8x384xf32>, i32 -> vector<8x384xf32>
    %291 = vector.extract_strided_slice %250 {offsets = [0, 8], sizes = [8, 1], strides = [1, 1]} : vector<8x9xf32> to vector<8x1xf32>
    %292 = vector.broadcast %291 : vector<8x1xf32> to vector<8x384xf32>
    %293 = arith.mulf %290, %292 : vector<8x384xf32>
    %294 = arith.addf %289, %293 : vector<8x384xf32>
    %295 = vector.extract_strided_slice %199 {offsets = [4, 0], sizes = [2, 384], strides = [1, 1]} : vector<8x384xf32> to vector<2x384xf32>
    %296 = tpu.concatenate %295, %295, %295, %295 in 0 : vector<2x384xf32>, vector<2x384xf32>, vector<2x384xf32>, vector<2x384xf32> -> vector<8x384xf32>
    %c6 = arith.constant 6 : index
    %c0_57 = arith.constant 0 : index
    %c0_58 = arith.constant 0 : index
    %297 = vector.load %arg1[%c6, %c0_57, %c0_58] : memref<12x8x9xf32, #tpu.memory_space<vmem>>, vector<1x8x9xf32>
    %298 = vector.shape_cast %297 : vector<1x8x9xf32> to vector<8x9xf32>
    %c19_i32_59 = arith.constant 19 : i32
    %299 = tpu.dynamic_rotate %296 by %c19_i32_59 dim 1 : vector<8x384xf32>, i32 -> vector<8x384xf32>
    %300 = vector.extract_strided_slice %298 {offsets = [0, 0], sizes = [8, 1], strides = [1, 1]} : vector<8x9xf32> to vector<8x1xf32>
    %301 = vector.broadcast %300 : vector<8x1xf32> to vector<8x384xf32>
    %302 = arith.mulf %299, %301 : vector<8x384xf32>
    %303 = arith.addf %294, %302 : vector<8x384xf32>
    %c18_i32_60 = arith.constant 18 : i32
    %304 = tpu.dynamic_rotate %296 by %c18_i32_60 dim 1 : vector<8x384xf32>, i32 -> vector<8x384xf32>
    %305 = vector.extract_strided_slice %298 {offsets = [0, 1], sizes = [8, 1], strides = [1, 1]} : vector<8x9xf32> to vector<8x1xf32>
    %306 = vector.broadcast %305 : vector<8x1xf32> to vector<8x384xf32>
    %307 = arith.mulf %304, %306 : vector<8x384xf32>
    %308 = arith.addf %303, %307 : vector<8x384xf32>
    %c17_i32_61 = arith.constant 17 : i32
    %309 = tpu.dynamic_rotate %296 by %c17_i32_61 dim 1 : vector<8x384xf32>, i32 -> vector<8x384xf32>
    %310 = vector.extract_strided_slice %298 {offsets = [0, 2], sizes = [8, 1], strides = [1, 1]} : vector<8x9xf32> to vector<8x1xf32>
    %311 = vector.broadcast %310 : vector<8x1xf32> to vector<8x384xf32>
    %312 = arith.mulf %309, %311 : vector<8x384xf32>
    %313 = arith.addf %308, %312 : vector<8x384xf32>
    %c1_i32_62 = arith.constant 1 : i32
    %314 = tpu.dynamic_rotate %296 by %c1_i32_62 dim 1 : vector<8x384xf32>, i32 -> vector<8x384xf32>
    %315 = vector.extract_strided_slice %298 {offsets = [0, 3], sizes = [8, 1], strides = [1, 1]} : vector<8x9xf32> to vector<8x1xf32>
    %316 = vector.broadcast %315 : vector<8x1xf32> to vector<8x384xf32>
    %317 = arith.mulf %314, %316 : vector<8x384xf32>
    %318 = arith.addf %313, %317 : vector<8x384xf32>
    %319 = vector.extract_strided_slice %298 {offsets = [0, 4], sizes = [8, 1], strides = [1, 1]} : vector<8x9xf32> to vector<8x1xf32>
    %320 = vector.broadcast %319 : vector<8x1xf32> to vector<8x384xf32>
    %321 = arith.mulf %296, %320 : vector<8x384xf32>
    %322 = arith.addf %318, %321 : vector<8x384xf32>
    %c383_i32_63 = arith.constant 383 : i32
    %323 = tpu.dynamic_rotate %296 by %c383_i32_63 dim 1 : vector<8x384xf32>, i32 -> vector<8x384xf32>
    %324 = vector.extract_strided_slice %298 {offsets = [0, 5], sizes = [8, 1], strides = [1, 1]} : vector<8x9xf32> to vector<8x1xf32>
    %325 = vector.broadcast %324 : vector<8x1xf32> to vector<8x384xf32>
    %326 = arith.mulf %323, %325 : vector<8x384xf32>
    %327 = arith.addf %322, %326 : vector<8x384xf32>
    %c367_i32_64 = arith.constant 367 : i32
    %328 = tpu.dynamic_rotate %296 by %c367_i32_64 dim 1 : vector<8x384xf32>, i32 -> vector<8x384xf32>
    %329 = vector.extract_strided_slice %298 {offsets = [0, 6], sizes = [8, 1], strides = [1, 1]} : vector<8x9xf32> to vector<8x1xf32>
    %330 = vector.broadcast %329 : vector<8x1xf32> to vector<8x384xf32>
    %331 = arith.mulf %328, %330 : vector<8x384xf32>
    %332 = arith.addf %327, %331 : vector<8x384xf32>
    %c366_i32_65 = arith.constant 366 : i32
    %333 = tpu.dynamic_rotate %296 by %c366_i32_65 dim 1 : vector<8x384xf32>, i32 -> vector<8x384xf32>
    %334 = vector.extract_strided_slice %298 {offsets = [0, 7], sizes = [8, 1], strides = [1, 1]} : vector<8x9xf32> to vector<8x1xf32>
    %335 = vector.broadcast %334 : vector<8x1xf32> to vector<8x384xf32>
    %336 = arith.mulf %333, %335 : vector<8x384xf32>
    %337 = arith.addf %332, %336 : vector<8x384xf32>
    %c365_i32_66 = arith.constant 365 : i32
    %338 = tpu.dynamic_rotate %296 by %c365_i32_66 dim 1 : vector<8x384xf32>, i32 -> vector<8x384xf32>
    %339 = vector.extract_strided_slice %298 {offsets = [0, 8], sizes = [8, 1], strides = [1, 1]} : vector<8x9xf32> to vector<8x1xf32>
    %340 = vector.broadcast %339 : vector<8x1xf32> to vector<8x384xf32>
    %341 = arith.mulf %338, %340 : vector<8x384xf32>
    %342 = arith.addf %337, %341 : vector<8x384xf32>
    %343 = vector.extract_strided_slice %199 {offsets = [6, 0], sizes = [2, 384], strides = [1, 1]} : vector<8x384xf32> to vector<2x384xf32>
    %344 = tpu.concatenate %343, %343, %343, %343 in 0 : vector<2x384xf32>, vector<2x384xf32>, vector<2x384xf32>, vector<2x384xf32> -> vector<8x384xf32>
    %c7 = arith.constant 7 : index
    %c0_67 = arith.constant 0 : index
    %c0_68 = arith.constant 0 : index
    %345 = vector.load %arg1[%c7, %c0_67, %c0_68] : memref<12x8x9xf32, #tpu.memory_space<vmem>>, vector<1x8x9xf32>
    %346 = vector.shape_cast %345 : vector<1x8x9xf32> to vector<8x9xf32>
    %c19_i32_69 = arith.constant 19 : i32
    %347 = tpu.dynamic_rotate %344 by %c19_i32_69 dim 1 : vector<8x384xf32>, i32 -> vector<8x384xf32>
    %348 = vector.extract_strided_slice %346 {offsets = [0, 0], sizes = [8, 1], strides = [1, 1]} : vector<8x9xf32> to vector<8x1xf32>
    %349 = vector.broadcast %348 : vector<8x1xf32> to vector<8x384xf32>
    %350 = arith.mulf %347, %349 : vector<8x384xf32>
    %351 = arith.addf %342, %350 : vector<8x384xf32>
    %c18_i32_70 = arith.constant 18 : i32
    %352 = tpu.dynamic_rotate %344 by %c18_i32_70 dim 1 : vector<8x384xf32>, i32 -> vector<8x384xf32>
    %353 = vector.extract_strided_slice %346 {offsets = [0, 1], sizes = [8, 1], strides = [1, 1]} : vector<8x9xf32> to vector<8x1xf32>
    %354 = vector.broadcast %353 : vector<8x1xf32> to vector<8x384xf32>
    %355 = arith.mulf %352, %354 : vector<8x384xf32>
    %356 = arith.addf %351, %355 : vector<8x384xf32>
    %c17_i32_71 = arith.constant 17 : i32
    %357 = tpu.dynamic_rotate %344 by %c17_i32_71 dim 1 : vector<8x384xf32>, i32 -> vector<8x384xf32>
    %358 = vector.extract_strided_slice %346 {offsets = [0, 2], sizes = [8, 1], strides = [1, 1]} : vector<8x9xf32> to vector<8x1xf32>
    %359 = vector.broadcast %358 : vector<8x1xf32> to vector<8x384xf32>
    %360 = arith.mulf %357, %359 : vector<8x384xf32>
    %361 = arith.addf %356, %360 : vector<8x384xf32>
    %c1_i32_72 = arith.constant 1 : i32
    %362 = tpu.dynamic_rotate %344 by %c1_i32_72 dim 1 : vector<8x384xf32>, i32 -> vector<8x384xf32>
    %363 = vector.extract_strided_slice %346 {offsets = [0, 3], sizes = [8, 1], strides = [1, 1]} : vector<8x9xf32> to vector<8x1xf32>
    %364 = vector.broadcast %363 : vector<8x1xf32> to vector<8x384xf32>
    %365 = arith.mulf %362, %364 : vector<8x384xf32>
    %366 = arith.addf %361, %365 : vector<8x384xf32>
    %367 = vector.extract_strided_slice %346 {offsets = [0, 4], sizes = [8, 1], strides = [1, 1]} : vector<8x9xf32> to vector<8x1xf32>
    %368 = vector.broadcast %367 : vector<8x1xf32> to vector<8x384xf32>
    %369 = arith.mulf %344, %368 : vector<8x384xf32>
    %370 = arith.addf %366, %369 : vector<8x384xf32>
    %c383_i32_73 = arith.constant 383 : i32
    %371 = tpu.dynamic_rotate %344 by %c383_i32_73 dim 1 : vector<8x384xf32>, i32 -> vector<8x384xf32>
    %372 = vector.extract_strided_slice %346 {offsets = [0, 5], sizes = [8, 1], strides = [1, 1]} : vector<8x9xf32> to vector<8x1xf32>
    %373 = vector.broadcast %372 : vector<8x1xf32> to vector<8x384xf32>
    %374 = arith.mulf %371, %373 : vector<8x384xf32>
    %375 = arith.addf %370, %374 : vector<8x384xf32>
    %c367_i32_74 = arith.constant 367 : i32
    %376 = tpu.dynamic_rotate %344 by %c367_i32_74 dim 1 : vector<8x384xf32>, i32 -> vector<8x384xf32>
    %377 = vector.extract_strided_slice %346 {offsets = [0, 6], sizes = [8, 1], strides = [1, 1]} : vector<8x9xf32> to vector<8x1xf32>
    %378 = vector.broadcast %377 : vector<8x1xf32> to vector<8x384xf32>
    %379 = arith.mulf %376, %378 : vector<8x384xf32>
    %380 = arith.addf %375, %379 : vector<8x384xf32>
    %c366_i32_75 = arith.constant 366 : i32
    %381 = tpu.dynamic_rotate %344 by %c366_i32_75 dim 1 : vector<8x384xf32>, i32 -> vector<8x384xf32>
    %382 = vector.extract_strided_slice %346 {offsets = [0, 7], sizes = [8, 1], strides = [1, 1]} : vector<8x9xf32> to vector<8x1xf32>
    %383 = vector.broadcast %382 : vector<8x1xf32> to vector<8x384xf32>
    %384 = arith.mulf %381, %383 : vector<8x384xf32>
    %385 = arith.addf %380, %384 : vector<8x384xf32>
    %c365_i32_76 = arith.constant 365 : i32
    %386 = tpu.dynamic_rotate %344 by %c365_i32_76 dim 1 : vector<8x384xf32>, i32 -> vector<8x384xf32>
    %387 = vector.extract_strided_slice %346 {offsets = [0, 8], sizes = [8, 1], strides = [1, 1]} : vector<8x9xf32> to vector<8x1xf32>
    %388 = vector.broadcast %387 : vector<8x1xf32> to vector<8x384xf32>
    %389 = arith.mulf %386, %388 : vector<8x384xf32>
    %390 = arith.addf %385, %389 : vector<8x384xf32>
    %cst_77 = arith.constant 0.000000e+00 : f32
    %391 = vector.broadcast %cst_77 : f32 to vector<8x384xf32>
    %392 = arith.cmpf oge, %390, %391 : vector<8x384xf32>
    %cst_78 = arith.constant 2.000000e-01 : f32
    %393 = vector.broadcast %cst_78 : f32 to vector<8x384xf32>
    %394 = arith.mulf %393, %390 : vector<8x384xf32>
    %395 = arith.select %392, %390, %394 : vector<8x384xi1>, vector<8x384xf32>
    %396 = vector.broadcast %0 : vector<1x384xf32> to vector<8x384xf32>
    %397 = arith.mulf %395, %396 : vector<8x384xf32>
    %398 = vector.extract_strided_slice %397 {offsets = [0, 0], sizes = [2, 384], strides = [1, 1]} : vector<8x384xf32> to vector<2x384xf32>
    %399 = tpu.concatenate %398, %398, %398, %398 in 0 : vector<2x384xf32>, vector<2x384xf32>, vector<2x384xf32>, vector<2x384xf32> -> vector<8x384xf32>
    %c8 = arith.constant 8 : index
    %c0_79 = arith.constant 0 : index
    %c0_80 = arith.constant 0 : index
    %400 = vector.load %arg1[%c8, %c0_79, %c0_80] : memref<12x8x9xf32, #tpu.memory_space<vmem>>, vector<1x8x9xf32>
    %401 = vector.shape_cast %400 : vector<1x8x9xf32> to vector<8x9xf32>
    %c19_i32_81 = arith.constant 19 : i32
    %402 = tpu.dynamic_rotate %399 by %c19_i32_81 dim 1 : vector<8x384xf32>, i32 -> vector<8x384xf32>
    %403 = vector.extract_strided_slice %401 {offsets = [0, 0], sizes = [8, 1], strides = [1, 1]} : vector<8x9xf32> to vector<8x1xf32>
    %404 = vector.broadcast %403 : vector<8x1xf32> to vector<8x384xf32>
    %405 = arith.mulf %402, %404 : vector<8x384xf32>
    %c18_i32_82 = arith.constant 18 : i32
    %406 = tpu.dynamic_rotate %399 by %c18_i32_82 dim 1 : vector<8x384xf32>, i32 -> vector<8x384xf32>
    %407 = vector.extract_strided_slice %401 {offsets = [0, 1], sizes = [8, 1], strides = [1, 1]} : vector<8x9xf32> to vector<8x1xf32>
    %408 = vector.broadcast %407 : vector<8x1xf32> to vector<8x384xf32>
    %409 = arith.mulf %406, %408 : vector<8x384xf32>
    %410 = arith.addf %405, %409 : vector<8x384xf32>
    %c17_i32_83 = arith.constant 17 : i32
    %411 = tpu.dynamic_rotate %399 by %c17_i32_83 dim 1 : vector<8x384xf32>, i32 -> vector<8x384xf32>
    %412 = vector.extract_strided_slice %401 {offsets = [0, 2], sizes = [8, 1], strides = [1, 1]} : vector<8x9xf32> to vector<8x1xf32>
    %413 = vector.broadcast %412 : vector<8x1xf32> to vector<8x384xf32>
    %414 = arith.mulf %411, %413 : vector<8x384xf32>
    %415 = arith.addf %410, %414 : vector<8x384xf32>
    %c1_i32_84 = arith.constant 1 : i32
    %416 = tpu.dynamic_rotate %399 by %c1_i32_84 dim 1 : vector<8x384xf32>, i32 -> vector<8x384xf32>
    %417 = vector.extract_strided_slice %401 {offsets = [0, 3], sizes = [8, 1], strides = [1, 1]} : vector<8x9xf32> to vector<8x1xf32>
    %418 = vector.broadcast %417 : vector<8x1xf32> to vector<8x384xf32>
    %419 = arith.mulf %416, %418 : vector<8x384xf32>
    %420 = arith.addf %415, %419 : vector<8x384xf32>
    %421 = vector.extract_strided_slice %401 {offsets = [0, 4], sizes = [8, 1], strides = [1, 1]} : vector<8x9xf32> to vector<8x1xf32>
    %422 = vector.broadcast %421 : vector<8x1xf32> to vector<8x384xf32>
    %423 = arith.mulf %399, %422 : vector<8x384xf32>
    %424 = arith.addf %420, %423 : vector<8x384xf32>
    %c383_i32_85 = arith.constant 383 : i32
    %425 = tpu.dynamic_rotate %399 by %c383_i32_85 dim 1 : vector<8x384xf32>, i32 -> vector<8x384xf32>
    %426 = vector.extract_strided_slice %401 {offsets = [0, 5], sizes = [8, 1], strides = [1, 1]} : vector<8x9xf32> to vector<8x1xf32>
    %427 = vector.broadcast %426 : vector<8x1xf32> to vector<8x384xf32>
    %428 = arith.mulf %425, %427 : vector<8x384xf32>
    %429 = arith.addf %424, %428 : vector<8x384xf32>
    %c367_i32_86 = arith.constant 367 : i32
    %430 = tpu.dynamic_rotate %399 by %c367_i32_86 dim 1 : vector<8x384xf32>, i32 -> vector<8x384xf32>
    %431 = vector.extract_strided_slice %401 {offsets = [0, 6], sizes = [8, 1], strides = [1, 1]} : vector<8x9xf32> to vector<8x1xf32>
    %432 = vector.broadcast %431 : vector<8x1xf32> to vector<8x384xf32>
    %433 = arith.mulf %430, %432 : vector<8x384xf32>
    %434 = arith.addf %429, %433 : vector<8x384xf32>
    %c366_i32_87 = arith.constant 366 : i32
    %435 = tpu.dynamic_rotate %399 by %c366_i32_87 dim 1 : vector<8x384xf32>, i32 -> vector<8x384xf32>
    %436 = vector.extract_strided_slice %401 {offsets = [0, 7], sizes = [8, 1], strides = [1, 1]} : vector<8x9xf32> to vector<8x1xf32>
    %437 = vector.broadcast %436 : vector<8x1xf32> to vector<8x384xf32>
    %438 = arith.mulf %435, %437 : vector<8x384xf32>
    %439 = arith.addf %434, %438 : vector<8x384xf32>
    %c365_i32_88 = arith.constant 365 : i32
    %440 = tpu.dynamic_rotate %399 by %c365_i32_88 dim 1 : vector<8x384xf32>, i32 -> vector<8x384xf32>
    %441 = vector.extract_strided_slice %401 {offsets = [0, 8], sizes = [8, 1], strides = [1, 1]} : vector<8x9xf32> to vector<8x1xf32>
    %442 = vector.broadcast %441 : vector<8x1xf32> to vector<8x384xf32>
    %443 = arith.mulf %440, %442 : vector<8x384xf32>
    %444 = arith.addf %439, %443 : vector<8x384xf32>
    %445 = vector.extract_strided_slice %397 {offsets = [2, 0], sizes = [2, 384], strides = [1, 1]} : vector<8x384xf32> to vector<2x384xf32>
    %446 = tpu.concatenate %445, %445, %445, %445 in 0 : vector<2x384xf32>, vector<2x384xf32>, vector<2x384xf32>, vector<2x384xf32> -> vector<8x384xf32>
    %c9 = arith.constant 9 : index
    %c0_89 = arith.constant 0 : index
    %c0_90 = arith.constant 0 : index
    %447 = vector.load %arg1[%c9, %c0_89, %c0_90] : memref<12x8x9xf32, #tpu.memory_space<vmem>>, vector<1x8x9xf32>
    %448 = vector.shape_cast %447 : vector<1x8x9xf32> to vector<8x9xf32>
    %c19_i32_91 = arith.constant 19 : i32
    %449 = tpu.dynamic_rotate %446 by %c19_i32_91 dim 1 : vector<8x384xf32>, i32 -> vector<8x384xf32>
    %450 = vector.extract_strided_slice %448 {offsets = [0, 0], sizes = [8, 1], strides = [1, 1]} : vector<8x9xf32> to vector<8x1xf32>
    %451 = vector.broadcast %450 : vector<8x1xf32> to vector<8x384xf32>
    %452 = arith.mulf %449, %451 : vector<8x384xf32>
    %453 = arith.addf %444, %452 : vector<8x384xf32>
    %c18_i32_92 = arith.constant 18 : i32
    %454 = tpu.dynamic_rotate %446 by %c18_i32_92 dim 1 : vector<8x384xf32>, i32 -> vector<8x384xf32>
    %455 = vector.extract_strided_slice %448 {offsets = [0, 1], sizes = [8, 1], strides = [1, 1]} : vector<8x9xf32> to vector<8x1xf32>
    %456 = vector.broadcast %455 : vector<8x1xf32> to vector<8x384xf32>
    %457 = arith.mulf %454, %456 : vector<8x384xf32>
    %458 = arith.addf %453, %457 : vector<8x384xf32>
    %c17_i32_93 = arith.constant 17 : i32
    %459 = tpu.dynamic_rotate %446 by %c17_i32_93 dim 1 : vector<8x384xf32>, i32 -> vector<8x384xf32>
    %460 = vector.extract_strided_slice %448 {offsets = [0, 2], sizes = [8, 1], strides = [1, 1]} : vector<8x9xf32> to vector<8x1xf32>
    %461 = vector.broadcast %460 : vector<8x1xf32> to vector<8x384xf32>
    %462 = arith.mulf %459, %461 : vector<8x384xf32>
    %463 = arith.addf %458, %462 : vector<8x384xf32>
    %c1_i32_94 = arith.constant 1 : i32
    %464 = tpu.dynamic_rotate %446 by %c1_i32_94 dim 1 : vector<8x384xf32>, i32 -> vector<8x384xf32>
    %465 = vector.extract_strided_slice %448 {offsets = [0, 3], sizes = [8, 1], strides = [1, 1]} : vector<8x9xf32> to vector<8x1xf32>
    %466 = vector.broadcast %465 : vector<8x1xf32> to vector<8x384xf32>
    %467 = arith.mulf %464, %466 : vector<8x384xf32>
    %468 = arith.addf %463, %467 : vector<8x384xf32>
    %469 = vector.extract_strided_slice %448 {offsets = [0, 4], sizes = [8, 1], strides = [1, 1]} : vector<8x9xf32> to vector<8x1xf32>
    %470 = vector.broadcast %469 : vector<8x1xf32> to vector<8x384xf32>
    %471 = arith.mulf %446, %470 : vector<8x384xf32>
    %472 = arith.addf %468, %471 : vector<8x384xf32>
    %c383_i32_95 = arith.constant 383 : i32
    %473 = tpu.dynamic_rotate %446 by %c383_i32_95 dim 1 : vector<8x384xf32>, i32 -> vector<8x384xf32>
    %474 = vector.extract_strided_slice %448 {offsets = [0, 5], sizes = [8, 1], strides = [1, 1]} : vector<8x9xf32> to vector<8x1xf32>
    %475 = vector.broadcast %474 : vector<8x1xf32> to vector<8x384xf32>
    %476 = arith.mulf %473, %475 : vector<8x384xf32>
    %477 = arith.addf %472, %476 : vector<8x384xf32>
    %c367_i32_96 = arith.constant 367 : i32
    %478 = tpu.dynamic_rotate %446 by %c367_i32_96 dim 1 : vector<8x384xf32>, i32 -> vector<8x384xf32>
    %479 = vector.extract_strided_slice %448 {offsets = [0, 6], sizes = [8, 1], strides = [1, 1]} : vector<8x9xf32> to vector<8x1xf32>
    %480 = vector.broadcast %479 : vector<8x1xf32> to vector<8x384xf32>
    %481 = arith.mulf %478, %480 : vector<8x384xf32>
    %482 = arith.addf %477, %481 : vector<8x384xf32>
    %c366_i32_97 = arith.constant 366 : i32
    %483 = tpu.dynamic_rotate %446 by %c366_i32_97 dim 1 : vector<8x384xf32>, i32 -> vector<8x384xf32>
    %484 = vector.extract_strided_slice %448 {offsets = [0, 7], sizes = [8, 1], strides = [1, 1]} : vector<8x9xf32> to vector<8x1xf32>
    %485 = vector.broadcast %484 : vector<8x1xf32> to vector<8x384xf32>
    %486 = arith.mulf %483, %485 : vector<8x384xf32>
    %487 = arith.addf %482, %486 : vector<8x384xf32>
    %c365_i32_98 = arith.constant 365 : i32
    %488 = tpu.dynamic_rotate %446 by %c365_i32_98 dim 1 : vector<8x384xf32>, i32 -> vector<8x384xf32>
    %489 = vector.extract_strided_slice %448 {offsets = [0, 8], sizes = [8, 1], strides = [1, 1]} : vector<8x9xf32> to vector<8x1xf32>
    %490 = vector.broadcast %489 : vector<8x1xf32> to vector<8x384xf32>
    %491 = arith.mulf %488, %490 : vector<8x384xf32>
    %492 = arith.addf %487, %491 : vector<8x384xf32>
    %493 = vector.extract_strided_slice %397 {offsets = [4, 0], sizes = [2, 384], strides = [1, 1]} : vector<8x384xf32> to vector<2x384xf32>
    %494 = tpu.concatenate %493, %493, %493, %493 in 0 : vector<2x384xf32>, vector<2x384xf32>, vector<2x384xf32>, vector<2x384xf32> -> vector<8x384xf32>
    %c10 = arith.constant 10 : index
    %c0_99 = arith.constant 0 : index
    %c0_100 = arith.constant 0 : index
    %495 = vector.load %arg1[%c10, %c0_99, %c0_100] : memref<12x8x9xf32, #tpu.memory_space<vmem>>, vector<1x8x9xf32>
    %496 = vector.shape_cast %495 : vector<1x8x9xf32> to vector<8x9xf32>
    %c19_i32_101 = arith.constant 19 : i32
    %497 = tpu.dynamic_rotate %494 by %c19_i32_101 dim 1 : vector<8x384xf32>, i32 -> vector<8x384xf32>
    %498 = vector.extract_strided_slice %496 {offsets = [0, 0], sizes = [8, 1], strides = [1, 1]} : vector<8x9xf32> to vector<8x1xf32>
    %499 = vector.broadcast %498 : vector<8x1xf32> to vector<8x384xf32>
    %500 = arith.mulf %497, %499 : vector<8x384xf32>
    %501 = arith.addf %492, %500 : vector<8x384xf32>
    %c18_i32_102 = arith.constant 18 : i32
    %502 = tpu.dynamic_rotate %494 by %c18_i32_102 dim 1 : vector<8x384xf32>, i32 -> vector<8x384xf32>
    %503 = vector.extract_strided_slice %496 {offsets = [0, 1], sizes = [8, 1], strides = [1, 1]} : vector<8x9xf32> to vector<8x1xf32>
    %504 = vector.broadcast %503 : vector<8x1xf32> to vector<8x384xf32>
    %505 = arith.mulf %502, %504 : vector<8x384xf32>
    %506 = arith.addf %501, %505 : vector<8x384xf32>
    %c17_i32_103 = arith.constant 17 : i32
    %507 = tpu.dynamic_rotate %494 by %c17_i32_103 dim 1 : vector<8x384xf32>, i32 -> vector<8x384xf32>
    %508 = vector.extract_strided_slice %496 {offsets = [0, 2], sizes = [8, 1], strides = [1, 1]} : vector<8x9xf32> to vector<8x1xf32>
    %509 = vector.broadcast %508 : vector<8x1xf32> to vector<8x384xf32>
    %510 = arith.mulf %507, %509 : vector<8x384xf32>
    %511 = arith.addf %506, %510 : vector<8x384xf32>
    %c1_i32_104 = arith.constant 1 : i32
    %512 = tpu.dynamic_rotate %494 by %c1_i32_104 dim 1 : vector<8x384xf32>, i32 -> vector<8x384xf32>
    %513 = vector.extract_strided_slice %496 {offsets = [0, 3], sizes = [8, 1], strides = [1, 1]} : vector<8x9xf32> to vector<8x1xf32>
    %514 = vector.broadcast %513 : vector<8x1xf32> to vector<8x384xf32>
    %515 = arith.mulf %512, %514 : vector<8x384xf32>
    %516 = arith.addf %511, %515 : vector<8x384xf32>
    %517 = vector.extract_strided_slice %496 {offsets = [0, 4], sizes = [8, 1], strides = [1, 1]} : vector<8x9xf32> to vector<8x1xf32>
    %518 = vector.broadcast %517 : vector<8x1xf32> to vector<8x384xf32>
    %519 = arith.mulf %494, %518 : vector<8x384xf32>
    %520 = arith.addf %516, %519 : vector<8x384xf32>
    %c383_i32_105 = arith.constant 383 : i32
    %521 = tpu.dynamic_rotate %494 by %c383_i32_105 dim 1 : vector<8x384xf32>, i32 -> vector<8x384xf32>
    %522 = vector.extract_strided_slice %496 {offsets = [0, 5], sizes = [8, 1], strides = [1, 1]} : vector<8x9xf32> to vector<8x1xf32>
    %523 = vector.broadcast %522 : vector<8x1xf32> to vector<8x384xf32>
    %524 = arith.mulf %521, %523 : vector<8x384xf32>
    %525 = arith.addf %520, %524 : vector<8x384xf32>
    %c367_i32_106 = arith.constant 367 : i32
    %526 = tpu.dynamic_rotate %494 by %c367_i32_106 dim 1 : vector<8x384xf32>, i32 -> vector<8x384xf32>
    %527 = vector.extract_strided_slice %496 {offsets = [0, 6], sizes = [8, 1], strides = [1, 1]} : vector<8x9xf32> to vector<8x1xf32>
    %528 = vector.broadcast %527 : vector<8x1xf32> to vector<8x384xf32>
    %529 = arith.mulf %526, %528 : vector<8x384xf32>
    %530 = arith.addf %525, %529 : vector<8x384xf32>
    %c366_i32_107 = arith.constant 366 : i32
    %531 = tpu.dynamic_rotate %494 by %c366_i32_107 dim 1 : vector<8x384xf32>, i32 -> vector<8x384xf32>
    %532 = vector.extract_strided_slice %496 {offsets = [0, 7], sizes = [8, 1], strides = [1, 1]} : vector<8x9xf32> to vector<8x1xf32>
    %533 = vector.broadcast %532 : vector<8x1xf32> to vector<8x384xf32>
    %534 = arith.mulf %531, %533 : vector<8x384xf32>
    %535 = arith.addf %530, %534 : vector<8x384xf32>
    %c365_i32_108 = arith.constant 365 : i32
    %536 = tpu.dynamic_rotate %494 by %c365_i32_108 dim 1 : vector<8x384xf32>, i32 -> vector<8x384xf32>
    %537 = vector.extract_strided_slice %496 {offsets = [0, 8], sizes = [8, 1], strides = [1, 1]} : vector<8x9xf32> to vector<8x1xf32>
    %538 = vector.broadcast %537 : vector<8x1xf32> to vector<8x384xf32>
    %539 = arith.mulf %536, %538 : vector<8x384xf32>
    %540 = arith.addf %535, %539 : vector<8x384xf32>
    %541 = vector.extract_strided_slice %397 {offsets = [6, 0], sizes = [2, 384], strides = [1, 1]} : vector<8x384xf32> to vector<2x384xf32>
    %542 = tpu.concatenate %541, %541, %541, %541 in 0 : vector<2x384xf32>, vector<2x384xf32>, vector<2x384xf32>, vector<2x384xf32> -> vector<8x384xf32>
    %c11 = arith.constant 11 : index
    %c0_109 = arith.constant 0 : index
    %c0_110 = arith.constant 0 : index
    %543 = vector.load %arg1[%c11, %c0_109, %c0_110] : memref<12x8x9xf32, #tpu.memory_space<vmem>>, vector<1x8x9xf32>
    %544 = vector.shape_cast %543 : vector<1x8x9xf32> to vector<8x9xf32>
    %c19_i32_111 = arith.constant 19 : i32
    %545 = tpu.dynamic_rotate %542 by %c19_i32_111 dim 1 : vector<8x384xf32>, i32 -> vector<8x384xf32>
    %546 = vector.extract_strided_slice %544 {offsets = [0, 0], sizes = [8, 1], strides = [1, 1]} : vector<8x9xf32> to vector<8x1xf32>
    %547 = vector.broadcast %546 : vector<8x1xf32> to vector<8x384xf32>
    %548 = arith.mulf %545, %547 : vector<8x384xf32>
    %549 = arith.addf %540, %548 : vector<8x384xf32>
    %c18_i32_112 = arith.constant 18 : i32
    %550 = tpu.dynamic_rotate %542 by %c18_i32_112 dim 1 : vector<8x384xf32>, i32 -> vector<8x384xf32>
    %551 = vector.extract_strided_slice %544 {offsets = [0, 1], sizes = [8, 1], strides = [1, 1]} : vector<8x9xf32> to vector<8x1xf32>
    %552 = vector.broadcast %551 : vector<8x1xf32> to vector<8x384xf32>
    %553 = arith.mulf %550, %552 : vector<8x384xf32>
    %554 = arith.addf %549, %553 : vector<8x384xf32>
    %c17_i32_113 = arith.constant 17 : i32
    %555 = tpu.dynamic_rotate %542 by %c17_i32_113 dim 1 : vector<8x384xf32>, i32 -> vector<8x384xf32>
    %556 = vector.extract_strided_slice %544 {offsets = [0, 2], sizes = [8, 1], strides = [1, 1]} : vector<8x9xf32> to vector<8x1xf32>
    %557 = vector.broadcast %556 : vector<8x1xf32> to vector<8x384xf32>
    %558 = arith.mulf %555, %557 : vector<8x384xf32>
    %559 = arith.addf %554, %558 : vector<8x384xf32>
    %c1_i32_114 = arith.constant 1 : i32
    %560 = tpu.dynamic_rotate %542 by %c1_i32_114 dim 1 : vector<8x384xf32>, i32 -> vector<8x384xf32>
    %561 = vector.extract_strided_slice %544 {offsets = [0, 3], sizes = [8, 1], strides = [1, 1]} : vector<8x9xf32> to vector<8x1xf32>
    %562 = vector.broadcast %561 : vector<8x1xf32> to vector<8x384xf32>
    %563 = arith.mulf %560, %562 : vector<8x384xf32>
    %564 = arith.addf %559, %563 : vector<8x384xf32>
    %565 = vector.extract_strided_slice %544 {offsets = [0, 4], sizes = [8, 1], strides = [1, 1]} : vector<8x9xf32> to vector<8x1xf32>
    %566 = vector.broadcast %565 : vector<8x1xf32> to vector<8x384xf32>
    %567 = arith.mulf %542, %566 : vector<8x384xf32>
    %568 = arith.addf %564, %567 : vector<8x384xf32>
    %c383_i32_115 = arith.constant 383 : i32
    %569 = tpu.dynamic_rotate %542 by %c383_i32_115 dim 1 : vector<8x384xf32>, i32 -> vector<8x384xf32>
    %570 = vector.extract_strided_slice %544 {offsets = [0, 5], sizes = [8, 1], strides = [1, 1]} : vector<8x9xf32> to vector<8x1xf32>
    %571 = vector.broadcast %570 : vector<8x1xf32> to vector<8x384xf32>
    %572 = arith.mulf %569, %571 : vector<8x384xf32>
    %573 = arith.addf %568, %572 : vector<8x384xf32>
    %c367_i32_116 = arith.constant 367 : i32
    %574 = tpu.dynamic_rotate %542 by %c367_i32_116 dim 1 : vector<8x384xf32>, i32 -> vector<8x384xf32>
    %575 = vector.extract_strided_slice %544 {offsets = [0, 6], sizes = [8, 1], strides = [1, 1]} : vector<8x9xf32> to vector<8x1xf32>
    %576 = vector.broadcast %575 : vector<8x1xf32> to vector<8x384xf32>
    %577 = arith.mulf %574, %576 : vector<8x384xf32>
    %578 = arith.addf %573, %577 : vector<8x384xf32>
    %c366_i32_117 = arith.constant 366 : i32
    %579 = tpu.dynamic_rotate %542 by %c366_i32_117 dim 1 : vector<8x384xf32>, i32 -> vector<8x384xf32>
    %580 = vector.extract_strided_slice %544 {offsets = [0, 7], sizes = [8, 1], strides = [1, 1]} : vector<8x9xf32> to vector<8x1xf32>
    %581 = vector.broadcast %580 : vector<8x1xf32> to vector<8x384xf32>
    %582 = arith.mulf %579, %581 : vector<8x384xf32>
    %583 = arith.addf %578, %582 : vector<8x384xf32>
    %c365_i32_118 = arith.constant 365 : i32
    %584 = tpu.dynamic_rotate %542 by %c365_i32_118 dim 1 : vector<8x384xf32>, i32 -> vector<8x384xf32>
    %585 = vector.extract_strided_slice %544 {offsets = [0, 8], sizes = [8, 1], strides = [1, 1]} : vector<8x9xf32> to vector<8x1xf32>
    %586 = vector.broadcast %585 : vector<8x1xf32> to vector<8x384xf32>
    %587 = arith.mulf %584, %586 : vector<8x384xf32>
    %588 = arith.addf %583, %587 : vector<8x384xf32>
    %cst_119 = arith.constant 0.000000e+00 : f32
    %589 = vector.broadcast %cst_119 : f32 to vector<8x384xf32>
    %590 = arith.cmpf oge, %588, %589 : vector<8x384xf32>
    %cst_120 = arith.constant 2.000000e-01 : f32
    %591 = vector.broadcast %cst_120 : f32 to vector<8x384xf32>
    %592 = arith.mulf %591, %588 : vector<8x384xf32>
    %593 = arith.select %590, %588, %592 : vector<8x384xi1>, vector<8x384xf32>
    %c0_121 = arith.constant 0 : index
    %c0_122 = arith.constant 0 : index
    %594 = vector.load %arg3[%c0_121, %c0_122] : memref<8x384xf32, #tpu.memory_space<vmem>>, vector<8x384xf32>
    tpu.vector_store %arg3[%c0_121, %c0_122], %593 {strides = array<i32>} : memref<8x384xf32, #tpu.memory_space<vmem>>, vector<8x384xf32>,
    return
  }
}

</mosaic_0001>

<bundles_post_ra>
// kernel: random_kernel_gin.1
= control target key start
LH: loop header
LB: loop body
LE: loop exit
PB: predicated region body
PF: predicated region fallthrough
CT: control target
= control target key end

     0   :  { %vm39_vm0 = vcmask 1041408   ;;  %v5473_v0 = vmov 0   ;;  %vm43_vm1 = vcmask 1043456   ;;  %vm47_vm2 = vcmask 1045504   ;;  %s2357_s20 = smov 18   ;;  %s2358_s21 = smov 17   ;;  %s5461_s1 = inlined_call_operand.vmem [shape: f32[12,8,9], index: 1, kind: input, shape index: {}]   ;;  %s5462_s0 = inlined_call_operand.vmem [shape: f32[8,384], index: 0, kind: input, shape index: {}]   ;;  %s5463_s2 = inlined_call_operand.vmem [shape: f32[1,384], index: 2, kind: input, shape index: {}]   ;;  %s5464_s3 = inlined_call_operand.vmem [shape: f32[8,384], index: 3, kind: output, shape index: {}]  }
   0x1   :  { %2256 = vset.pattern.permute.xlu1 %v5473_v0  ;;  %v2394_v1 = vld [vmem:[%s5461_s1] sm:$0xff]  ;;  %v2399_v2 = vld [vmem:[%s5462_s0 + $0x10] sm:$0xff]  ;;  %v2422_v8 = vld [vmem:[%s5462_s0 + $0x8] sm:$0xff]  ;;  %v5481_v22 = vmov 1   ;;  %v5465_v23 = vmov 5   ;;  %v5477_v34 = vmov 2  }
   0x2   :  { %v2404_v3 = vld [vmem:[%s5462_s0] sm:$0xff]  ;;  %66 = vperm.xlu1 %2256, %v2394_v1   ;;  %v2408_v4 = vrot.slane %v2399_v2, 6  ;;  %v2411_v5 = vrot.slane %v2399_v2, 4  ;;  %v2414_v6 = vrot.slane %v2399_v2, 2  ;;  %v2431_v11 = vrot.slane %v2422_v8, 6  ;;  %2268 = vset.pattern.permute.xlu0 %v5465_v23  ;;  %s2356_s0 = smov 19  }
   0x3   :  { %v2417_v7 = vrot.slane %v2404_v3, 6  ;;  %v2425_v9 = vrot.slane %v2404_v3, 4  ;;  %v2428_v10 = vrot.slane %v2404_v3, 2  ;;  %v2434_v12 = vrot.slane %v2422_v8, 4  ;;  %s2360_s22 = smov 1   ;;  %s2362_s23 = smov 127  }
   0x4   :  { %v42_v13 = vsel %vm39_vm0, %v2399_v2, %v2408_v4  ;;  %v2443_v15 = vrot.slane %v2422_v8, 2  ;;  %v41_v18 = vsel %vm39_vm0, %v2422_v8, %v2431_v11  ;;  %v224_v25 = vsel %vm39_vm0, %v2414_v6, %v2399_v2  ;;  %s2363_s24 = smov 111   ;;  %s2365_s25 = smov 110   ;;  %v2602_v51 = vld [vmem:[%s5461_s1 + $0x8] sm:$0xff]  ;;  %v2699_v63 = vld [vmem:[%s5461_s1 + $0x10] sm:$0xff] }
   0x5   :  { %v40_v14 = vsel %vm39_vm0, %v2404_v3, %v2417_v7  ;;  %v46_v16 = vsel %vm43_vm1, %v42_v13, %v2411_v5  ;;  %v45_v21 = vsel %vm43_vm1, %v41_v18, %v2434_v12  ;;  %v227_v26 = vsel %vm43_vm1, %v224_v25, %v2408_v4  ;;  %s2367_s26 = smov 109  }
   0x6   :  { %v44_v17 = vsel %vm43_vm1, %v40_v14, %v2425_v9  ;;  %v2454_v19 = vsel %vm47_vm2, %v46_v16, %v2414_v6  ;;  %2257 = vset.pattern.permute.xlu1 %v5481_v22  ;;  %v2470_v24 = vsel %vm47_vm2, %v45_v21, %v2443_v15  ;;  %v396_v27 = vsel %vm39_vm0, %v2425_v9, %v2428_v10 }
   0x7   :  { %v2458_v20 = vsel %vm47_vm2, %v44_v17, %v2428_v10  ;;  %56 = vrot.lane.b32.xlu1 %v2454_v19, %s2356_s0  ;;  %v2482_v28 = vsel %vm47_vm2, %v227_v26, %v2411_v5  ;;  %v399_v29 = vsel %vm43_vm1, %v396_v27, %v2404_v3  ;;  %v398_v31 = vsel %vm39_vm0, %v2411_v5, %v2414_v6 }
   0x8   :  { %52 = vrot.lane.b32.xlu0 %v2458_v20, %s2356_s0  ;;  %5620 = vst [vmem:[#allocation2_spill] sm:$0xff] %v2482_v28  ;;  %v2492_v30 = vsel %vm47_vm2, %v399_v29, %v2417_v7  ;;  %v401_v32 = vsel %vm43_vm1, %v398_v31, %v2399_v2  ;;  %v5475_v35 = vmov 3   ;;  %v5469_v36 = vmov 6  }
   0x9   :  { %5621 = vst [vmem:[#allocation3_spill] sm:$0xff] %v2492_v30  ;;  %v2501_v33 = vsel %vm47_vm2, %v401_v32, %v2408_v4  ;;  %v5467_v37 = vmov 7   ;;  %v570_v38 = vsel %vm39_vm0, %v2417_v7, %v2425_v9  ;;  %v222_v40 = vsel %vm39_vm0, %v2428_v10, %v2404_v3 }
   0xa   :  { %5622 = vst [vmem:[#allocation4_spill] sm:$0xff] %v2501_v33  ;;  %v573_v39 = vsel %vm43_vm1, %v570_v38, %v2428_v10  ;;  %v572_v42 = vsel %vm39_vm0, %v2408_v4, %v2411_v5  ;;  %v225_v43 = vsel %vm43_vm1, %v222_v40, %v2417_v7  ;;  %v223_v45 = vsel %vm39_vm0, %v2443_v15, %v2422_v8 }
   0xb   :  { %74 = vrot.lane.b32.xlu1 %v2470_v24, %s2357_s20  ;;  %v2557_v41 = vsel %vm47_vm2, %v573_v39, %v2404_v3  ;;  %v575_v44 = vsel %vm43_vm1, %v572_v42, %v2414_v6  ;;  %v5471_v47 = vmov 8   ;;  %v2583_v48 = vsel %vm47_vm2, %v225_v43, %v2425_v9 }
   0xc   :  { %54 = vrot.lane.b32.xlu0 %v2470_v24, %s2356_s0  ;;  %5623 = vst [vmem:[#allocation5_spill] sm:$0xff] %v2557_v41  ;;  %v2574_v46 = vsel %vm47_vm2, %v575_v44, %v2399_v2  ;;  %5625 = vst [vmem:[#allocation7_spill] sm:$0xff] %v2583_v48  ;;  %v226_v49 = vsel %vm43_vm1, %v223_v45, %v2431_v11  ;;  %v397_v56 = vsel %vm39_vm0, %v2434_v12, %v2443_v15 }
   0xd   :  { %5624 = vst [vmem:[#allocation6_spill] sm:$0xff] %v2574_v46  ;;  %v2592_v50 = vsel %vm47_vm2, %v226_v49, %v2434_v12  ;;  %v400_v59 = vsel %vm43_vm1, %v397_v56, %v2422_v8 }
   0xe   :  { %5626 = vst [vmem:[#allocation8_spill] sm:$0xff] %v2592_v50  ;;  %v2685_v60 = vsel %vm47_vm2, %v400_v59, %v2431_v11  ;;  %v571_v59 = vsel %vm39_vm0, %v2431_v11, %v2434_v12 }
   0xf   :  { %83 = vperm.xlu1 %2257, %v2394_v1   ;;  %5627 = vst [vmem:[#allocation9_spill] sm:$0xff] %v2685_v60 }
  0x10   :  { %72 = vrot.lane.b32.xlu0 %v2458_v20, %s2357_s20 }
  0x13   :  { %94 = vrot.lane.b32.xlu1 %v2470_v24, %s2358_s21 }
  0x14   :  { %76 = vrot.lane.b32.xlu0 %v2454_v19, %s2357_s20  ;;  %2258 = vset.pattern.permute.xlu1 %v5477_v34 }
  0x17   :  { %103 = vperm.xlu1 %2258, %v2394_v1  }
  0x18   :  { %92 = vrot.lane.b32.xlu0 %v2458_v20, %s2358_s21 }
  0x1b   :  { %114 = vrot.lane.b32.xlu1 %v2470_v24, %s2360_s22 }
  0x1c   :  { %96 = vrot.lane.b32.xlu0 %v2454_v19, %s2358_s21  ;;  %2259 = vset.pattern.permute.xlu1 %v5475_v35 }
  0x1f   :  { %123 = vperm.xlu1 %2259, %v2394_v1  }
  0x20   :  { %112 = vrot.lane.b32.xlu0 %v2458_v20, %s2360_s22 }
  0x23   :  { %142 = vrot.lane.b32.xlu1 %v2458_v20, %s2362_s23 }
  0x24   :  { %116 = vrot.lane.b32.xlu0 %v2454_v19, %s2360_s22  ;;  %2260 = vset.pattern.permute.xlu1 %v5465_v23 }
  0x27   :  { %144 = vrot.lane.b32.xlu1 %v2470_v24, %s2362_s23 }
  0x28   :  { %146 = vrot.lane.b32.xlu0 %v2454_v19, %s2362_s23 }
  0x2b   :  { %153 = vperm.xlu1 %2260, %v2394_v1  }
  0x2c   :  { %162 = vrot.lane.b32.xlu0 %v2458_v20, %s2363_s24 }
  0x2f   :  { %164 = vrot.lane.b32.xlu1 %v2470_v24, %s2363_s24 }
  0x30   :  { %166 = vrot.lane.b32.xlu0 %v2454_v19, %s2363_s24  ;;  %2261 = vset.pattern.permute.xlu1 %v5469_v36 }
  0x33   :  { %173 = vperm.xlu1 %2261, %v2394_v1  }
  0x34   :  { %182 = vrot.lane.b32.xlu0 %v2458_v20, %s2365_s25 }
  0x37   :  { %184 = vrot.lane.b32.xlu1 %v2470_v24, %s2365_s25 }
  0x38   :  { %186 = vrot.lane.b32.xlu0 %v2454_v19, %s2365_s25  ;;  %2262 = vset.pattern.permute.xlu1 %v5467_v37 }
  0x3b   :  { %193 = vperm.xlu1 %2262, %v2394_v1  }
  0x3c   :  { %202 = vrot.lane.b32.xlu0 %v2458_v20, %s2367_s26 }
  0x3f   :  { %204 = vrot.lane.b32.xlu1 %v2470_v24, %s2367_s26 }
  0x40   :  { %206 = vrot.lane.b32.xlu0 %v2454_v19, %s2367_s26  ;;  %2263 = vset.pattern.permute.xlu1 %v5471_v47 }
  0x43   :  { %213 = vperm.xlu1 %2263, %v2394_v1  }
  0x44   :  { %233 = vrot.lane.b32.xlu0 %v2583_v48, %s2356_s0 }
  0x47   :  { %235 = vrot.lane.b32.xlu1 %v2592_v50, %s2356_s0 }
  0x48   :  { %237 = vrot.lane.b32.xlu0 %v2482_v28, %s2356_s0  ;;  %2264 = vset.pattern.permute.xlu1 %v5473_v0 }
  0x4b   :  { %244 = vperm.xlu1 %2264, %v2602_v51  }
  0x4c   :  { %253 = vrot.lane.b32.xlu0 %v2583_v48, %s2357_s20 }
  0x4f   :  { %255 = vrot.lane.b32.xlu1 %v2592_v50, %s2357_s20 }
  0x50   :  { %257 = vrot.lane.b32.xlu0 %v2482_v28, %s2357_s20  ;;  %2265 = vset.pattern.permute.xlu1 %v5481_v22 }
  0x53   :  { %263 = vperm.xlu1 %2265, %v2602_v51  }
  0x54   :  { %272 = vrot.lane.b32.xlu0 %v2583_v48, %s2358_s21 }
  0x57   :  { %274 = vrot.lane.b32.xlu1 %v2592_v50, %s2358_s21 }
  0x58   :  { %276 = vrot.lane.b32.xlu0 %v2482_v28, %s2358_s21  ;;  %2266 = vset.pattern.permute.xlu1 %v5477_v34 }
  0x5b   :  { %282 = vperm.xlu1 %2266, %v2602_v51  }
  0x5c   :  { %291 = vrot.lane.b32.xlu0 %v2583_v48, %s2360_s22 }
  0x5f   :  { %293 = vrot.lane.b32.xlu1 %v2592_v50, %s2360_s22 }
  0x60   :  { %295 = vrot.lane.b32.xlu0 %v2482_v28, %s2360_s22  ;;  %2267 = vset.pattern.permute.xlu1 %v5475_v35 }
  0x63   :  { %301 = vperm.xlu1 %2267, %v2602_v51  }
  0x64   :  { %322 = vrot.lane.b32.xlu0 %v2592_v50, %s2362_s23 }
  0x67   :  { %320 = vrot.lane.b32.xlu1 %v2583_v48, %s2362_s23 }
  0x68   :  { %330 = vperm.xlu0 %2268, %v2602_v51   ;;  %2269 = vset.pattern.permute.xlu1 %v5469_v36 }
  0x6b   :  { %324 = vrot.lane.b32.xlu1 %v2482_v28, %s2362_s23 }
  0x6c   :  { %343 = vrot.lane.b32.xlu0 %v2482_v28, %s2363_s24 }
  0x6f   :  { %339 = vrot.lane.b32.xlu1 %v2583_v48, %s2363_s24 }
  0x70   :  { %358 = vrot.lane.b32.xlu0 %v2583_v48, %s2365_s25 }
  0x73   :  { %341 = vrot.lane.b32.xlu1 %v2592_v50, %s2363_s24 }
  0x74   :  { %362 = vrot.lane.b32.xlu0 %v2482_v28, %s2365_s25 }
  0x77   :  { %349 = vperm.xlu1 %2269, %v2602_v51  }
  0x78   :  { %377 = vrot.lane.b32.xlu0 %v2583_v48, %s2367_s26 }
  0x7a   :  { %v2650_v52 = vpop.permute.xlu0 %52 }
  0x7b   :  { %360 = vrot.lane.b32.xlu1 %v2592_v50, %s2365_s25 }
  0x7c   :  { %381 = vrot.lane.b32.xlu0 %v2482_v28, %s2367_s26  ;;  %2270 = vset.pattern.permute.xlu1 %v5467_v37 }
  0x7e   :  { %v2657_v53 = vpop.permute.xlu0 %54 }
  0x7f   :  { %368 = vperm.xlu1 %2270, %v2602_v51  }
  0x80   :  { %407 = vrot.lane.b32.xlu0 %v2492_v30, %s2356_s0 }
  0x81   :  { %v2662_v54 = vpop.permute.xlu1 %66 }
  0x82   :  { %v2664_v55 = vpop.permute.xlu0 %72 }
  0x83   :  { %379 = vrot.lane.b32.xlu1 %v2592_v50, %s2367_s26 }
  0x84   :  { %411 = vrot.lane.b32.xlu0 %v2501_v33, %s2356_s0  ;;  %2271 = vset.pattern.permute.xlu1 %v5471_v47 }
  0x85   :  { %v2674_v57 = vpop.permute.xlu1 %56 }
  0x86   :  { %v2676_v58 = vpop.permute.xlu0 %76 }
  0x87   :  { %387 = vperm.xlu1 %2271, %v2602_v51  }
  0x88   :  { %427 = vrot.lane.b32.xlu0 %v2492_v30, %s2357_s20 }
  0x89   :  { %v2687_v61 = vpop.permute.xlu1 %74 }
  0x8a   :  { %v2689_v62 = vpop.permute.xlu0 %92 }
  0x8b   :  { %409 = vrot.lane.b32.xlu1 %v2685_v60, %s2356_s0 }
  0x8c   :  { %431 = vrot.lane.b32.xlu0 %v2501_v33, %s2357_s20  ;;  %2272 = vset.pattern.permute.xlu1 %v5473_v0 }
  0x8e   :  { %v2701_v2 = vpop.permute.xlu0 %96  ;;  %v2703_v3 = vpop.permute.xlu1 %83 }
  0x8f   :  { %418 = vperm.xlu1 %2272, %v2699_v63  }
  0x90   :  { %446 = vrot.lane.b32.xlu0 %v2492_v30, %s2358_s21 }
  0x92   :  { %v2708_v4 = vpop.permute.xlu0 %112  ;;  %v2710_v5 = vpop.permute.xlu1 %94 }
  0x93   :  { %429 = vrot.lane.b32.xlu1 %v2685_v60, %s2357_s20 }
  0x94   :  { %450 = vrot.lane.b32.xlu0 %v2501_v33, %s2358_s21  ;;  %2273 = vset.pattern.permute.xlu1 %v5481_v22 }
  0x96   :  { %v2717_v6 = vpop.permute.xlu0 %116  ;;  %v2719_v7 = vpop.permute.xlu1 %103 }
  0x97   :  { %437 = vperm.xlu1 %2273, %v2699_v63  }
  0x98   :  { %465 = vrot.lane.b32.xlu0 %v2492_v30, %s2360_s22 }
  0x9a   :  { %v2724_v9 = vpop.permute.xlu0 %146  ;;  %v2726_v10 = vpop.permute.xlu1 %114 }
  0x9b   :  { %448 = vrot.lane.b32.xlu1 %v2685_v60, %s2358_s21 }
  0x9c   :  { %469 = vrot.lane.b32.xlu0 %v2501_v33, %s2360_s22  ;;  %2274 = vset.pattern.permute.xlu1 %v5477_v34 }
  0x9e   :  { %v2733_v13 = vpop.permute.xlu0 %162  ;;  %v2735_v14 = vpop.permute.xlu1 %123 }
  0x9f   :  { %456 = vperm.xlu1 %2274, %v2699_v63  }
  0xa0   :  { %498 = vrot.lane.b32.xlu0 %v2501_v33, %s2362_s23 }
  0xa2   :  { %v2740_v16 = vpop.permute.xlu0 %166  ;;  %v2742_v17 = vpop.permute.xlu1 %142 }
  0xa3   :  { %467 = vrot.lane.b32.xlu1 %v2685_v60, %s2360_s22 }
  0xa4   :  { %513 = vrot.lane.b32.xlu0 %v2492_v30, %s2363_s24  ;;  %2275 = vset.pattern.permute.xlu1 %v5475_v35 }
  0xa6   :  { %v2749_v18 = vpop.permute.xlu0 %182  ;;  %v2751_v21 = vpop.permute.xlu1 %144 }
  0xa7   :  { %475 = vperm.xlu1 %2275, %v2699_v63  }
  0xa8   :  { %517 = vrot.lane.b32.xlu0 %v2501_v33, %s2363_s24 }
  0xaa   :  { %v2756_v25 = vpop.permute.xlu0 %186  ;;  %v2758_v26 = vpop.permute.xlu1 %153 }
  0xab   :  { %494 = vrot.lane.b32.xlu1 %v2492_v30, %s2362_s23 }
  0xac   :  { %532 = vrot.lane.b32.xlu0 %v2492_v30, %s2365_s25  ;;  %2276 = vset.pattern.permute.xlu1 %v5465_v23  ;;  %v574_v23 = vsel %vm43_vm1, %v571_v59, %v2443_v15  ;;  %v2847_v59 = vld [vmem:[%s5461_s1 + $0x18] sm:$0xff] }
  0xad   :  { %v2833_v11 = vsel %vm47_vm2, %v574_v23, %v2422_v8 }
  0xae   :  { %v2765_v27 = vpop.permute.xlu0 %202  ;;  %v2767_v29 = vpop.permute.xlu1 %164  ;;  %5628 = vst [vmem:[#allocation10_spill] sm:$0xff] %v2833_v11 }
  0xaf   :  { %496 = vrot.lane.b32.xlu1 %v2685_v60, %s2362_s23 }
  0xb0   :  { %536 = vrot.lane.b32.xlu0 %v2501_v33, %s2365_s25 }
  0xb2   :  { %v2773_v31 = vpop.permute.xlu0 %206  ;;  %v2775_v32 = vpop.permute.xlu1 %173 }
  0xb3   :  { %504 = vperm.xlu1 %2276, %v2699_v63  }
  0xb4   :  { %551 = vrot.lane.b32.xlu0 %v2492_v30, %s2367_s26  ;;  %v5488_v30 = vmov 4  }
  0xb6   :  { %v2780_v38 = vpop.permute.xlu0 %233  ;;  %v2782_v39 = vpop.permute.xlu1 %184 }
  0xb7   :  { %515 = vrot.lane.b32.xlu1 %v2685_v60, %s2363_s24 }
  0xb8   :  { %555 = vrot.lane.b32.xlu0 %v2501_v33, %s2367_s26  ;;  %2277 = vset.pattern.permute.xlu1 %v5469_v36  ;;  %v5629_v33 = vmov 2  }
  0xba   :  { %v2789_v40 = vpop.permute.xlu0 %237  ;;  %v2791_v42 = vpop.permute.xlu1 %193 }
  0xbb   :  { %523 = vperm.xlu1 %2277, %v2699_v63  }
  0xbc   :  { %581 = vrot.lane.b32.xlu0 %v2557_v41, %s2356_s0 }
  0xbe   :  { %v2796_v43 = vpop.permute.xlu0 %253  ;;  %v2798_v44 = vpop.permute.xlu1 %204 }
  0xbf   :  { %534 = vrot.lane.b32.xlu1 %v2685_v60, %s2365_s25 }
  0xc0   :  { %585 = vrot.lane.b32.xlu0 %v2574_v46, %s2356_s0  ;;  %2278 = vset.pattern.permute.xlu1 %v5467_v37 }
  0xc2   :  { %v2805_v45 = vpop.permute.xlu1 %213  ;;  %v2810_v49 = vpop.permute.xlu0 %257 }
  0xc3   :  { %542 = vperm.xlu1 %2278, %v2699_v63  }
  0xc4   :  { %601 = vrot.lane.b32.xlu0 %v2557_v41, %s2357_s20 }
  0xc6   :  { %v2812_v56 = vpop.permute.xlu1 %235  ;;  %v2824_v37 = vpop.permute.xlu0 %272 }
  0xc7   :  { %553 = vrot.lane.b32.xlu1 %v2685_v60, %s2367_s26 }
  0xc8   :  { %605 = vrot.lane.b32.xlu0 %v2574_v46, %s2357_s20  ;;  %2279 = vset.pattern.permute.xlu1 %v5471_v47 }
  0xca   :  { %v2826_v36 = vpop.permute.xlu1 %244  ;;  %v2841_v15 = vpop.permute.xlu0 %276 }
  0xcb   :  { %561 = vperm.xlu1 %2279, %v2699_v63  }
  0xcc   :  { %620 = vrot.lane.b32.xlu0 %v2557_v41, %s2358_s21 }
  0xce   :  { %v2835_v12 = vpop.permute.xlu1 %255  ;;  %v2854_v8 = vpop.permute.xlu0 %291 }
  0xcf   :  { %583 = vrot.lane.b32.xlu1 %v2833_v11, %s2356_s0 }
  0xd0   :  { %624 = vrot.lane.b32.xlu0 %v2574_v46, %s2358_s21  ;;  %2280 = vset.pattern.permute.xlu1 %v5473_v0 }
  0xd2   :  { %v2849_v47 = vpop.permute.xlu1 %263  ;;  %v2868_v35 = vpop.permute.xlu0 %295 }
  0xd3   :  { %592 = vperm.xlu1 %2280, %v2847_v59  }
  0xd4   :  { %639 = vrot.lane.b32.xlu0 %v2557_v41, %s2360_s22 }
  0xd6   :  { %v2856_v23 = vpop.permute.xlu1 %274  ;;  %v2876_v60 = vpop.permute.xlu0 %322 }
  0xd7   :  { %603 = vrot.lane.b32.xlu1 %v2833_v11, %s2357_s20 }
  0xd8   :  { %643 = vrot.lane.b32.xlu0 %v2574_v46, %s2360_s22  ;;  %2281 = vset.pattern.permute.xlu1 %v5481_v22 }
  0xda   :  { %v2863_v0 = vpop.permute.xlu1 %282 }
  0xdb   :  { %611 = vperm.xlu1 %2281, %v2847_v59  }
  0xdc   :  { %670 = vrot.lane.b32.xlu0 %v2833_v11, %s2362_s23 }
  0xde   :  { %v2870_v34 = vpop.permute.xlu1 %293 }
  0xdf   :  { %622 = vrot.lane.b32.xlu1 %v2833_v11, %s2358_s21 }
  0xe0   :  { %678 = vperm.xlu0 %2268, %v2847_v59   ;;  %2282 = vset.pattern.permute.xlu1 %v5629_v33  ;;  %v5632_v33 = vmov 3  }
  0xe2   :  { %v2878_v22 = vpop.permute.xlu1 %301 }
  0xe3   :  { %5630 = vst [vmem:[#allocation11_spill] sm:$0xff] %v2878_v22  ;;  %630 = vperm.xlu1 %2282, %v2847_v59  }
  0xe4   :  { %2284 = vset.pattern.permute.xlu0 %v5488_v30 }
  0xe5   :  { %133 = vperm.xlu0 %2284, %v2394_v1  }
  0xe6   :  { %v2883_v28 = vpop.permute.xlu1 %320 }
  0xe7   :  { %v2885_v50 = vpop.permute.xlu0 %330  ;;  %641 = vrot.lane.b32.xlu1 %v2833_v11, %s2360_s22 }
  0xe8   :  { %5631 = vst [vmem:[#allocation12_spill] sm:$0xff] %v2885_v50  ;;  %2283 = vset.pattern.permute.xlu1 %v5632_v33 }
  0xe9   :  { %311 = vperm.xlu0 %2284, %v2602_v51   ;;  %v5636_v51 = vmov 6  }
  0xea   :  { %v2891_v48 = vpop.permute.xlu1 %324 }
  0xeb   :  { %v2893_v22 = vpop.permute.xlu0 %343  ;;  %649 = vperm.xlu1 %2283, %v2847_v59  }
  0xec   :  { %5633 = vst [vmem:[#allocation13_spill] sm:$0xff] %v2893_v22 }
  0xed   :  { %485 = vperm.xlu0 %2284, %v2699_v63  }
  0xee   :  { %v2897_v1 = vpop.permute.xlu1 %339 }
  0xef   :  { %5634 = vst [vmem:[#allocation14_spill] sm:$0xff] %v2897_v1  ;;  %v2899_v30 = vpop.permute.xlu0 %358  ;;  %668 = vrot.lane.b32.xlu1 %v2557_v41, %s2362_s23 }
  0xf0   :  { %5635 = vst [vmem:[#allocation15_spill] sm:$0xff] %v2899_v30  ;;  %2285 = vset.pattern.permute.xlu1 %v5636_v51 }
  0xf1   :  { %659 = vperm.xlu0 %2284, %v2847_v59  }
  0xf2   :  { %v2905_v33 = vpop.permute.xlu1 %341 }
  0xf3   :  { %5637 = vst [vmem:[#allocation16_spill] sm:$0xff] %v2905_v33  ;;  %v2907_v50 = vpop.permute.xlu0 %362  ;;  %672 = vrot.lane.b32.xlu1 %v2574_v46, %s2362_s23 }
  0xf4   :  { %5638 = vst [vmem:[#allocation17_spill] sm:$0xff] %v2907_v50 }
  0xf5   :  { %691 = vrot.lane.b32.xlu0 %v2574_v46, %s2363_s24 }
  0xf6   :  { %v2913_v63 = vpop.permute.xlu1 %349 }
  0xf7   :  { %5639 = vst [vmem:[#allocation18_spill] sm:$0xff] %v2913_v63  ;;  %v2915_v30 = vpop.permute.xlu0 %377  ;;  %687 = vrot.lane.b32.xlu1 %v2557_v41, %s2363_s24 }
  0xf8   :  { %5640 = vst [vmem:[#allocation19_spill] sm:$0xff] %v2915_v30 }
  0xf9   :  { %706 = vrot.lane.b32.xlu0 %v2557_v41, %s2365_s25 }
  0xfa   :  { %v2921_v51 = vpop.permute.xlu1 %360 }
  0xfb   :  { %5641 = vst [vmem:[#allocation20_spill] sm:$0xff] %v2921_v51  ;;  %v2923_v22 = vpop.permute.xlu0 %381  ;;  %689 = vrot.lane.b32.xlu1 %v2833_v11, %s2363_s24 }
  0xfc   :  { %5642 = vst [vmem:[#allocation21_spill] sm:$0xff] %v2923_v22  ;;  %v5647_v22 = vmov 7  }
  0xfd   :  { %710 = vrot.lane.b32.xlu0 %v2574_v46, %s2365_s25 }
  0xfe   :  { %v2929_v50 = vpop.permute.xlu1 %368 }
  0xff   :  { %5643 = vst [vmem:[#allocation22_spill] sm:$0xff] %v2929_v50  ;;  %v2931_v63 = vpop.permute.xlu0 %407  ;;  %697 = vperm.xlu1 %2285, %v2847_v59  }
 0x100   :  { %5644 = vst [vmem:[#allocation23_spill] sm:$0xff] %v2931_v63 }
 0x101   :  { %725 = vrot.lane.b32.xlu0 %v2557_v41, %s2367_s26 }
 0x102   :  { %v2936_v30 = vpop.permute.xlu1 %379 }
 0x103   :  { %5645 = vst [vmem:[#allocation24_spill] sm:$0xff] %v2936_v30  ;;  %v2938_v51 = vpop.permute.xlu0 %411  ;;  %708 = vrot.lane.b32.xlu1 %v2833_v11, %s2365_s25 }
 0x104   :  { %5646 = vst [vmem:[#allocation25_spill] sm:$0xff] %v2938_v51  ;;  %2286 = vset.pattern.permute.xlu1 %v5647_v22  ;;  %v5652_v51 = vmov 8  }
 0x105   :  { %729 = vrot.lane.b32.xlu0 %v2574_v46, %s2367_s26 }
 0x106   :  { %v2945_v50 = vpop.permute.xlu1 %387 }
 0x107   :  { %5648 = vst [vmem:[#allocation26_spill] sm:$0xff] %v2945_v50  ;;  %v2947_v63 = vpop.permute.xlu0 %427  ;;  %716 = vperm.xlu1 %2286, %v2847_v59   ;;  %v5657_v50 = vmov 0  }
 0x108   :  { %5649 = vst [vmem:[#allocation27_spill] sm:$0xff] %v2947_v63 }
 0x10a   :  { %v2950_v1 = vpop.permute.xlu1 %409 }
 0x10b   :  { %5650 = vst [vmem:[#allocation28_spill] sm:$0xff] %v2950_v1  ;;  %v2952_v41 = vpop.permute.xlu0 %431  ;;  %727 = vrot.lane.b32.xlu1 %v2833_v11, %s2367_s26 }
 0x10c   :  { %5651 = vst [vmem:[#allocation29_spill] sm:$0xff] %v2952_v41  ;;  %2287 = vset.pattern.permute.xlu1 %v5652_v51 }
 0x10e   :  { %v2957_v30 = vpop.permute.xlu1 %418 }
 0x10f   :  { %5653 = vst [vmem:[#allocation30_spill] sm:$0xff] %v2957_v30  ;;  %v2959_v22 = vpop.permute.xlu0 %446  ;;  %735 = vperm.xlu1 %2287, %v2847_v59  }
 0x110   :  { %5654 = vst [vmem:[#allocation31_spill] sm:$0xff] %v2959_v22 }
 0x112   :  { %v2962_v46 = vpop.permute.xlu1 %429 }
 0x113   :  { %5655 = vst [vmem:[#allocation32_spill] sm:$0xff] %v2962_v46  ;;  %v2964_v63 = vpop.permute.xlu0 %450  ;;  %2288 = vset.pattern.permute.xlu1 %v5657_v50 }
 0x114   :  { %5656 = vst [vmem:[#allocation33_spill] sm:$0xff] %v2964_v63 }
 0x116   :  { %v2967_v1 = vpop.permute.xlu1 %437 }
 0x117   :  { %5658 = vst [vmem:[#allocation34_spill] sm:$0xff] %v2967_v1  ;;  %v2969_v41 = vpop.permute.xlu0 %465 }
 0x118   :  { %5659 = vst [vmem:[#allocation35_spill] sm:$0xff] %v2969_v41 }
 0x11a   :  { %v2971_v33 = vpop.permute.xlu1 %448 }
 0x11b   :  { %5660 = vst [vmem:[#allocation36_spill] sm:$0xff] %v2971_v33  ;;  %v2973_v11 = vpop.permute.xlu0 %469 }
 0x11c   :  { %5661 = vst [vmem:[#allocation37_spill] sm:$0xff] %v2973_v11 }
 0x11e   :  { %v2975_v51 = vpop.permute.xlu1 %456 }
 0x11f   :  { %5662 = vst [vmem:[#allocation38_spill] sm:$0xff] %v2975_v51  ;;  %v2977_v30 = vpop.permute.xlu0 %498 }
 0x120   :  { %5663 = vst [vmem:[#allocation39_spill] sm:$0xff] %v2977_v30 }
 0x122   :  { %v2979_v22 = vpop.permute.xlu1 %467 }
 0x123   :  { %5664 = vst [vmem:[#allocation40_spill] sm:$0xff] %v2979_v22  ;;  %v2981_v59 = vpop.permute.xlu0 %513 }
 0x124   :  { %5665 = vst [vmem:[#allocation41_spill] sm:$0xff] %v2981_v59 }
 0x126   :  { %v2983_v46 = vpop.permute.xlu1 %475 }
 0x127   :  { %5666 = vst [vmem:[#allocation42_spill] sm:$0xff] %v2983_v46  ;;  %v2985_v63 = vpop.permute.xlu0 %517 }
 0x128   :  { %5667 = vst [vmem:[#allocation43_spill] sm:$0xff] %v2985_v63 }
 0x12a   :  { %v2987_v50 = vpop.permute.xlu1 %494 }
 0x12b   :  { %5668 = vst [vmem:[#allocation44_spill] sm:$0xff] %v2987_v50  ;;  %v2989_v1 = vpop.permute.xlu0 %532 }
 0x12c   :  { %5669 = vst [vmem:[#allocation45_spill] sm:$0xff] %v2989_v1 }
 0x12e   :  { %v2991_v41 = vpop.permute.xlu1 %496 }
 0x12f   :  { %5670 = vst [vmem:[#allocation46_spill] sm:$0xff] %v2991_v41  ;;  %v2993_v33 = vpop.permute.xlu0 %536 }
 0x130   :  { %5671 = vst [vmem:[#allocation47_spill] sm:$0xff] %v2993_v33 }
 0x132   :  { %v2995_v11 = vpop.permute.xlu1 %504 }
 0x133   :  { %5672 = vst [vmem:[#allocation48_spill] sm:$0xff] %v2995_v11  ;;  %v2997_v51 = vpop.permute.xlu0 %551 }
 0x134   :  { %5673 = vst [vmem:[#allocation49_spill] sm:$0xff] %v2997_v51  ;;  %v5538_v51 = vlaneseq }
 0x136   :  { %v2999_v30 = vpop.permute.xlu1 %515 }
 0x137   :  { %5674 = vst [vmem:[#allocation50_spill] sm:$0xff] %v2999_v30  ;;  %v3001_v22 = vpop.permute.xlu0 %555 }
 0x138   :  { %5675 = vst [vmem:[#allocation51_spill] sm:$0xff] %v3001_v22 }
 0x13a   :  { %v3003_v59 = vpop.permute.xlu1 %523 }
 0x13b   :  { %5676 = vst [vmem:[#allocation52_spill] sm:$0xff] %v3003_v59  ;;  %v3005_v46 = vpop.permute.xlu0 %581  ;;  %v3024_v59 = vand.u32 127, %v5538_v51 }
 0x13c   :  { %5677 = vst [vmem:[#allocation53_spill] sm:$0xff] %v3005_v46 }
 0x13d   :  { %vm78_vm3 = vcmp.lt.s32.totalorder %v3024_v59, 18  ;;  %vm60_vm4 = vcmp.lt.s32.totalorder %v3024_v59, 19  ;;  %vm98_vm5 = vcmp.lt.s32.totalorder %v3024_v59, 17  ;;  %vm118_vm6 = vcmp.lt.s32.totalorder %v3024_v59, 1 }
 0x13e   :  { %v3007_v63 = vpop.permute.xlu1 %534  ;;  %vm168_vm7 = vcmp.lt.s32.totalorder %v3024_v59, 111  ;;  %vm148_vm8 = vcmp.lt.s32.totalorder %v3024_v59, 127  ;;  %vm188_vm9 = vcmp.lt.s32.totalorder %v3024_v59, 110  ;;  %vm208_vm10 = vcmp.lt.s32.totalorder %v3024_v59, 109 }
 0x13f   :  { %5678 = vst [vmem:[#allocation54_spill] sm:$0xff] %v3007_v63  ;;  %v3009_v50 = vpop.permute.xlu0 %585 }
 0x142   :  { %v3011_v1 = vpop.permute.xlu1 %542 }
 0x143   :  { %5679 = vst [vmem:[#allocation55_spill] sm:$0xff] %v3011_v1  ;;  %v3013_v41 = vpop.permute.xlu0 %601 }
 0x144   :  { %5680 = vst [vmem:[#allocation56_spill] sm:$0xff] %v3013_v41 }
 0x146   :  { %v3015_v33 = vpop.permute.xlu1 %553 }
 0x147   :  { %5681 = vst [vmem:[#allocation57_spill] sm:$0xff] %v3015_v33  ;;  %v3017_v11 = vpop.permute.xlu0 %605 }
 0x148   :  { %5682 = vst [vmem:[#allocation58_spill] sm:$0xff] %v3017_v11  ;;  %v63_v11 = vsel %vm60_vm4, %v2674_v57, %v2650_v52 }
 0x14a   :  { %v3019_v30 = vpop.permute.xlu1 %561 }
 0x14b   :  { %5683 = vst [vmem:[#allocation59_spill] sm:$0xff] %v3019_v30  ;;  %v3021_v22 = vpop.permute.xlu0 %620 }
 0x14c   :  { %5684 = vst [vmem:[#allocation60_spill] sm:$0xff] %v3021_v22  ;;  %v81_v22 = vsel %vm78_vm3, %v2676_v58, %v2664_v55 }
 0x14d   :  { %v86_v41 = vmul.f32 %v2703_v3, %v81_v22 }
 0x14e   :  { %v3026_v46 = vpop.permute.xlu1 %583 }
 0x14f   :  { %5685 = vst [vmem:[#allocation61_spill] sm:$0xff] %v3026_v46  ;;  %v3028_v63 = vpop.permute.xlu0 %624  ;;  %v80_v46 = vsel %vm78_vm3, %v2664_v55, %v2687_v61  ;;  %v69_v55 = vmul.f32 %v2662_v54, %v63_v11 }
 0x150   :  { %5686 = vst [vmem:[#allocation62_spill] sm:$0xff] %v3028_v63  ;;  %v61_v63 = vsel %vm60_vm4, %v2657_v53, %v2674_v57  ;;  %v87_v57 = vmul.f32 %v2703_v3, %v80_v46  ;;  %v99_v46 = vsel %vm98_vm5, %v2710_v5, %v2701_v2 }
 0x151   :  { %v71_v22 = vmul.f32 %v2662_v54, %v61_v63  ;;  %v108_v11 = vmul.f32 %v2719_v7, %v99_v46 }
 0x152   :  { %v3040_v51 = vpop.permute.xlu1 %592 }
 0x153   :  { %5687 = vst [vmem:[#allocation63_spill] sm:$0xff] %v3040_v51  ;;  %v3042_v30 = vpop.permute.xlu0 %639  ;;  %v62_v51 = vsel %vm60_vm4, %v2650_v52, %v2657_v53  ;;  %v101_v52 = vsel %vm98_vm5, %v2701_v2, %v2689_v62  ;;  %v100_v53 = vsel %vm98_vm5, %v2689_v62, %v2710_v5  ;;  %v121_v2 = vsel %vm118_vm6, %v2717_v6, %v2708_v4 }
 0x154   :  { %5688 = vst [vmem:[#allocation64_spill] sm:$0xff] %v3042_v30  ;;  %v79_v30 = vsel %vm78_vm3, %v2687_v61, %v2676_v58  ;;  %v70_v33 = vmul.f32 %v2662_v54, %v62_v51  ;;  %v89_v54 = vadd.f32 %v86_v41, %v69_v55  ;;  %v106_v61 = vmul.f32 %v2719_v7, %v101_v52 }
 0x155   :  { %v88_v1 = vmul.f32 %v2703_v3, %v79_v30  ;;  %v107_v3 = vmul.f32 %v2719_v7, %v100_v53  ;;  %v119_v62 = vsel %vm118_vm6, %v2726_v10, %v2717_v6  ;;  %v120_v41 = vsel %vm118_vm6, %v2708_v4, %v2726_v10 }
 0x156   :  { %v3080_v30 = vpop.permute.xlu1 %603  ;;  %v90_v51 = vadd.f32 %v87_v57, %v70_v33  ;;  %v126_v63 = vmul.f32 %v2735_v14, %v121_v2  ;;  %v127_v33 = vmul.f32 %v2735_v14, %v120_v41  ;;  %v128_v7 = vmul.f32 %v2735_v14, %v119_v62 }
 0x157   :  { %v3082_v58 = vpop.permute.xlu0 %643  ;;  %v91_v5 = vadd.f32 %v88_v1, %v71_v22  ;;  %v109_v6 = vadd.f32 %v106_v61, %v89_v54  ;;  %v150_v4 = vsel %vm148_vm8, %v2742_v17, %v2751_v21  ;;  %v171_v22 = vsel %vm168_vm7, %v2740_v16, %v2733_v13 }
 0x158   :  { %v110_v52 = vadd.f32 %v107_v3, %v90_v51  ;;  %v151_v53 = vsel %vm148_vm8, %v2724_v9, %v2742_v17  ;;  %v149_v54 = vsel %vm148_vm8, %v2751_v21, %v2724_v9  ;;  %v191_v61 = vsel %vm188_vm9, %v2756_v25, %v2749_v18 }
 0x159   :  { %v111_v46 = vadd.f32 %v108_v11, %v91_v5  ;;  %v129_v10 = vadd.f32 %v126_v63, %v109_v6  ;;  %v156_v51 = vmul.f32 %v2758_v26, %v150_v4  ;;  %v157_v2 = vmul.f32 %v2758_v26, %v149_v54 }
 0x15a   :  { %v3104_v57 = vpop.permute.xlu1 %611  ;;  %v130_v14 = vadd.f32 %v127_v33, %v110_v52  ;;  %v169_v17 = vsel %vm168_vm7, %v2767_v29, %v2740_v16  ;;  %v170_v9 = vsel %vm168_vm7, %v2733_v13, %v2767_v29  ;;  %v158_v21 = vmul.f32 %v2758_v26, %v151_v53 }
 0x15b   :  { %v3106_v55 = vpop.permute.xlu0 %670  ;;  %v131_v1 = vadd.f32 %v128_v7, %v111_v46  ;;  %v211_v62 = vsel %vm208_vm10, %v2773_v31, %v2765_v27  ;;  %v176_v41 = vmul.f32 %v2775_v32, %v170_v9  ;;  %v177_v5 = vmul.f32 %v2775_v32, %v169_v17 }
 0x15c   :  { %v178_v63 = vmul.f32 %v2775_v32, %v171_v22  ;;  %v189_v16 = vsel %vm188_vm9, %v2782_v39, %v2756_v25  ;;  %v190_v13 = vsel %vm188_vm9, %v2749_v18, %v2782_v39  ;;  %v241_v26 = vsel %vm60_vm4, %v2789_v40, %v2780_v38 }
 0x15d   :  { %v196_v29 = vmul.f32 %v2791_v42, %v190_v13  ;;  %v197_v33 = vmul.f32 %v2791_v42, %v189_v16  ;;  %v209_v32 = vsel %vm208_vm10, %v2798_v44, %v2773_v31  ;;  %v210_v25 = vsel %vm208_vm10, %v2765_v27, %v2798_v44 }
 0x15e   :  { %v3130_v3 = vpop.permute.xlu1 %622  ;;  %v198_v39 = vmul.f32 %v2791_v42, %v191_v61  ;;  %v261_v7 = vsel %vm78_vm3, %v2810_v49, %v2796_v43  ;;  %v216_v6 = vmul.f32 %v2805_v45, %v210_v25  ;;  %v217_v52 = vmul.f32 %v2805_v45, %v209_v32  ;;  %v5689_v32 = vld [vmem:[#allocation11_spill] sm:$0xff] }
 0x15f   :  { %v3132_v11 = vpop.permute.xlu0 %678  ;;  %v218_v31 = vmul.f32 %v2805_v45, %v211_v62  ;;  %v239_v42 = vsel %vm60_vm4, %v2812_v56, %v2789_v40  ;;  %v240_v22 = vsel %vm60_vm4, %v2780_v38, %v2812_v56  ;;  %v280_v45 = vsel %vm98_vm5, %v2841_v15, %v2824_v37 }
 0x160   :  { %v249_v40 = vmul.f32 %v2826_v36, %v239_v42  ;;  %v259_v38 = vsel %vm78_vm3, %v2835_v12, %v2810_v49  ;;  %v260_v56 = vsel %vm78_vm3, %v2796_v43, %v2835_v12  ;;  %v278_v49 = vsel %vm98_vm5, %v2856_v23, %v2841_v15 }
 0x161   :  { %v267_v9 = vmul.f32 %v2849_v47, %v260_v56  ;;  %v268_v62 = vmul.f32 %v2849_v47, %v259_v38  ;;  %v279_v43 = vsel %vm98_vm5, %v2824_v37, %v2856_v23  ;;  %v285_v12 = vmul.f32 %v2863_v0, %v280_v45 }
 0x162   :  { %v3174_v18 = vpop.permute.xlu1 %630  ;;  %v286_v13 = vmul.f32 %v2863_v0, %v279_v43  ;;  %v327_v15 = vsel %vm148_vm8, %v2883_v28, %v2876_v60  ;;  %v326_v37 = vsel %vm148_vm8, %v2876_v60, %v2891_v48  ;;  %v328_v23 = vsel %vm148_vm8, %v2891_v48, %v2883_v28  ;;  %v5690_v60 = vld [vmem:[#allocation16_spill] sm:$0xff]  ;;  %v5698_v43 = vld [vmem:[#allocation19_spill] sm:$0xff] }
 0x164   :  { %v134_v46 = vpop.permute.xlu0 %133 }
 0x165   :  { %v136_v4 = vmul.f32 %v134_v46, %v2458_v20  ;;  %v137_v27 = vmul.f32 %v134_v46, %v2470_v24  ;;  %v138_v44 = vmul.f32 %v134_v46, %v2454_v19  ;;  %v247_v20 = vmul.f32 %v2826_v36, %v241_v26  ;;  %v5691_v46 = vld [vmem:[#allocation14_spill] sm:$0xff] }
 0x166   :  { %v248_v24 = vmul.f32 %v2826_v36, %v240_v22  ;;  %v3201_v61 = vpop.permute.xlu1 %641  ;;  %v297_v26 = vsel %vm118_vm6, %v2870_v34, %v2868_v35 }
 0x167   :  { %v139_v19 = vadd.f32 %v136_v4, %v129_v10  ;;  %v140_v53 = vadd.f32 %v137_v27, %v130_v14  ;;  %v141_v54 = vadd.f32 %v138_v44, %v131_v1  ;;  %v299_v10 = vsel %vm118_vm6, %v2868_v35, %v2854_v8  ;;  %v5693_v35 = vld [vmem:[#allocation13_spill] sm:$0xff] }
 0x168   :  { %v266_v14 = vmul.f32 %v2849_v47, %v261_v7  ;;  %v298_v47 = vsel %vm118_vm6, %v2854_v8, %v2870_v34  ;;  %v287_v8 = vmul.f32 %v2863_v0, %v278_v49  ;;  %v304_v25 = vmul.f32 %v5689_v32, %v299_v10  ;;  %v5692_v0 = vld [vmem:[#allocation12_spill] sm:$0xff] }
 0x169   :  { %v159_v1 = vadd.f32 %v156_v51, %v139_v19  ;;  %v160_v17 = vadd.f32 %v157_v2, %v140_v53  ;;  %v161_v36 = vadd.f32 %v158_v21, %v141_v54  ;;  %v305_v7 = vmul.f32 %v5689_v32, %v298_v47  ;;  %v5696_v54 = vld [vmem:[#allocation18_spill] sm:$0xff]  ;;  %v5697_v10 = vld [vmem:[#allocation20_spill] sm:$0xff] }
 0x16a   :  { %v3228_v21 = vpop.permute.xlu1 %649  ;;  %v346_v4 = vsel %vm168_vm7, %v5691_v46, %v5690_v60  ;;  %v334_v27 = vmul.f32 %v5692_v0, %v326_v37  ;;  %v335_v34 = vmul.f32 %v5692_v0, %v328_v23  ;;  %v345_v44 = vsel %vm168_vm7, %v5690_v60, %v5693_v35  ;;  %v5701_v37 = vld [vmem:[#allocation24_spill] sm:$0xff] }
 0x16b   :  { %v179_v16 = vadd.f32 %v176_v41, %v159_v1  ;;  %v180_v51 = vadd.f32 %v177_v5, %v160_v17  ;;  %v181_v2 = vadd.f32 %v178_v63, %v161_v36  ;;  %v352_v38 = vmul.f32 %v5696_v54, %v346_v4  ;;  %v312_v17 = vpop.permute.xlu0 %311 }
 0x16c   :  { %v353_v56 = vmul.f32 %v5696_v54, %v345_v44 }
 0x16d   :  { %v199_v41 = vadd.f32 %v196_v29, %v179_v16  ;;  %v200_v5 = vadd.f32 %v197_v33, %v180_v51  ;;  %v201_v63 = vadd.f32 %v198_v39, %v181_v2  ;;  %v306_v33 = vmul.f32 %v5689_v32, %v297_v26  ;;  %v5699_v16 = vld [vmem:[#allocation21_spill] sm:$0xff]  ;;  %v5700_v2 = vld [vmem:[#allocation22_spill] sm:$0xff]  ;;  %v5703_v26 = vld [vmem:[#allocation8_spill] sm:$0xff] }
 0x16e   :  { %v333_v39 = vmul.f32 %v5692_v0, %v327_v15  ;;  %v3266_v19 = vpop.permute.xlu1 %668  ;;  %v385_v51 = vsel %vm208_vm10, %v5699_v16, %v5698_v43  ;;  %v383_v23 = vsel %vm208_vm10, %v5701_v37, %v5699_v16  ;;  %v315_v32 = vmul.f32 %v312_v17, %v5703_v26  ;;  %v5716_v26 = vld [vmem:[#allocation36_spill] sm:$0xff] }
 0x16f   :  { %v219_v28 = vadd.f32 %v216_v6, %v199_v41  ;;  %v220_v48 = vadd.f32 %v217_v52, %v200_v5  ;;  %v221_v29 = vadd.f32 %v218_v31, %v201_v63  ;;  %v347_v6 = vsel %vm168_vm7, %v5693_v35, %v5691_v46  ;;  %v5694_v52 = vld [vmem:[#allocation15_spill] sm:$0xff]  ;;  %v5695_v31 = vld [vmem:[#allocation17_spill] sm:$0xff]  ;;  %v5707_v35 = vld [vmem:[#allocation26_spill] sm:$0xff] }
 0x170   :  { %v366_v53 = vsel %vm188_vm9, %v5695_v31, %v5694_v52  ;;  %v354_v36 = vmul.f32 %v5696_v54, %v347_v6  ;;  %v364_v49 = vsel %vm188_vm9, %v5697_v10, %v5695_v31  ;;  %v384_v41 = vsel %vm208_vm10, %v5698_v43, %v5701_v37  ;;  %v5702_v5 = vld [vmem:[#allocation7_spill] sm:$0xff]  ;;  %v5712_v43 = vld [vmem:[#allocation32_spill] sm:$0xff] }
 0x171   :  { %v250_v42 = vadd.f32 %v247_v20, %v219_v28  ;;  %v251_v22 = vadd.f32 %v248_v24, %v220_v48  ;;  %v252_v45 = vadd.f32 %v249_v40, %v221_v29  ;;  %v365_v20 = vsel %vm188_vm9, %v5694_v52, %v5697_v10  ;;  %v5705_v48 = vld [vmem:[#allocation23_spill] sm:$0xff]  ;;  %v5706_v29 = vld [vmem:[#allocation25_spill] sm:$0xff]  ;;  %v5711_v10 = vld [vmem:[#allocation30_spill] sm:$0xff] }
 0x172   :  { %v371_v47 = vmul.f32 %v5700_v2, %v365_v20  ;;  %v372_v15 = vmul.f32 %v5700_v2, %v364_v49  ;;  %v314_v63 = vmul.f32 %v312_v17, %v5702_v5  ;;  %v373_v28 = vmul.f32 %v5700_v2, %v366_v53  ;;  %v5709_v31 = vld [vmem:[#allocation27_spill] sm:$0xff]  ;;  %v5710_v53 = vld [vmem:[#allocation29_spill] sm:$0xff] }
 0x173   :  { %v269_v24 = vadd.f32 %v266_v14, %v250_v42  ;;  %v270_v40 = vadd.f32 %v267_v9, %v251_v22  ;;  %v271_v1 = vadd.f32 %v268_v62, %v252_v45  ;;  %v415_v0 = vsel %vm60_vm4, %v5706_v29, %v5705_v48  ;;  %v5708_v45 = vld [vmem:[#allocation28_spill] sm:$0xff]  ;;  %v5713_v2 = vld [vmem:[#allocation31_spill] sm:$0xff] }
 0x174   :  { %v390_v44 = vmul.f32 %v5707_v35, %v384_v41  ;;  %v391_v42 = vmul.f32 %v5707_v35, %v383_v23  ;;  %v392_v22 = vmul.f32 %v5707_v35, %v385_v51  ;;  %v413_v6 = vsel %vm60_vm4, %v5708_v45, %v5706_v29 }
 0x175   :  { %v288_v14 = vadd.f32 %v285_v12, %v269_v24  ;;  %v289_v9 = vadd.f32 %v286_v13, %v270_v40  ;;  %v290_v62 = vadd.f32 %v287_v8, %v271_v1  ;;  %v5704_v12 = vld [vmem:[#allocation2_spill] sm:$0xff]  ;;  %v3304_v8 = vpop.permute.xlu1 %672  ;;  %v414_v52 = vsel %vm60_vm4, %v5705_v48, %v5708_v45 }
 0x176   :  { %v316_v13 = vmul.f32 %v312_v17, %v5704_v12  ;;  %v435_v54 = vsel %vm78_vm3, %v5710_v53, %v5709_v31  ;;  %v421_v20 = vmul.f32 %v5711_v10, %v415_v0  ;;  %v422_v24 = vmul.f32 %v5711_v10, %v414_v52 }
 0x177   :  { %v307_v60 = vadd.f32 %v304_v25, %v288_v14  ;;  %v308_v46 = vadd.f32 %v305_v7, %v289_v9  ;;  %v309_v4 = vadd.f32 %v306_v33, %v290_v62  ;;  %v423_v49 = vmul.f32 %v5711_v10, %v413_v6  ;;  %v5714_v14 = vld [vmem:[#allocation33_spill] sm:$0xff] }
 0x178   :  { %v433_v16 = vsel %vm78_vm3, %v5712_v43, %v5710_v53  ;;  %v434_v51 = vsel %vm78_vm3, %v5709_v31, %v5712_v43  ;;  %v454_v9 = vsel %vm98_vm5, %v5714_v14, %v5713_v2  ;;  %v5720_v35 = vlaneseq  ;;  %v5723_v53 = vld [vmem:[#allocation46_spill] sm:$0xff]  ;;  %v5725_v43 = vld [vmem:[#allocation41_spill] sm:$0xff] }
 0x179   :  { %v317_v25 = vadd.f32 %v314_v63, %v307_v60  ;;  %v318_v7 = vadd.f32 %v315_v32, %v308_v46  ;;  %v319_v33 = vadd.f32 %v316_v13, %v309_v4  ;;  %v3342_v41 = vpop.permute.xlu1 %687  ;;  %v452_v32 = vsel %vm98_vm5, %v5716_v26, %v5714_v14  ;;  %v5717_v46 = vld [vmem:[#allocation35_spill] sm:$0xff]  ;;  %v5719_v13 = vld [vmem:[#allocation38_spill] sm:$0xff] }
 0x17a   :  { %v453_v60 = vsel %vm98_vm5, %v5713_v2, %v5716_v26  ;;  %v459_v48 = vmul.f32 %v5719_v13, %v454_v9  ;;  %v461_v0 = vmul.f32 %v5719_v13, %v452_v32  ;;  %v5727_v2 = vld [vmem:[#allocation39_spill] sm:$0xff] }
 0x17b   :  { %v336_v40 = vadd.f32 %v333_v39, %v317_v25  ;;  %v337_v1 = vadd.f32 %v334_v27, %v318_v7  ;;  %v338_v17 = vadd.f32 %v335_v34, %v319_v33  ;;  %v486_v39 = vpop.permute.xlu0 %485  ;;  %v5715_v27 = vld [vmem:[#allocation34_spill] sm:$0xff]  ;;  %v460_v29 = vmul.f32 %v5719_v13, %v453_v60  ;;  %v5721_v7 = vld [vmem:[#allocation40_spill] sm:$0xff] }
 0x17c   :  { %v440_v34 = vmul.f32 %v5715_v27, %v435_v54  ;;  %v441_v5 = vmul.f32 %v5715_v27, %v434_v51  ;;  %v442_v63 = vmul.f32 %v5715_v27, %v433_v16  ;;  %v3362_v25 = vshrl.u32 %v5720_v35, 7  ;;  %v5724_v54 = vld [vmem:[#allocation44_spill] sm:$0xff]  ;;  %v5726_v16 = vld [vmem:[#allocation43_spill] sm:$0xff] }
 0x17d   :  { %v355_v62 = vadd.f32 %v352_v38, %v336_v40  ;;  %v356_v37 = vadd.f32 %v353_v56, %v337_v1  ;;  %v357_v23 = vadd.f32 %v354_v36, %v338_v17  ;;  %v5718_v38 = vld [vmem:[#allocation37_spill] sm:$0xff]  ;;  %v472_v33 = vsel %vm118_vm6, %v5717_v46, %v5721_v7  ;;  %v3381_v17 = vpop.permute.xlu1 %689  ;;  %v5730_v27 = vld [vmem:[#allocation48_spill] sm:$0xff] }
 0x17e   :  { %v473_v56 = vsel %vm118_vm6, %v5718_v38, %v5717_v46  ;;  %v501_v10 = vsel %vm148_vm8, %v5724_v54, %v5723_v53  ;;  %v521_v51 = vsel %vm168_vm7, %v5726_v16, %v5725_v43  ;;  %v502_v14 = vsel %vm148_vm8, %v5727_v2, %v5724_v54  ;;  %v5731_v46 = vld [vmem:[#allocation50_spill] sm:$0xff]  ;;  %v5734_v35 = vld [vmem:[#allocation52_spill] sm:$0xff] }
 0x17f   :  { %v374_v36 = vadd.f32 %v371_v47, %v355_v62  ;;  %v375_v4 = vadd.f32 %v372_v15, %v356_v37  ;;  %v376_v12 = vadd.f32 %v373_v28, %v357_v23  ;;  %v471_v47 = vsel %vm118_vm6, %v5721_v7, %v5718_v38  ;;  %v5722_v15 = vld [vmem:[#allocation42_spill] sm:$0xff]  ;;  %v3378_v40 = vpop.permute.xlu0 %659 }
 0x180   :  { %v478_v28 = vmul.f32 %v5722_v15, %v473_v56  ;;  %v479_v31 = vmul.f32 %v5722_v15, %v472_v33  ;;  %v500_v9 = vsel %vm148_vm8, %v5723_v53, %v5727_v2  ;;  %v507_v62 = vmul.f32 %v5730_v27, %v501_v10  ;;  %v5737_v10 = vld [vmem:[#allocation4_spill] sm:$0xff] }
 0x181   :  { %v393_v45 = vadd.f32 %v390_v44, %v374_v36  ;;  %v394_v6 = vadd.f32 %v391_v42, %v375_v4  ;;  %v395_v52 = vadd.f32 %v392_v22, %v376_v12  ;;  %v480_v44 = vmul.f32 %v5722_v15, %v471_v47  ;;  %v5732_v4 = vld [vmem:[#allocation49_spill] sm:$0xff] }
 0x182   :  { %v508_v32 = vmul.f32 %v5730_v27, %v500_v9  ;;  %v509_v60 = vmul.f32 %v5730_v27, %v502_v14  ;;  %v519_v38 = vsel %vm168_vm7, %v5731_v46, %v5726_v16  ;;  %v520_v56 = vsel %vm168_vm7, %v5725_v43, %v5731_v46  ;;  %v5739_v43 = vld [vmem:[#allocation53_spill] sm:$0xff] }
 0x183   :  { %v424_v42 = vadd.f32 %v421_v20, %v393_v45  ;;  %v425_v22 = vadd.f32 %v422_v24, %v394_v6  ;;  %v426_v1 = vadd.f32 %v423_v49, %v395_v52  ;;  %v5728_v20 = vld [vmem:[#allocation45_spill] sm:$0xff]  ;;  %v5729_v24 = vld [vmem:[#allocation47_spill] sm:$0xff]  ;;  %v3410_v36 = vpop.permute.xlu0 %691  ;;  %v526_v7 = vmul.f32 %v5734_v35, %v520_v56 }
 0x184   :  { %v540_v49 = vsel %vm188_vm9, %v5729_v24, %v5728_v20  ;;  %v527_v33 = vmul.f32 %v5734_v35, %v519_v38  ;;  %v5735_v45 = vld [vmem:[#allocation3_spill] sm:$0xff]  ;;  %v5736_v52 = vld [vmem:[#allocation9_spill] sm:$0xff] }
 0x185   :  { %v443_v37 = vadd.f32 %v440_v34, %v424_v42  ;;  %v444_v23 = vadd.f32 %v441_v5, %v425_v22  ;;  %v445_v26 = vadd.f32 %v442_v63, %v426_v1  ;;  %v5733_v34 = vld [vmem:[#allocation51_spill] sm:$0xff]  ;;  %v488_v6 = vmul.f32 %v486_v39, %v5735_v45  ;;  %v3421_v22 = vpop.permute.xlu1 %697 }
 0x186   :  { %v559_v5 = vsel %vm208_vm10, %v5733_v34, %v5732_v4  ;;  %v489_v47 = vmul.f32 %v486_v39, %v5736_v52  ;;  %v490_v42 = vmul.f32 %v486_v39, %v5737_v10  ;;  %v528_v1 = vmul.f32 %v5734_v35, %v521_v51  ;;  %v5745_v35 = vld [vmem:[#allocation61_spill] sm:$0xff]  ;;  %v5747_v52 = vld [vmem:[#allocation62_spill] sm:$0xff] }
 0x187   :  { %v462_v63 = vadd.f32 %v459_v48, %v443_v37  ;;  %v463_v12 = vadd.f32 %v460_v29, %v444_v23  ;;  %v464_v13 = vadd.f32 %v461_v0, %v445_v26  ;;  %v5738_v48 = vld [vmem:[#allocation54_spill] sm:$0xff]  ;;  %v3436_v39 = vpop.permute.xlu0 %706  ;;  %v5742_v37 = vld [vmem:[#allocation56_spill] sm:$0xff] }
 0x188   :  { %v538_v29 = vsel %vm188_vm9, %v5738_v48, %v5729_v24  ;;  %v539_v0 = vsel %vm188_vm9, %v5728_v20, %v5738_v48  ;;  %v5741_v24 = vld [vmem:[#allocation57_spill] sm:$0xff]  ;;  %v5743_v23 = vld [vmem:[#allocation58_spill] sm:$0xff]  ;;  %v608_v10 = vsel %vm78_vm3, %v5742_v37, %v3080_v30  ;;  %v5749_v48 = vld [vmem:[#allocation64_spill] sm:$0xff] }
 0x189   :  { %v481_v15 = vadd.f32 %v478_v28, %v462_v63  ;;  %v482_v53 = vadd.f32 %v479_v31, %v463_v12  ;;  %v483_v54 = vadd.f32 %v480_v44, %v464_v13  ;;  %v589_v28 = vsel %vm60_vm4, %v3009_v50, %v5739_v43  ;;  %v5740_v31 = vld [vmem:[#allocation55_spill] sm:$0xff]  ;;  %v3453_v63 = vpop.permute.xlu1 %708 }
 0x18a   :  { %v545_v44 = vmul.f32 %v5740_v31, %v539_v0  ;;  %v546_v14 = vmul.f32 %v5740_v31, %v538_v29  ;;  %v547_v9 = vmul.f32 %v5740_v31, %v540_v49  ;;  %v557_v20 = vsel %vm208_vm10, %v5741_v24, %v5733_v34  ;;  %v5744_v49 = vld [vmem:[#allocation59_spill] sm:$0xff] }
 0x18b   :  { %v491_v16 = vadd.f32 %v488_v6, %v481_v15  ;;  %v492_v51 = vadd.f32 %v489_v47, %v482_v53  ;;  %v493_v2 = vadd.f32 %v490_v42, %v483_v54  ;;  %v558_v27 = vsel %vm208_vm10, %v5732_v4, %v5741_v24  ;;  %v5746_v6 = vld [vmem:[#allocation60_spill] sm:$0xff]  ;;  %v5748_v15 = vld [vmem:[#allocation63_spill] sm:$0xff] }
 0x18c   :  { %v609_v26 = vsel %vm78_vm3, %v5743_v23, %v5742_v37  ;;  %v564_v12 = vmul.f32 %v5744_v49, %v558_v27  ;;  %v565_v13 = vmul.f32 %v5744_v49, %v557_v20  ;;  %v566_v34 = vmul.f32 %v5744_v49, %v559_v5 }
 0x18d   :  { %v510_v46 = vadd.f32 %v507_v62, %v491_v16  ;;  %v511_v38 = vadd.f32 %v508_v32, %v492_v51  ;;  %v512_v56 = vadd.f32 %v509_v60, %v493_v2  ;;  %v587_v4 = vsel %vm60_vm4, %v5745_v35, %v3009_v50  ;;  %v711_v50 = vpop.permute.xlu0 %710  ;;  %v717_v51 = vpop.permute.xlu1 %716 }
 0x18e   :  { %v588_v62 = vsel %vm60_vm4, %v5739_v43, %v5745_v35  ;;  %v628_v47 = vsel %vm98_vm5, %v5747_v52, %v5746_v6  ;;  %v595_v5 = vmul.f32 %v5748_v15, %v589_v28  ;;  %v597_v54 = vmul.f32 %v5748_v15, %v587_v4 }
 0x18f   :  { %v529_v32 = vadd.f32 %v526_v7, %v510_v46  ;;  %v530_v60 = vadd.f32 %v527_v33, %v511_v38  ;;  %v531_v45 = vadd.f32 %v528_v1, %v512_v56  ;;  %v596_v53 = vmul.f32 %v5748_v15, %v588_v62 }
 0x190   :  { %v607_v1 = vsel %vm78_vm3, %v3080_v30, %v5743_v23  ;;  %v647_v29 = vsel %vm118_vm6, %v3082_v58, %v5749_v48  ;;  %v614_v0 = vmul.f32 %v3104_v57, %v609_v26  ;;  %v615_v43 = vmul.f32 %v3104_v57, %v608_v10 }
 0x191   :  { %v548_v7 = vadd.f32 %v545_v44, %v529_v32  ;;  %v549_v33 = vadd.f32 %v546_v14, %v530_v60  ;;  %v550_v42 = vadd.f32 %v547_v9, %v531_v45  ;;  %v627_v28 = vsel %vm98_vm5, %v5746_v6, %v3130_v3  ;;  %v726_v46 = vpop.permute.xlu0 %725  ;;  %v728_v60 = vpop.permute.xlu1 %727  ;;  %v5752_v6 = vld [vmem:[#allocation6_spill] sm:$0xff] }
 0x192   :  { %v616_v30 = vmul.f32 %v3104_v57, %v607_v1  ;;  %v626_v2 = vsel %vm98_vm5, %v3130_v3, %v5747_v52  ;;  %v633_v14 = vmul.f32 %v3174_v18, %v628_v47  ;;  %v634_v9 = vmul.f32 %v3174_v18, %v627_v28 }
 0x193   :  { %v567_v31 = vadd.f32 %v564_v12, %v548_v7  ;;  %v568_v44 = vadd.f32 %v565_v13, %v549_v33  ;;  %v569_v16 = vadd.f32 %v566_v34, %v550_v42  ;;  %v675_v24 = vsel %vm148_vm8, %v3266_v19, %v3106_v55  ;;  %v5750_v34 = vld [vmem:[#allocation5_spill] sm:$0xff] }
 0x194   :  { %v635_v23 = vmul.f32 %v3174_v18, %v626_v2  ;;  %v645_v57 = vsel %vm118_vm6, %v3201_v61, %v3082_v58  ;;  %v646_v3 = vsel %vm118_vm6, %v5749_v48, %v3201_v61  ;;  %v652_v26 = vmul.f32 %v3228_v21, %v647_v29 }
 0x195   :  { %v598_v20 = vadd.f32 %v595_v5, %v567_v31  ;;  %v599_v27 = vadd.f32 %v596_v53, %v568_v44  ;;  %v600_v37 = vadd.f32 %v597_v54, %v569_v16  ;;  %v653_v38 = vmul.f32 %v3228_v21, %v646_v3  ;;  %v730_v10 = vpop.permute.xlu0 %729  ;;  %v736_v28 = vpop.permute.xlu1 %735 }
 0x196   :  { %v654_v18 = vmul.f32 %v3228_v21, %v645_v57  ;;  %v681_v13 = vmul.f32 %v3132_v11, %v675_v24  ;;  %v662_v58 = vmul.f32 %v3378_v40, %v5750_v34  ;;  %v674_v61 = vsel %vm148_vm8, %v3106_v55, %v3304_v8  ;;  %v5751_v21 = vld [vmem:[#allocation10_spill] sm:$0xff] }
 0x197   :  { %v617_v56 = vadd.f32 %v614_v0, %v598_v20  ;;  %v618_v49 = vadd.f32 %v615_v43, %v599_v27  ;;  %v619_v12 = vadd.f32 %v616_v30, %v600_v37  ;;  %v676_v32 = vsel %vm148_vm8, %v3304_v8, %v3266_v19  ;;  %v14_v57 = vld [vmem:[%s5463_s2] sm:$0x7] }
 0x198   :  { %v663_v45 = vmul.f32 %v3378_v40, %v5751_v21  ;;  %v664_v52 = vmul.f32 %v3378_v40, %v5752_v6  ;;  %v694_v55 = vsel %vm168_vm7, %v3342_v41, %v3381_v17  ;;  %v695_v47 = vsel %vm168_vm7, %v3410_v36, %v3342_v41 }
 0x199   :  { %v636_v35 = vadd.f32 %v633_v14, %v617_v56  ;;  %v637_v4 = vadd.f32 %v634_v9, %v618_v49  ;;  %v638_v62 = vadd.f32 %v635_v23, %v619_v12  ;;  %v693_v8 = vsel %vm168_vm7, %v3381_v17, %v3410_v36 }
 0x19a   :  { %v682_v40 = vmul.f32 %v3132_v11, %v674_v61  ;;  %v683_v53 = vmul.f32 %v3132_v11, %v676_v32  ;;  %v713_v54 = vsel %vm188_vm9, %v3436_v39, %v3453_v63  ;;  %v714_v41 = vsel %vm188_vm9, %v711_v50, %v3436_v39 }
 0x19b   :  { %v655_v15 = vadd.f32 %v652_v26, %v636_v35  ;;  %v656_v5 = vadd.f32 %v653_v38, %v637_v4  ;;  %v657_v19 = vadd.f32 %v654_v18, %v638_v62  ;;  %v712_v17 = vsel %vm188_vm9, %v3453_v63, %v711_v50 }
 0x19c   :  { %v700_v36 = vmul.f32 %v3421_v22, %v694_v55  ;;  %v701_v11 = vmul.f32 %v3421_v22, %v693_v8  ;;  %v702_v1 = vmul.f32 %v3421_v22, %v695_v47  ;;  %v732_v48 = vsel %vm208_vm10, %v726_v46, %v728_v60 }
 0x19d   :  { %v665_v7 = vadd.f32 %v662_v58, %v655_v15  ;;  %v666_v33 = vadd.f32 %v663_v45, %v656_v5  ;;  %v667_v42 = vadd.f32 %v664_v52, %v657_v19  ;;  %v731_v43 = vsel %vm208_vm10, %v728_v60, %v730_v10 }
 0x19e   :  { %v719_v31 = vmul.f32 %v717_v51, %v713_v54  ;;  %v720_v44 = vmul.f32 %v717_v51, %v712_v17  ;;  %v733_v63 = vsel %vm208_vm10, %v730_v10, %v726_v46  ;;  %v756_v50 = vsub.s32 0, %v3362_v25 }
 0x19f   :  { %v685_v29 = vadd.f32 %v682_v40, %v666_v33  ;;  %v686_v0 = vadd.f32 %v683_v53, %v667_v42  ;;  %v684_v39 = vadd.f32 %v681_v13, %v665_v7  ;;  %v721_v2 = vmul.f32 %v717_v51, %v714_v41 }
 0x1a0   :  { %v760_v14 = vsub.s32 1, %v3362_v25  ;;  %v764_v9 = vsub.s32 2, %v3362_v25  ;;  %v738_v24 = vmul.f32 %v736_v28, %v732_v48  ;;  %v739_v20 = vmul.f32 %v736_v28, %v731_v43 }
 0x1a1   :  { %v703_v16 = vadd.f32 %v700_v36, %v684_v39  ;;  %v704_v30 = vadd.f32 %v701_v11, %v685_v29  ;;  %v705_v22 = vadd.f32 %v702_v1, %v686_v0  ;;  %v740_v3 = vmul.f32 %v736_v28, %v733_v63  ;;  %v2231_v0 = vld [vmem:[%s5461_s1 + $0x20] sm:$0xff] }
 0x1a2   :  { %v3568_v56 = vrot.slane %v14_v57, %v756_v50  ;;  %v3570_v51 = vrot.slane %v14_v57, %v760_v14  ;;  %v3572_v49 = vrot.slane %v14_v57, %v764_v9  ;;  %v5765_v57 = vmov 1  }
 0x1a3   :  { %v722_v27 = vadd.f32 %v719_v31, %v703_v16  ;;  %v723_v37 = vadd.f32 %v720_v44, %v704_v30  ;;  %v724_v23 = vadd.f32 %v721_v2, %v705_v22 }
 0x1a4   :  { %5753 = vst [vmem:[#allocation11_spill] sm:$0xff] %v3568_v56  ;;  %5754 = vst [vmem:[#allocation16_spill] sm:$0xff] %v3570_v51 }
 0x1a5   :  { %v741_v26 = vadd.f32 %v738_v24, %v722_v27  ;;  %v742_v46 = vadd.f32 %v739_v20, %v723_v37  ;;  %v743_v38 = vadd.f32 %v740_v3, %v724_v23  ;;  %5755 = vst [vmem:[#allocation14_spill] sm:$0xff] %v3572_v49  ;;  %v5766_v3 = vmov 2  }
 0x1a7   :  { %vm744_vm11 = vcmp.ge.f32.partialorder %v741_v26, 0.0  ;;  %vm745_vm12 = vcmp.ge.f32.partialorder %v742_v46, 0.0  ;;  %vm746_vm13 = vcmp.ge.f32.partialorder %v743_v38, 0.0  ;;  %v747_v25 = vmul.f32 0.2, %v741_v26 }
 0x1a8   :  { %v748_v12 = vmul.f32 0.2, %v742_v46  ;;  %v749_v18 = vmul.f32 0.2, %v743_v38 }
 0x1a9   :  { %v750_v13 = vsel %vm744_vm11, %v741_v26, %v747_v25  ;;  %v5767_v26 = vmov 3   ;;  %v5770_v25 = vmov 7  }
 0x1aa   :  { %v751_v34 = vsel %vm745_vm12, %v742_v46, %v748_v12  ;;  %v752_v58 = vsel %vm746_vm13, %v743_v38, %v749_v18  ;;  %v769_v61 = vmul.f32 %v3568_v56, %v750_v13  ;;  %v5768_v46 = vmov 5   ;;  %v3705_v13 = vld [vmem:[%s5461_s1 + $0x28] sm:$0xff]  ;;  %v3929_v56 = vld [vmem:[%s5461_s1 + $0x38] sm:$0xff] }
 0x1ab   :  { %v770_v35 = vmul.f32 %v3570_v51, %v751_v34  ;;  %v771_v4 = vmul.f32 %v3572_v49, %v752_v58  ;;  %v5769_v38 = vmov 6   ;;  %v5771_v12 = vmov 8  }
 0x1ac   :  { %v775_v62 = vrot.slane %v769_v61, 6  ;;  %v781_v32 = vrot.slane %v769_v61, 4  ;;  %v787_v60 = vrot.slane %v769_v61, 2  ;;  %v5772_v18 = vmov 0  }
 0x1ad   :  { %v776_v21 = vrot.slane %v770_v35, 6  ;;  %v782_v45 = vrot.slane %v770_v35, 4  ;;  %v788_v6 = vrot.slane %v770_v35, 2  ;;  %v777_v52 = vrot.slane %v771_v4, 6 }
 0x1ae   :  { %v793_v55 = vsel %vm39_vm0, %v769_v61, %v775_v62  ;;  %v783_v47 = vrot.slane %v771_v4, 4  ;;  %v789_v15 = vrot.slane %v771_v4, 2  ;;  %v964_v5 = vsel %vm39_vm0, %v787_v60, %v769_v61 }
 0x1af   :  { %v796_v19 = vsel %vm43_vm1, %v793_v55, %v781_v32  ;;  %v794_v8 = vsel %vm39_vm0, %v770_v35, %v776_v21  ;;  %v795_v40 = vsel %vm39_vm0, %v771_v4, %v777_v52  ;;  %v967_v53 = vsel %vm43_vm1, %v964_v5, %v775_v62 }
 0x1b0   :  { %v3584_v54 = vsel %vm47_vm2, %v796_v19, %v787_v60  ;;  %v797_v41 = vsel %vm43_vm1, %v794_v8, %v782_v45  ;;  %v798_v10 = vsel %vm43_vm1, %v795_v40, %v783_v47  ;;  %v3589_v7 = vsel %vm47_vm2, %v967_v53, %v781_v32 }
 0x1b1   :  { %5756 = vst [vmem:[#allocation12_spill] sm:$0xff] %v3589_v7  ;;  %804 = vrot.lane.b32.xlu0 %v3584_v54, %s2356_s0  ;;  %v3594_v33 = vsel %vm47_vm2, %v797_v41, %v788_v6  ;;  %v3597_v42 = vsel %vm47_vm2, %v798_v10, %v789_v15  ;;  %v966_v17 = vsel %vm39_vm0, %v789_v15, %v771_v4 }
 0x1b2   :  { %v965_v36 = vsel %vm39_vm0, %v788_v6, %v770_v35  ;;  %806 = vrot.lane.b32.xlu1 %v3594_v33, %s2356_s0  ;;  %v969_v11 = vsel %vm43_vm1, %v966_v17, %v777_v52  ;;  %v1138_v48 = vsel %vm39_vm0, %v781_v32, %v787_v60  ;;  %v1140_v29 = vsel %vm39_vm0, %v783_v47, %v789_v15 }
 0x1b3   :  { %v968_v1 = vsel %vm43_vm1, %v965_v36, %v776_v21  ;;  %v3611_v39 = vsel %vm47_vm2, %v969_v11, %v783_v47  ;;  %v1141_v28 = vsel %vm43_vm1, %v1138_v48, %v769_v61  ;;  %v1143_v31 = vsel %vm43_vm1, %v1140_v29, %v771_v4 }
 0x1b4   :  { %5757 = vst [vmem:[#allocation13_spill] sm:$0xff] %v3611_v39  ;;  %v3614_v43 = vsel %vm47_vm2, %v968_v1, %v782_v45  ;;  %v3619_v44 = vsel %vm47_vm2, %v1141_v28, %v775_v62  ;;  %v3622_v63 = vsel %vm47_vm2, %v1143_v31, %v777_v52  ;;  %v1139_v50 = vsel %vm39_vm0, %v782_v45, %v788_v6 }
 0x1b5   :  { %5758 = vst [vmem:[#allocation15_spill] sm:$0xff] %v3614_v43  ;;  %5759 = vst [vmem:[#allocation17_spill] sm:$0xff] %v3619_v44  ;;  %v1312_v16 = vsel %vm39_vm0, %v775_v62, %v781_v32  ;;  %808 = vrot.lane.b32.xlu0 %v3597_v42, %s2356_s0  ;;  %v1142_v30 = vsel %vm43_vm1, %v1139_v50, %v770_v35  ;;  %v1314_v2 = vsel %vm39_vm0, %v777_v52, %v783_v47 }
 0x1b6   :  { %5760 = vst [vmem:[#allocation18_spill] sm:$0xff] %v3622_v63  ;;  %v1315_v22 = vsel %vm43_vm1, %v1312_v16, %v787_v60  ;;  %v1313_v14 = vsel %vm39_vm0, %v776_v21, %v782_v45  ;;  %815 = vperm.xlu1 %2288, %v2231_v0   ;;  %v3633_v9 = vsel %vm47_vm2, %v1142_v30, %v776_v21  ;;  %v3793_v21 = vld [vmem:[%s5461_s1 + $0x30] sm:$0xff] }
 0x1b7   :  { %5761 = vst [vmem:[#allocation20_spill] sm:$0xff] %v3633_v9  ;;  %v3636_v24 = vsel %vm47_vm2, %v1315_v22, %v769_v61  ;;  %v1317_v20 = vsel %vm43_vm1, %v1314_v2, %v789_v15  ;;  %v1316_v27 = vsel %vm43_vm1, %v1313_v14, %v788_v6 }
 0x1b8   :  { %5762 = vst [vmem:[#allocation19_spill] sm:$0xff] %v3636_v24  ;;  %v3641_v37 = vsel %vm47_vm2, %v1317_v20, %v771_v4  ;;  %v3644_v23 = vsel %vm47_vm2, %v1316_v27, %v770_v35 }
 0x1b9   :  { %5763 = vst [vmem:[#allocation21_spill] sm:$0xff] %v3641_v37  ;;  %5764 = vst [vmem:[#allocation22_spill] sm:$0xff] %v3644_v23  ;;  %821 = vrot.lane.b32.xlu0 %v3584_v54, %s2357_s20 }
 0x1ba   :  { %823 = vrot.lane.b32.xlu1 %v3594_v33, %s2357_s20 }
 0x1bb   :  { %2289 = vset.pattern.permute.xlu1 %v5765_v57 }
 0x1bd   :  { %825 = vrot.lane.b32.xlu0 %v3597_v42, %s2357_s20 }
 0x1be   :  { %831 = vperm.xlu1 %2289, %v2231_v0  }
 0x1c1   :  { %840 = vrot.lane.b32.xlu0 %v3584_v54, %s2358_s21 }
 0x1c2   :  { %842 = vrot.lane.b32.xlu1 %v3594_v33, %s2358_s21 }
 0x1c3   :  { %2290 = vset.pattern.permute.xlu1 %v5766_v3 }
 0x1c5   :  { %844 = vrot.lane.b32.xlu0 %v3597_v42, %s2358_s21 }
 0x1c6   :  { %850 = vperm.xlu1 %2290, %v2231_v0  }
 0x1c9   :  { %859 = vrot.lane.b32.xlu0 %v3584_v54, %s2360_s22 }
 0x1ca   :  { %861 = vrot.lane.b32.xlu1 %v3594_v33, %s2360_s22 }
 0x1cb   :  { %2291 = vset.pattern.permute.xlu1 %v5767_v26 }
 0x1cd   :  { %863 = vrot.lane.b32.xlu0 %v3597_v42, %s2360_s22 }
 0x1ce   :  { %869 = vperm.xlu1 %2291, %v2231_v0  }
 0x1d1   :  { %879 = vperm.xlu0 %2284, %v2231_v0  }
 0x1d2   :  { %888 = vrot.lane.b32.xlu1 %v3584_v54, %s2362_s23 }
 0x1d3   :  { %2292 = vset.pattern.permute.xlu1 %v5768_v46 }
 0x1d5   :  { %892 = vrot.lane.b32.xlu0 %v3597_v42, %s2362_s23 }
 0x1d6   :  { %890 = vrot.lane.b32.xlu1 %v3594_v33, %s2362_s23 }
 0x1d9   :  { %907 = vrot.lane.b32.xlu0 %v3584_v54, %s2363_s24 }
 0x1da   :  { %898 = vperm.xlu1 %2292, %v2231_v0  }
 0x1dd   :  { %911 = vrot.lane.b32.xlu0 %v3597_v42, %s2363_s24 }
 0x1de   :  { %909 = vrot.lane.b32.xlu1 %v3594_v33, %s2363_s24 }
 0x1df   :  { %2293 = vset.pattern.permute.xlu1 %v5769_v38 }
 0x1e1   :  { %926 = vrot.lane.b32.xlu0 %v3584_v54, %s2365_s25 }
 0x1e2   :  { %917 = vperm.xlu1 %2293, %v2231_v0  }
 0x1e5   :  { %930 = vrot.lane.b32.xlu0 %v3597_v42, %s2365_s25 }
 0x1e6   :  { %928 = vrot.lane.b32.xlu1 %v3594_v33, %s2365_s25 }
 0x1e7   :  { %2294 = vset.pattern.permute.xlu1 %v5770_v25 }
 0x1e9   :  { %945 = vrot.lane.b32.xlu0 %v3584_v54, %s2367_s26 }
 0x1ea   :  { %936 = vperm.xlu1 %2294, %v2231_v0  }
 0x1ed   :  { %949 = vrot.lane.b32.xlu0 %v3597_v42, %s2367_s26 }
 0x1ee   :  { %947 = vrot.lane.b32.xlu1 %v3594_v33, %s2367_s26 }
 0x1ef   :  { %2295 = vset.pattern.permute.xlu1 %v5771_v12 }
 0x1f1   :  { %975 = vrot.lane.b32.xlu0 %v3589_v7, %s2356_s0 }
 0x1f2   :  { %955 = vperm.xlu1 %2295, %v2231_v0  }
 0x1f5   :  { %979 = vrot.lane.b32.xlu0 %v3611_v39, %s2356_s0 }
 0x1f6   :  { %977 = vrot.lane.b32.xlu1 %v3614_v43, %s2356_s0 }
 0x1f7   :  { %2296 = vset.pattern.permute.xlu1 %v5772_v18 }
 0x1f9   :  { %995 = vrot.lane.b32.xlu0 %v3589_v7, %s2357_s20 }
 0x1fa   :  { %986 = vperm.xlu1 %2296, %v3705_v13  }
 0x1fd   :  { %999 = vrot.lane.b32.xlu0 %v3611_v39, %s2357_s20 }
 0x1fe   :  { %997 = vrot.lane.b32.xlu1 %v3614_v43, %s2357_s20 }
 0x1ff   :  { %2297 = vset.pattern.permute.xlu1 %v5765_v57 }
 0x201   :  { %1014 = vrot.lane.b32.xlu0 %v3589_v7, %s2358_s21 }
 0x202   :  { %1005 = vperm.xlu1 %2297, %v3705_v13  }
 0x205   :  { %1018 = vrot.lane.b32.xlu0 %v3611_v39, %s2358_s21 }
 0x206   :  { %1016 = vrot.lane.b32.xlu1 %v3614_v43, %s2358_s21 }
 0x207   :  { %2298 = vset.pattern.permute.xlu1 %v5766_v3 }
 0x209   :  { %1033 = vrot.lane.b32.xlu0 %v3589_v7, %s2360_s22 }
 0x20a   :  { %1024 = vperm.xlu1 %2298, %v3705_v13  }
 0x20d   :  { %1037 = vrot.lane.b32.xlu0 %v3611_v39, %s2360_s22 }
 0x20e   :  { %1035 = vrot.lane.b32.xlu1 %v3614_v43, %s2360_s22 }
 0x20f   :  { %2299 = vset.pattern.permute.xlu1 %v5767_v26 }
 0x211   :  { %1053 = vperm.xlu0 %2284, %v3705_v13  }
 0x212   :  { %1043 = vperm.xlu1 %2299, %v3705_v13  }
 0x215   :  { %1064 = vrot.lane.b32.xlu0 %v3614_v43, %s2362_s23 }
 0x216   :  { %1062 = vrot.lane.b32.xlu1 %v3589_v7, %s2362_s23 }
 0x217   :  { %2300 = vset.pattern.permute.xlu1 %v5769_v38 }
 0x219   :  { %1085 = vrot.lane.b32.xlu0 %v3611_v39, %s2363_s24 }
 0x21a   :  { %1066 = vrot.lane.b32.xlu1 %v3611_v39, %s2362_s23 }
 0x21d   :  { %1100 = vrot.lane.b32.xlu0 %v3589_v7, %s2365_s25 }
 0x21e   :  { %1081 = vrot.lane.b32.xlu1 %v3589_v7, %s2363_s24 }
 0x221   :  { %1104 = vrot.lane.b32.xlu0 %v3611_v39, %s2365_s25 }
 0x222   :  { %1083 = vrot.lane.b32.xlu1 %v3614_v43, %s2363_s24 }
 0x223   :  { %v3750_v34 = vpop.permute.xlu0 %804 }
 0x224   :  { %v3767_v35 = vpop.permute.xlu1 %806 }
 0x225   :  { %1119 = vrot.lane.b32.xlu0 %v3589_v7, %s2367_s26 }
 0x226   :  { %1091 = vperm.xlu1 %2300, %v3705_v13  }
 0x227   :  { %v3755_v58 = vpop.permute.xlu0 %808 }
 0x229   :  { %1123 = vrot.lane.b32.xlu0 %v3611_v39, %s2367_s26 }
 0x22a   :  { %1102 = vrot.lane.b32.xlu1 %v3614_v43, %s2365_s25 }
 0x22b   :  { %2301 = vset.pattern.permute.xlu1 %v5770_v25  ;;  %v3764_v61 = vpop.permute.xlu0 %821 }
 0x22d   :  { %1149 = vrot.lane.b32.xlu0 %v3619_v44, %s2356_s0 }
 0x22e   :  { %1110 = vperm.xlu1 %2301, %v3705_v13  }
 0x22f   :  { %v3774_v4 = vpop.permute.xlu0 %825 }
 0x231   :  { %1153 = vrot.lane.b32.xlu0 %v3622_v63, %s2356_s0 }
 0x232   :  { %1121 = vrot.lane.b32.xlu1 %v3614_v43, %s2367_s26 }
 0x233   :  { %2302 = vset.pattern.permute.xlu1 %v5771_v12  ;;  %v3785_v60 = vpop.permute.xlu0 %840 }
 0x235   :  { %v3776_v62 = vpop.permute.xlu1 %815  ;;  %1169 = vrot.lane.b32.xlu0 %v3619_v44, %s2357_s20 }
 0x236   :  { %1129 = vperm.xlu1 %2302, %v3705_v13  }
 0x237   :  { %v3800_v6 = vpop.permute.xlu0 %844 }
 0x239   :  { %v3781_v32 = vpop.permute.xlu1 %823  ;;  %1173 = vrot.lane.b32.xlu0 %v3622_v63, %s2357_s20 }
 0x23a   :  { %1151 = vrot.lane.b32.xlu1 %v3633_v9, %s2356_s0 }
 0x23b   :  { %2303 = vset.pattern.permute.xlu1 %v5772_v18  ;;  %v3813_v47 = vpop.permute.xlu0 %859 }
 0x23d   :  { %v3795_v45 = vpop.permute.xlu1 %831  ;;  %1188 = vrot.lane.b32.xlu0 %v3619_v44, %s2358_s21 }
 0x23e   :  { %1160 = vperm.xlu1 %2303, %v3793_v21  }
 0x23f   :  { %v3823_v5 = vpop.permute.xlu0 %863 }
 0x241   :  { %v3802_v52 = vpop.permute.xlu1 %842  ;;  %1192 = vrot.lane.b32.xlu0 %v3622_v63, %s2358_s21 }
 0x242   :  { %1171 = vrot.lane.b32.xlu1 %v3633_v9, %s2357_s20 }
 0x243   :  { %2304 = vset.pattern.permute.xlu1 %v5765_v57 }
 0x245   :  { %v3809_v55 = vpop.permute.xlu1 %850  ;;  %1207 = vrot.lane.b32.xlu0 %v3619_v44, %s2360_s22 }
 0x246   :  { %1179 = vperm.xlu1 %2304, %v3793_v21  }
 0x249   :  { %v3816_v15 = vpop.permute.xlu1 %861  ;;  %1211 = vrot.lane.b32.xlu0 %v3622_v63, %s2360_s22 }
 0x24a   :  { %1190 = vrot.lane.b32.xlu1 %v3633_v9, %s2358_s21 }
 0x24b   :  { %2305 = vset.pattern.permute.xlu1 %v5766_v3 }
 0x24d   :  { %v3825_v19 = vpop.permute.xlu1 %869  ;;  %1227 = vperm.xlu0 %2284, %v3793_v21  }
 0x24e   :  { %1198 = vperm.xlu1 %2305, %v3793_v21  }
 0x250   :  { %v3829_v8 = vpop.permute.xlu0 %879 }
 0x251   :  { %v3831_v40 = vpop.permute.xlu1 %888  ;;  %1240 = vrot.lane.b32.xlu0 %v3622_v63, %s2362_s23 }
 0x252   :  { %1209 = vrot.lane.b32.xlu1 %v3633_v9, %s2360_s22 }
 0x253   :  { %2306 = vset.pattern.permute.xlu1 %v5767_v26 }
 0x254   :  { %v3838_v53 = vpop.permute.xlu0 %892 }
 0x255   :  { %v3840_v41 = vpop.permute.xlu1 %890  ;;  %1255 = vrot.lane.b32.xlu0 %v3619_v44, %s2363_s24 }
 0x256   :  { %1217 = vperm.xlu1 %2306, %v3793_v21  }
 0x258   :  { %v3845_v10 = vpop.permute.xlu0 %907 }
 0x259   :  { %v3847_v17 = vpop.permute.xlu1 %898  ;;  %1259 = vrot.lane.b32.xlu0 %v3622_v63, %s2363_s24 }
 0x25a   :  { %1236 = vrot.lane.b32.xlu1 %v3619_v44, %s2362_s23 }
 0x25b   :  { %2307 = vset.pattern.permute.xlu1 %v5768_v46 }
 0x25c   :  { %v3854_v36 = vpop.permute.xlu0 %911 }
 0x25d   :  { %v3856_v11 = vpop.permute.xlu1 %909  ;;  %1274 = vrot.lane.b32.xlu0 %v3619_v44, %s2365_s25 }
 0x25e   :  { %1238 = vrot.lane.b32.xlu1 %v3633_v9, %s2362_s23 }
 0x260   :  { %v3862_v1 = vpop.permute.xlu0 %926 }
 0x261   :  { %v3864_v48 = vpop.permute.xlu1 %917  ;;  %1278 = vrot.lane.b32.xlu0 %v3622_v63, %s2365_s25 }
 0x262   :  { %1246 = vperm.xlu1 %2307, %v3793_v21  }
 0x264   :  { %v3869_v29 = vpop.permute.xlu0 %930 }
 0x265   :  { %v3871_v0 = vpop.permute.xlu1 %928  ;;  %1293 = vrot.lane.b32.xlu0 %v3619_v44, %s2367_s26 }
 0x266   :  { %1257 = vrot.lane.b32.xlu1 %v3633_v9, %s2363_s24 }
 0x267   :  { %2308 = vset.pattern.permute.xlu1 %v5769_v38 }
 0x268   :  { %v3878_v28 = vpop.permute.xlu0 %945 }
 0x269   :  { %v3880_v31 = vpop.permute.xlu1 %936  ;;  %1297 = vrot.lane.b32.xlu0 %v3622_v63, %s2367_s26 }
 0x26a   :  { %1265 = vperm.xlu1 %2308, %v3793_v21  }
 0x26c   :  { %v3885_v50 = vpop.permute.xlu0 %949 }
 0x26d   :  { %v3887_v16 = vpop.permute.xlu1 %947  ;;  %1323 = vrot.lane.b32.xlu0 %v3636_v24, %s2356_s0 }
 0x26e   :  { %1276 = vrot.lane.b32.xlu1 %v3633_v9, %s2365_s25 }
 0x26f   :  { %2309 = vset.pattern.permute.xlu1 %v5770_v25 }
 0x270   :  { %v3894_v30 = vpop.permute.xlu0 %975 }
 0x271   :  { %v3896_v22 = vpop.permute.xlu1 %955  ;;  %1327 = vrot.lane.b32.xlu0 %v3641_v37, %s2356_s0 }
 0x272   :  { %1284 = vperm.xlu1 %2309, %v3793_v21  }
 0x274   :  { %v3901_v2 = vpop.permute.xlu0 %979 }
 0x275   :  { %v3903_v14 = vpop.permute.xlu1 %977  ;;  %1343 = vrot.lane.b32.xlu0 %v3636_v24, %s2357_s20 }
 0x276   :  { %1295 = vrot.lane.b32.xlu1 %v3633_v9, %s2367_s26 }
 0x277   :  { %2310 = vset.pattern.permute.xlu1 %v5771_v12 }
 0x278   :  { %v3910_v20 = vpop.permute.xlu0 %995 }
 0x279   :  { %v3912_v27 = vpop.permute.xlu1 %986  ;;  %1347 = vrot.lane.b32.xlu0 %v3641_v37, %s2357_s20 }
 0x27a   :  { %1303 = vperm.xlu1 %2310, %v3793_v21  }
 0x27c   :  { %v3917_v49 = vpop.permute.xlu0 %999 }
 0x27d   :  { %v3919_v51 = vpop.permute.xlu1 %997  ;;  %1362 = vrot.lane.b32.xlu0 %v3636_v24, %s2358_s21 }
 0x27e   :  { %1325 = vrot.lane.b32.xlu1 %v3644_v23, %s2356_s0 }
 0x27f   :  { %2311 = vset.pattern.permute.xlu1 %v5772_v18 }
 0x280   :  { %v3931_v63 = vpop.permute.xlu0 %1014 }
 0x281   :  { %v3933_v21 = vpop.permute.xlu1 %1005  ;;  %1366 = vrot.lane.b32.xlu0 %v3641_v37, %s2358_s21 }
 0x282   :  { %1334 = vperm.xlu1 %2311, %v3929_v56  }
 0x284   :  { %v3938_v9 = vpop.permute.xlu0 %1018 }
 0x285   :  { %v3940_v44 = vpop.permute.xlu1 %1016  ;;  %1381 = vrot.lane.b32.xlu0 %v3636_v24, %s2360_s22 }
 0x286   :  { %5773 = vst [vmem:[#allocation24_spill] sm:$0xff] %v3940_v44  ;;  %1345 = vrot.lane.b32.xlu1 %v3644_v23, %s2357_s20 }
 0x287   :  { %2312 = vset.pattern.permute.xlu1 %v5765_v57 }
 0x288   :  { %v3947_v39 = vpop.permute.xlu0 %1033 }
 0x289   :  { %5774 = vst [vmem:[#allocation7_spill] sm:$0xff] %v3947_v39  ;;  %v3949_v43 = vpop.permute.xlu1 %1024  ;;  %1385 = vrot.lane.b32.xlu0 %v3641_v37, %s2360_s22 }
 0x28a   :  { %1353 = vperm.xlu1 %2312, %v3929_v56  }
 0x28c   :  { %v3954_v7 = vpop.permute.xlu0 %1037 }
 0x28d   :  { %5775 = vst [vmem:[#allocation8_spill] sm:$0xff] %v3954_v7  ;;  %v3956_v44 = vpop.permute.xlu1 %1035  ;;  %1401 = vperm.xlu0 %2284, %v3929_v56  }
 0x28e   :  { %5776 = vst [vmem:[#allocation2_spill] sm:$0xff] %v3956_v44  ;;  %1364 = vrot.lane.b32.xlu1 %v3644_v23, %s2358_s21 }
 0x28f   :  { %2313 = vset.pattern.permute.xlu1 %v5766_v3 }
 0x290   :  { %v3962_v57 = vpop.permute.xlu0 %1053 }
 0x291   :  { %5777 = vst [vmem:[#allocation23_spill] sm:$0xff] %v3962_v57  ;;  %v3964_v39 = vpop.permute.xlu1 %1043  ;;  %2315 = vset.pattern.permute.xlu0 %v5768_v46 }
 0x292   :  { %1372 = vperm.xlu1 %2313, %v3929_v56   ;;  %1072 = vperm.xlu0 %2315, %v3705_v13  }
 0x294   :  { %v3969_v7 = vpop.permute.xlu0 %1064 }
 0x295   :  { %v3971_v44 = vpop.permute.xlu1 %1062 }
 0x296   :  { %1383 = vrot.lane.b32.xlu1 %v3644_v23, %s2360_s22  ;;  %1412 = vrot.lane.b32.xlu0 %v3644_v23, %s2362_s23 }
 0x297   :  { %2314 = vset.pattern.permute.xlu1 %v5767_v26 }
 0x298   :  { %v3978_v3 = vpop.permute.xlu0 %1085 }
 0x299   :  { %5778 = vst [vmem:[#allocation25_spill] sm:$0xff] %v3978_v3  ;;  %v3980_v57 = vpop.permute.xlu1 %1066 }
 0x29a   :  { %1391 = vperm.xlu1 %2314, %v3929_v56   ;;  %1420 = vperm.xlu0 %2315, %v3929_v56  }
 0x29c   :  { %v3984_v13 = vpop.permute.xlu0 %1100 }
 0x29d   :  { %5779 = vst [vmem:[#allocation26_spill] sm:$0xff] %v3984_v13  ;;  %v3986_v46 = vpop.permute.xlu1 %1081 }
 0x29e   :  { %5780 = vst [vmem:[#allocation28_spill] sm:$0xff] %v3986_v46  ;;  %1410 = vrot.lane.b32.xlu1 %v3636_v24, %s2362_s23  ;;  %1433 = vrot.lane.b32.xlu0 %v3641_v37, %s2363_s24 }
 0x29f   :  { %2316 = vset.pattern.permute.xlu1 %v5769_v38 }
 0x2a0   :  { %v3993_v26 = vpop.permute.xlu0 %1104 }
 0x2a1   :  { %5781 = vst [vmem:[#allocation27_spill] sm:$0xff] %v3993_v26  ;;  %v3995_v3 = vpop.permute.xlu1 %1083 }
 0x2a2   :  { %5782 = vst [vmem:[#allocation29_spill] sm:$0xff] %v3995_v3  ;;  %1414 = vrot.lane.b32.xlu1 %v3641_v37, %s2362_s23  ;;  %1448 = vrot.lane.b32.xlu0 %v3636_v24, %s2365_s25 }
 0x2a4   :  { %v4001_v13 = vpop.permute.xlu0 %1119 }
 0x2a5   :  { %5783 = vst [vmem:[#allocation30_spill] sm:$0xff] %v4001_v13  ;;  %v4003_v46 = vpop.permute.xlu1 %1091 }
 0x2a6   :  { %5784 = vst [vmem:[#allocation32_spill] sm:$0xff] %v4003_v46  ;;  %1429 = vrot.lane.b32.xlu1 %v3636_v24, %s2363_s24  ;;  %1452 = vrot.lane.b32.xlu0 %v3641_v37, %s2365_s25 }
 0x2a8   :  { %v4009_v38 = vpop.permute.xlu0 %1123 }
 0x2a9   :  { %5785 = vst [vmem:[#allocation31_spill] sm:$0xff] %v4009_v38  ;;  %v4011_v26 = vpop.permute.xlu1 %1102 }
 0x2aa   :  { %5786 = vst [vmem:[#allocation33_spill] sm:$0xff] %v4011_v26  ;;  %1431 = vrot.lane.b32.xlu1 %v3644_v23, %s2363_s24  ;;  %1467 = vrot.lane.b32.xlu0 %v3636_v24, %s2367_s26 }
 0x2ac   :  { %v4017_v3 = vpop.permute.xlu0 %1149 }
 0x2ad   :  { %5787 = vst [vmem:[#allocation34_spill] sm:$0xff] %v4017_v3  ;;  %v4019_v13 = vpop.permute.xlu1 %1110 }
 0x2ae   :  { %5788 = vst [vmem:[#allocation36_spill] sm:$0xff] %v4019_v13  ;;  %1439 = vperm.xlu1 %2316, %v3929_v56   ;;  %1471 = vrot.lane.b32.xlu0 %v3641_v37, %s2367_s26 }
 0x2b0   :  { %v4024_v46 = vpop.permute.xlu0 %1153 }
 0x2b1   :  { %v4026_v38 = vpop.permute.xlu1 %1121 }
 0x2b2   :  { %5789 = vst [vmem:[#allocation35_spill] sm:$0xff] %v4026_v38  ;;  %1450 = vrot.lane.b32.xlu1 %v3644_v23, %s2365_s25 }
 0x2b3   :  { %2317 = vset.pattern.permute.xlu1 %v5770_v25 }
 0x2b4   :  { %v4031_v26 = vpop.permute.xlu0 %1169 }
 0x2b5   :  { %5790 = vst [vmem:[#allocation37_spill] sm:$0xff] %v4031_v26  ;;  %v4033_v24 = vpop.permute.xlu1 %1129 }
 0x2b6   :  { %5791 = vst [vmem:[#allocation38_spill] sm:$0xff] %v4033_v24  ;;  %1458 = vperm.xlu1 %2317, %v3929_v56  }
 0x2b8   :  { %v4036_v3 = vpop.permute.xlu0 %1173 }
 0x2b9   :  { %5792 = vst [vmem:[#allocation40_spill] sm:$0xff] %v4036_v3  ;;  %v4038_v13 = vpop.permute.xlu1 %1151 }
 0x2ba   :  { %5793 = vst [vmem:[#allocation42_spill] sm:$0xff] %v4038_v13  ;;  %1469 = vrot.lane.b32.xlu1 %v3644_v23, %s2367_s26 }
 0x2bb   :  { %2318 = vset.pattern.permute.xlu1 %v5771_v12 }
 0x2bc   :  { %v4043_v37 = vpop.permute.xlu0 %1188 }
 0x2bd   :  { %5794 = vst [vmem:[#allocation46_spill] sm:$0xff] %v4043_v37  ;;  %v4045_v38 = vpop.permute.xlu1 %1160 }
 0x2be   :  { %5795 = vst [vmem:[#allocation44_spill] sm:$0xff] %v4045_v38  ;;  %1477 = vperm.xlu1 %2318, %v3929_v56  }
 0x2c0   :  { %v4048_v25 = vpop.permute.xlu0 %1192 }
 0x2c1   :  { %5796 = vst [vmem:[#allocation41_spill] sm:$0xff] %v4048_v25  ;;  %v4050_v26 = vpop.permute.xlu1 %1171 }
 0x2c2   :  { %5797 = vst [vmem:[#allocation43_spill] sm:$0xff] %v4050_v26  ;;  %2319 = vset.pattern.permute.xlu1 %v5772_v18 }
 0x2c4   :  { %v4053_v3 = vpop.permute.xlu0 %1207 }
 0x2c5   :  { %5798 = vst [vmem:[#allocation39_spill] sm:$0xff] %v4053_v3  ;;  %v4055_v13 = vpop.permute.xlu1 %1179 }
 0x2c6   :  { %5799 = vst [vmem:[#allocation45_spill] sm:$0xff] %v4055_v13 }
 0x2c8   :  { %v4057_v24 = vpop.permute.xlu0 %1211 }
 0x2c9   :  { %5800 = vst [vmem:[#allocation47_spill] sm:$0xff] %v4057_v24  ;;  %v4059_v23 = vpop.permute.xlu1 %1190 }
 0x2ca   :  { %5801 = vst [vmem:[#allocation48_spill] sm:$0xff] %v4059_v23 }
 0x2cc   :  { %v4061_v12 = vpop.permute.xlu0 %1227 }
 0x2cd   :  { %5802 = vst [vmem:[#allocation50_spill] sm:$0xff] %v4061_v12  ;;  %v4063_v37 = vpop.permute.xlu1 %1198 }
 0x2ce   :  { %5803 = vst [vmem:[#allocation49_spill] sm:$0xff] %v4063_v37 }
 0x2d0   :  { %v4065_v38 = vpop.permute.xlu0 %1240 }
 0x2d1   :  { %5804 = vst [vmem:[#allocation51_spill] sm:$0xff] %v4065_v38  ;;  %v4067_v56 = vpop.permute.xlu1 %1209 }
 0x2d2   :  { %5805 = vst [vmem:[#allocation52_spill] sm:$0xff] %v4067_v56 }
 0x2d4   :  { %v4069_v25 = vpop.permute.xlu0 %1255 }
 0x2d5   :  { %5806 = vst [vmem:[#allocation3_spill] sm:$0xff] %v4069_v25  ;;  %v4071_v26 = vpop.permute.xlu1 %1217 }
 0x2d8   :  { %v4073_v18 = vpop.permute.xlu0 %1259 }
 0x2d9   :  { %5807 = vst [vmem:[#allocation9_spill] sm:$0xff] %v4073_v18  ;;  %v4075_v3 = vpop.permute.xlu1 %1236 }
 0x2da   :  { %5808 = vst [vmem:[#allocation4_spill] sm:$0xff] %v4075_v3  ;;  %v811_v3 = vsel %vm60_vm4, %v3750_v34, %v3767_v35 }
 0x2db   :  { %v819_v18 = vmul.f32 %v3776_v62, %v811_v3 }
 0x2dc   :  { %v4077_v13 = vpop.permute.xlu0 %1274 }
 0x2dd   :  { %5809 = vst [vmem:[#allocation54_spill] sm:$0xff] %v4077_v13  ;;  %v4079_v24 = vpop.permute.xlu1 %1238 }
 0x2de   :  { %5810 = vst [vmem:[#allocation53_spill] sm:$0xff] %v4079_v24 }
 0x2e0   :  { %v4081_v23 = vpop.permute.xlu0 %1278 }
 0x2e1   :  { %5811 = vst [vmem:[#allocation55_spill] sm:$0xff] %v4081_v23  ;;  %v4083_v12 = vpop.permute.xlu1 %1246  ;;  %v810_v23 = vsel %vm60_vm4, %v3767_v35, %v3755_v58  ;;  %v828_v35 = vsel %vm78_vm3, %v3764_v61, %v3781_v32 }
 0x2e2   :  { %5812 = vst [vmem:[#allocation57_spill] sm:$0xff] %v4083_v12 }
 0x2e4   :  { %v4085_v37 = vpop.permute.xlu0 %1293 }
 0x2e5   :  { %5813 = vst [vmem:[#allocation56_spill] sm:$0xff] %v4085_v37  ;;  %v4087_v38 = vpop.permute.xlu1 %1257  ;;  %v829_v37 = vsel %vm78_vm3, %v3774_v4, %v3764_v61 }
 0x2e6   :  { %5814 = vst [vmem:[#allocation58_spill] sm:$0xff] %v4087_v38  ;;  %v834_v38 = vmul.f32 %v3795_v45, %v829_v37  ;;  %v846_v37 = vsel %vm98_vm5, %v3802_v52, %v3800_v6 }
 0x2e8   :  { %v4089_v56 = vpop.permute.xlu0 %1297 }
 0x2e9   :  { %5815 = vst [vmem:[#allocation59_spill] sm:$0xff] %v4089_v56  ;;  %v4091_v25 = vpop.permute.xlu1 %1265  ;;  %v827_v56 = vsel %vm78_vm3, %v3781_v32, %v3774_v4  ;;  %v820_v32 = vmul.f32 %v3776_v62, %v810_v23 }
 0x2ea   :  { %5816 = vst [vmem:[#allocation61_spill] sm:$0xff] %v4091_v25  ;;  %v812_v25 = vsel %vm60_vm4, %v3755_v58, %v3750_v34  ;;  %v848_v34 = vsel %vm98_vm5, %v3800_v6, %v3785_v60  ;;  %v835_v58 = vmul.f32 %v3795_v45, %v828_v35  ;;  %v836_v4 = vmul.f32 %v3795_v45, %v827_v56 }
 0x2eb   :  { %v818_v12 = vmul.f32 %v3776_v62, %v812_v25  ;;  %v847_v25 = vsel %vm98_vm5, %v3785_v60, %v3802_v52  ;;  %v853_v61 = vmul.f32 %v3809_v55, %v848_v34  ;;  %v867_v45 = vsel %vm118_vm6, %v3823_v5, %v3813_v47 }
 0x2ec   :  { %v4118_v13 = vpop.permute.xlu0 %1323  ;;  %v854_v3 = vmul.f32 %v3809_v55, %v847_v25  ;;  %v855_v56 = vmul.f32 %v3809_v55, %v846_v37  ;;  %v866_v6 = vsel %vm118_vm6, %v3813_v47, %v3816_v15  ;;  %v872_v60 = vmul.f32 %v3825_v19, %v867_v45 }
 0x2ed   :  { %v4127_v24 = vpop.permute.xlu1 %1276  ;;  %v837_v35 = vadd.f32 %v834_v38, %v818_v12  ;;  %v838_v23 = vadd.f32 %v835_v58, %v819_v18  ;;  %v839_v62 = vadd.f32 %v836_v4, %v820_v32  ;;  %v865_v34 = vsel %vm118_vm6, %v3816_v15, %v3823_v5 }
 0x2ee   :  { %v873_v25 = vmul.f32 %v3825_v19, %v866_v6  ;;  %v874_v12 = vmul.f32 %v3825_v19, %v865_v34  ;;  %v882_v47 = vmul.f32 %v3829_v8, %v3584_v54  ;;  %v883_v18 = vmul.f32 %v3829_v8, %v3594_v33 }
 0x2ef   :  { %v856_v38 = vadd.f32 %v853_v61, %v837_v35  ;;  %v857_v37 = vadd.f32 %v854_v3, %v838_v23  ;;  %v858_v45 = vadd.f32 %v855_v56, %v839_v62  ;;  %v895_v15 = vsel %vm148_vm8, %v3831_v40, %v3840_v41 }
 0x2f0   :  { %v4151_v52 = vpop.permute.xlu0 %1327  ;;  %v884_v58 = vmul.f32 %v3829_v8, %v3597_v42  ;;  %v894_v19 = vsel %vm148_vm8, %v3840_v41, %v3838_v53  ;;  %v901_v54 = vmul.f32 %v3847_v17, %v895_v15  ;;  %v896_v33 = vsel %vm148_vm8, %v3838_v53, %v3831_v40 }
 0x2f1   :  { %v4158_v55 = vpop.permute.xlu1 %1284  ;;  %v875_v5 = vadd.f32 %v872_v60, %v856_v38  ;;  %v876_v61 = vadd.f32 %v873_v25, %v857_v37  ;;  %v902_v32 = vmul.f32 %v3847_v17, %v894_v19  ;;  %v877_v42 = vadd.f32 %v874_v12, %v858_v45 }
 0x2f2   :  { %v903_v56 = vmul.f32 %v3847_v17, %v896_v33  ;;  %v914_v41 = vsel %vm168_vm7, %v3845_v10, %v3856_v11  ;;  %v913_v6 = vsel %vm168_vm7, %v3856_v11, %v3854_v36  ;;  %v915_v17 = vsel %vm168_vm7, %v3854_v36, %v3845_v10 }
 0x2f3   :  { %v885_v8 = vadd.f32 %v882_v47, %v875_v5  ;;  %v886_v35 = vadd.f32 %v883_v18, %v876_v61  ;;  %v920_v40 = vmul.f32 %v3864_v48, %v914_v41  ;;  %v887_v53 = vadd.f32 %v884_v58, %v877_v42 }
 0x2f4   :  { %v4176_v4 = vpop.permute.xlu0 %1343  ;;  %v921_v23 = vmul.f32 %v3864_v48, %v913_v6  ;;  %v922_v25 = vmul.f32 %v3864_v48, %v915_v17  ;;  %v933_v11 = vsel %vm188_vm9, %v3862_v1, %v3871_v0  ;;  %v932_v38 = vsel %vm188_vm9, %v3871_v0, %v3869_v29 }
 0x2f5   :  { %v4183_v3 = vpop.permute.xlu1 %1295  ;;  %v904_v60 = vadd.f32 %v901_v54, %v885_v8  ;;  %v905_v34 = vadd.f32 %v902_v32, %v886_v35  ;;  %v906_v10 = vadd.f32 %v903_v56, %v887_v53  ;;  %v934_v36 = vsel %vm188_vm9, %v3869_v29, %v3862_v1 }
 0x2f6   :  { %v939_v48 = vmul.f32 %v3880_v31, %v933_v11  ;;  %v940_v47 = vmul.f32 %v3880_v31, %v932_v38  ;;  %v941_v45 = vmul.f32 %v3880_v31, %v934_v36  ;;  %v952_v0 = vsel %vm208_vm10, %v3878_v28, %v3887_v16  ;;  %v5819_v36 = vld [vmem:[#allocation8_spill] sm:$0xff] }
 0x2f7   :  { %v923_v37 = vadd.f32 %v920_v40, %v904_v60  ;;  %v951_v18 = vsel %vm208_vm10, %v3887_v16, %v3885_v50  ;;  %v924_v15 = vadd.f32 %v921_v23, %v905_v34  ;;  %v953_v1 = vsel %vm208_vm10, %v3885_v50, %v3878_v28  ;;  %v5817_v34 = vld [vmem:[#allocation24_spill] sm:$0xff] }
 0x2f8   :  { %v4200_v62 = vpop.permute.xlu0 %1347  ;;  %v958_v29 = vmul.f32 %v3896_v22, %v952_v0  ;;  %v959_v31 = vmul.f32 %v3896_v22, %v951_v18  ;;  %v925_v58 = vadd.f32 %v922_v25, %v906_v10  ;;  %v960_v19 = vmul.f32 %v3896_v22, %v953_v1  ;;  %v5818_v10 = vld [vmem:[#allocation7_spill] sm:$0xff] }
 0x2f9   :  { %v4211_v12 = vpop.permute.xlu1 %1303  ;;  %v983_v16 = vsel %vm60_vm4, %v3901_v2, %v3894_v30  ;;  %v942_v61 = vadd.f32 %v939_v48, %v923_v37  ;;  %v943_v33 = vadd.f32 %v940_v47, %v924_v15  ;;  %v982_v28 = vsel %vm60_vm4, %v3894_v30, %v3903_v14  ;;  %v5820_v37 = vld [vmem:[#allocation2_spill] sm:$0xff] }
 0x2fa   :  { %v989_v50 = vmul.f32 %v3912_v27, %v983_v16  ;;  %v944_v32 = vadd.f32 %v941_v45, %v925_v58  ;;  %v981_v22 = vsel %vm60_vm4, %v3903_v14, %v3901_v2  ;;  %v990_v42 = vmul.f32 %v3912_v27, %v982_v28 }
 0x2fb   :  { %v961_v8 = vadd.f32 %v958_v29, %v942_v61  ;;  %v962_v56 = vadd.f32 %v959_v31, %v943_v33  ;;  %v991_v41 = vmul.f32 %v3912_v27, %v981_v22  ;;  %v1003_v35 = vsel %vm78_vm3, %v3917_v49, %v3910_v20  ;;  %v5822_v22 = vld [vmem:[#allocation23_spill] sm:$0xff] }
 0x2fc   :  { %v4234_v5 = vpop.permute.xlu0 %1362  ;;  %v963_v6 = vadd.f32 %v960_v19, %v944_v32  ;;  %v1002_v40 = vsel %vm78_vm3, %v3910_v20, %v3919_v51  ;;  %v1001_v2 = vsel %vm78_vm3, %v3919_v51, %v3917_v49  ;;  %v1008_v14 = vmul.f32 %v3933_v21, %v1003_v35  ;;  %v5821_v32 = vld [vmem:[#allocation12_spill] sm:$0xff] }
 0x2fd   :  { %v4241_v54 = vpop.permute.xlu1 %1325  ;;  %v992_v53 = vadd.f32 %v989_v50, %v961_v8  ;;  %v1009_v60 = vmul.f32 %v3933_v21, %v1002_v40  ;;  %v1010_v17 = vmul.f32 %v3933_v21, %v1001_v2  ;;  %v1022_v23 = vsel %vm98_vm5, %v3938_v9, %v3931_v63  ;;  %v5823_v8 = vld [vmem:[#allocation15_spill] sm:$0xff] }
 0x2fe   :  { %v993_v20 = vadd.f32 %v990_v42, %v962_v56  ;;  %v1021_v51 = vsel %vm98_vm5, %v3931_v63, %v5817_v34  ;;  %v1020_v49 = vsel %vm98_vm5, %v5817_v34, %v3938_v9  ;;  %v1027_v25 = vmul.f32 %v3949_v43, %v1022_v23  ;;  %v5825_v23 = vld [vmem:[#allocation28_spill] sm:$0xff] }
 0x2ff   :  { %v994_v11 = vadd.f32 %v991_v41, %v963_v6  ;;  %v1028_v21 = vmul.f32 %v3949_v43, %v1021_v51  ;;  %v1029_v38 = vmul.f32 %v3949_v43, %v1020_v49  ;;  %v1041_v48 = vsel %vm118_vm6, %v5819_v36, %v5818_v10  ;;  %v5824_v41 = vld [vmem:[#allocation13_spill] sm:$0xff] }
 0x300   :  { %v4258_v30 = vpop.permute.xlu0 %1366  ;;  %v1011_v63 = vadd.f32 %v1008_v14, %v992_v53  ;;  %v1040_v9 = vsel %vm118_vm6, %v5818_v10, %v5820_v37  ;;  %v1039_v45 = vsel %vm118_vm6, %v5820_v37, %v5819_v36  ;;  %v1046_v43 = vmul.f32 %v3964_v39, %v1041_v48  ;;  %v5827_v51 = vld [vmem:[#allocation29_spill] sm:$0xff]  ;;  %v5832_v37 = vld [vmem:[#allocation30_spill] sm:$0xff] }
 0x301   :  { %v4269_v27 = vpop.permute.xlu1 %1334  ;;  %v1012_v18 = vadd.f32 %v1009_v60, %v993_v20  ;;  %v1013_v15 = vadd.f32 %v1010_v17, %v994_v11  ;;  %v1047_v1 = vmul.f32 %v3964_v39, %v1040_v9  ;;  %v1048_v29 = vmul.f32 %v3964_v39, %v1039_v45  ;;  %v5826_v20 = vld [vmem:[#allocation25_spill] sm:$0xff]  ;;  %v5829_v11 = vld [vmem:[#allocation27_spill] sm:$0xff] }
 0x302   :  { %v1030_v31 = vadd.f32 %v1027_v25, %v1011_v63  ;;  %v1056_v42 = vmul.f32 %v5822_v22, %v5821_v32  ;;  %v1057_v56 = vmul.f32 %v5822_v22, %v5823_v8  ;;  %v1058_v35 = vmul.f32 %v5822_v22, %v5824_v41  ;;  %v5828_v25 = vld [vmem:[#allocation26_spill] sm:$0xff]  ;;  %v5831_v10 = vld [vmem:[#allocation33_spill] sm:$0xff]  ;;  %v5833_v9 = vld [vmem:[#allocation31_spill] sm:$0xff] }
 0x303   :  { %v1031_v58 = vadd.f32 %v1028_v21, %v1012_v18  ;;  %v1032_v19 = vadd.f32 %v1029_v38, %v1013_v15  ;;  %v1069_v53 = vsel %vm148_vm8, %v3971_v44, %v3969_v7  ;;  %v1068_v60 = vsel %vm148_vm8, %v3969_v7, %v3980_v57  ;;  %v5837_v8 = vld [vmem:[#allocation38_spill] sm:$0xff] }
 0x304   :  { %v4292_v47 = vpop.permute.xlu0 %1381  ;;  %v1049_v61 = vadd.f32 %v1046_v43, %v1030_v31  ;;  %v1070_v17 = vsel %vm148_vm8, %v3980_v57, %v3971_v44  ;;  %v1089_v34 = vsel %vm168_vm7, %v5826_v20, %v5825_v23  ;;  %v1087_v49 = vsel %vm168_vm7, %v5827_v51, %v5826_v20  ;;  %v5830_v57 = vld [vmem:[#allocation32_spill] sm:$0xff] }
 0x305   :  { %v4303_v0 = vpop.permute.xlu1 %1345  ;;  %v1050_v28 = vadd.f32 %v1047_v1, %v1031_v58  ;;  %v1051_v50 = vadd.f32 %v1048_v29, %v1032_v19  ;;  %v1088_v7 = vsel %vm168_vm7, %v5825_v23, %v5827_v51  ;;  %v1108_v44 = vsel %vm188_vm9, %v5829_v11, %v5828_v25  ;;  %v5834_v43 = vld [vmem:[#allocation36_spill] sm:$0xff]  ;;  %v5835_v58 = vld [vmem:[#allocation34_spill] sm:$0xff] }
 0x306   :  { %v1059_v6 = vadd.f32 %v1056_v42, %v1049_v61  ;;  %v1094_v21 = vmul.f32 %v5830_v57, %v1088_v7  ;;  %v1095_v38 = vmul.f32 %v5830_v57, %v1087_v49  ;;  %v1107_v36 = vsel %vm188_vm9, %v5828_v25, %v5831_v10  ;;  %v5840_v51 = vld [vmem:[#allocation40_spill] sm:$0xff] }
 0x307   :  { %v1060_v2 = vadd.f32 %v1057_v56, %v1050_v28  ;;  %v1061_v14 = vadd.f32 %v1058_v35, %v1051_v50  ;;  %v1096_v48 = vmul.f32 %v5830_v57, %v1089_v34  ;;  %v1106_v63 = vsel %vm188_vm9, %v5831_v10, %v5829_v11  ;;  %v5836_v28 = vld [vmem:[#allocation35_spill] sm:$0xff]  ;;  %v5839_v34 = vld [vmem:[#allocation37_spill] sm:$0xff]  ;;  %v5841_v11 = vld [vmem:[#allocation44_spill] sm:$0xff] }
 0x308   :  { %v4307_v16 = vpop.permute.xlu0 %1385  ;;  %v1127_v45 = vsel %vm208_vm10, %v5833_v9, %v5832_v37  ;;  %v1113_v18 = vmul.f32 %v5834_v43, %v1107_v36  ;;  %v1114_v29 = vmul.f32 %v5834_v43, %v1106_v63  ;;  %v1115_v31 = vmul.f32 %v5834_v43, %v1108_v44  ;;  %v5842_v63 = vld [vmem:[#allocation46_spill] sm:$0xff] }
 0x309   :  { %v4309_v33 = vpop.permute.xlu1 %1353  ;;  %v1157_v19 = vsel %vm60_vm4, %v4024_v46, %v5835_v58  ;;  %v1125_v50 = vsel %vm208_vm10, %v5836_v28, %v5833_v9  ;;  %v1126_v32 = vsel %vm208_vm10, %v5832_v37, %v5836_v28  ;;  %v1134_v35 = vmul.f32 %v5837_v8, %v1127_v45  ;;  %v5843_v37 = vld [vmem:[#allocation41_spill] sm:$0xff]  ;;  %v5844_v45 = vld [vmem:[#allocation43_spill] sm:$0xff] }
 0x30a   :  { %v1132_v56 = vmul.f32 %v5837_v8, %v1126_v32  ;;  %v1133_v41 = vmul.f32 %v5837_v8, %v1125_v50  ;;  %v1177_v49 = vsel %vm78_vm3, %v5840_v51, %v5839_v34  ;;  %v1163_v44 = vmul.f32 %v5841_v11, %v1157_v19  ;;  %v5846_v50 = vld [vmem:[#allocation48_spill] sm:$0xff] }
 0x30b   :  { %v1175_v43 = vsel %vm78_vm3, %v5844_v45, %v5840_v51  ;;  %v1194_v32 = vsel %vm98_vm5, %v5846_v50, %v5843_v37 }
 0x30c   :  { %v4317_v39 = vpop.permute.xlu0 %1401 }
 0x30d   :  { %v4319_v40 = vpop.permute.xlu1 %1364 }
 0x311   :  { %v4365_v15 = vpop.permute.xlu1 %1372  ;;  %v1073_v1 = vpop.permute.xlu0 %1072 }
 0x312   :  { %v1075_v61 = vmul.f32 %v1073_v1, %v1069_v53  ;;  %v1076_v22 = vmul.f32 %v1073_v1, %v1068_v60  ;;  %v1077_v42 = vmul.f32 %v1073_v1, %v1070_v17  ;;  %v5838_v53 = vld [vmem:[#allocation42_spill] sm:$0xff] }
 0x313   :  { %v1156_v20 = vsel %vm60_vm4, %v5835_v58, %v5838_v53 }
 0x314   :  { %v1078_v23 = vadd.f32 %v1075_v61, %v1059_v6  ;;  %v1079_v7 = vadd.f32 %v1076_v22, %v1060_v2  ;;  %v1080_v60 = vadd.f32 %v1077_v42, %v1061_v14  ;;  %v1155_v6 = vsel %vm60_vm4, %v5838_v53, %v4024_v46  ;;  %v5847_v42 = vld [vmem:[#allocation39_spill] sm:$0xff] }
 0x315   :  { %v4392_v17 = vpop.permute.xlu1 %1383  ;;  %v4394_v25 = vpop.permute.xlu0 %1412  ;;  %v1164_v57 = vmul.f32 %v5841_v11, %v1156_v20  ;;  %v1165_v36 = vmul.f32 %v5841_v11, %v1155_v6  ;;  %v1196_v2 = vsel %vm98_vm5, %v5843_v37, %v5842_v63  ;;  %v1176_v46 = vsel %vm78_vm3, %v5839_v34, %v5844_v45  ;;  %v5851_v20 = vld [vmem:[#allocation20_spill] sm:$0xff] }
 0x316   :  { %v1097_v10 = vadd.f32 %v1094_v21, %v1078_v23  ;;  %v1098_v14 = vadd.f32 %v1095_v38, %v1079_v7  ;;  %v1099_v9 = vadd.f32 %v1096_v48, %v1080_v60  ;;  %v5845_v21 = vld [vmem:[#allocation45_spill] sm:$0xff]  ;;  %v1195_v22 = vsel %vm98_vm5, %v5842_v63, %v5846_v50  ;;  %v5857_v50 = vld [vmem:[#allocation4_spill] sm:$0xff] }
 0x317   :  { %v1182_v1 = vmul.f32 %v5845_v21, %v1177_v49  ;;  %v1183_v19 = vmul.f32 %v5845_v21, %v1176_v46  ;;  %v1184_v61 = vmul.f32 %v5845_v21, %v1175_v43  ;;  %v5852_v60 = vld [vmem:[#allocation49_spill] sm:$0xff] }
 0x318   :  { %v1116_v58 = vadd.f32 %v1113_v18, %v1097_v10  ;;  %v1117_v28 = vadd.f32 %v1114_v29, %v1098_v14  ;;  %v1118_v38 = vadd.f32 %v1115_v31, %v1099_v9  ;;  %v5848_v18 = vld [vmem:[#allocation47_spill] sm:$0xff]  ;;  %v5849_v29 = vld [vmem:[#allocation17_spill] sm:$0xff]  ;;  %v5850_v31 = vld [vmem:[#allocation50_spill] sm:$0xff]  ;;  %v1201_v6 = vmul.f32 %v5852_v60, %v1196_v2 }
 0x319   :  { %v4418_v48 = vpop.permute.xlu1 %1391  ;;  %v1215_v8 = vsel %vm118_vm6, %v5848_v18, %v5847_v42  ;;  %v1230_v53 = vmul.f32 %v5850_v31, %v5849_v29  ;;  %v1231_v34 = vmul.f32 %v5850_v31, %v5851_v20  ;;  %v4436_v7 = vpop.permute.xlu0 %1420  ;;  %v1202_v11 = vmul.f32 %v5852_v60, %v1195_v22  ;;  %v5853_v10 = vld [vmem:[#allocation18_spill] sm:$0xff]  ;;  %v5854_v14 = vld [vmem:[#allocation52_spill] sm:$0xff] }
 0x31a   :  { %v1135_v23 = vadd.f32 %v1132_v56, %v1116_v58  ;;  %v1136_v51 = vadd.f32 %v1133_v41, %v1117_v28  ;;  %v1137_v49 = vadd.f32 %v1134_v35, %v1118_v38  ;;  %v1232_v63 = vmul.f32 %v5850_v31, %v5853_v10  ;;  %v5855_v58 = vld [vmem:[#allocation3_spill] sm:$0xff]  ;;  %v5856_v28 = vld [vmem:[#allocation9_spill] sm:$0xff] }
 0x31b   :  { %v1203_v56 = vmul.f32 %v5852_v60, %v1194_v32  ;;  %v1214_v9 = vsel %vm118_vm6, %v5847_v42, %v5854_v14  ;;  %v1213_v2 = vsel %vm118_vm6, %v5854_v14, %v5848_v18  ;;  %v1220_v43 = vmul.f32 %v4071_v26, %v1215_v8  ;;  %v5858_v32 = vld [vmem:[#allocation51_spill] sm:$0xff]  ;;  %v5859_v42 = vld [vmem:[#allocation53_spill] sm:$0xff] }
 0x31c   :  { %v1166_v37 = vadd.f32 %v1163_v44, %v1135_v23  ;;  %v1167_v45 = vadd.f32 %v1164_v57, %v1136_v51  ;;  %v1168_v41 = vadd.f32 %v1165_v36, %v1137_v49  ;;  %v1221_v44 = vmul.f32 %v4071_v26, %v1214_v9  ;;  %v5860_v8 = vld [vmem:[#allocation57_spill] sm:$0xff]  ;;  %v5865_v9 = vld [vmem:[#allocation59_spill] sm:$0xff] }
 0x31d   :  { %v4447_v35 = vpop.permute.xlu1 %1410  ;;  %v1222_v21 = vmul.f32 %v4071_v26, %v1213_v2  ;;  %v1263_v57 = vsel %vm168_vm7, %v5856_v28, %v5855_v58  ;;  %v1244_v22 = vsel %vm148_vm8, %v5858_v32, %v5857_v50  ;;  %v1242_v18 = vsel %vm148_vm8, %v5859_v42, %v5858_v32  ;;  %v4477_v51 = vpop.permute.xlu0 %1433 }
 0x31e   :  { %v1185_v46 = vadd.f32 %v1182_v1, %v1166_v37  ;;  %v1186_v36 = vadd.f32 %v1183_v19, %v1167_v45  ;;  %v1187_v38 = vadd.f32 %v1184_v61, %v1168_v41  ;;  %v1243_v26 = vsel %vm148_vm8, %v5857_v50, %v5859_v42  ;;  %v5861_v19 = vld [vmem:[#allocation54_spill] sm:$0xff]  ;;  %v5862_v61 = vld [vmem:[#allocation55_spill] sm:$0xff] }
 0x31f   :  { %v1249_v23 = vmul.f32 %v5860_v8, %v1243_v26  ;;  %v1282_v29 = vsel %vm188_vm9, %v5862_v61, %v5861_v19  ;;  %v1250_v60 = vmul.f32 %v5860_v8, %v1242_v18  ;;  %v1251_v10 = vmul.f32 %v5860_v8, %v1244_v22  ;;  %v5863_v37 = vld [vmem:[#allocation58_spill] sm:$0xff] }
 0x320   :  { %v1204_v1 = vadd.f32 %v1201_v6, %v1185_v46  ;;  %v1205_v31 = vadd.f32 %v1202_v11, %v1186_v36  ;;  %v1206_v20 = vadd.f32 %v1203_v56, %v1187_v38  ;;  %v1261_v6 = vsel %vm168_vm7, %v5863_v37, %v5856_v28  ;;  %v5864_v56 = vld [vmem:[#allocation56_spill] sm:$0xff]  ;;  %v5866_v46 = vld [vmem:[#allocation61_spill] sm:$0xff] }
 0x321   :  { %v4479_v49 = vpop.permute.xlu1 %1414  ;;  %v1262_v11 = vsel %vm168_vm7, %v5855_v58, %v5863_v37  ;;  %v1301_v45 = vsel %vm208_vm10, %v5865_v9, %v5864_v56  ;;  %v1269_v38 = vmul.f32 %v5866_v46, %v1261_v6  ;;  %v1270_v50 = vmul.f32 %v5866_v46, %v1263_v57  ;;  %v4519_v26 = vpop.permute.xlu0 %1448 }
 0x322   :  { %v1223_v14 = vadd.f32 %v1220_v43, %v1204_v1  ;;  %v1224_v41 = vadd.f32 %v1221_v44, %v1205_v31  ;;  %v1225_v2 = vadd.f32 %v1222_v21, %v1206_v20  ;;  %v1268_v36 = vmul.f32 %v5866_v46, %v1262_v11 }
 0x323   :  { %v1280_v43 = vsel %vm188_vm9, %v4127_v24, %v5862_v61  ;;  %v1281_v58 = vsel %vm188_vm9, %v5861_v19, %v4127_v24  ;;  %v1289_v18 = vmul.f32 %v4158_v55, %v1282_v29  ;;  %v1300_v24 = vsel %vm208_vm10, %v5864_v56, %v4183_v3 }
 0x324   :  { %v1233_v28 = vadd.f32 %v1230_v53, %v1223_v14  ;;  %v1234_v32 = vadd.f32 %v1231_v34, %v1224_v41  ;;  %v1235_v44 = vadd.f32 %v1232_v63, %v1225_v2  ;;  %v1287_v22 = vmul.f32 %v4158_v55, %v1281_v58 }
 0x325   :  { %v4506_v21 = vpop.permute.xlu1 %1429  ;;  %v1288_v42 = vmul.f32 %v4158_v55, %v1280_v43  ;;  %v1331_v53 = vsel %vm60_vm4, %v4151_v52, %v4118_v13  ;;  %v1299_v1 = vsel %vm208_vm10, %v4183_v3, %v5865_v9  ;;  %v1306_v8 = vmul.f32 %v4211_v12, %v1300_v24  ;;  %v1453_v2 = vpop.permute.xlu0 %1452 }
 0x326   :  { %v1252_v57 = vadd.f32 %v1249_v23, %v1233_v28  ;;  %v1253_v34 = vadd.f32 %v1250_v60, %v1234_v32  ;;  %v1254_v63 = vadd.f32 %v1251_v10, %v1235_v44  ;;  %v1351_v55 = vsel %vm78_vm3, %v4200_v62, %v4176_v4 }
 0x327   :  { %v1307_v19 = vmul.f32 %v4211_v12, %v1299_v1  ;;  %v1308_v61 = vmul.f32 %v4211_v12, %v1301_v45  ;;  %v1329_v3 = vsel %vm60_vm4, %v4241_v54, %v4151_v52  ;;  %v1330_v60 = vsel %vm60_vm4, %v4118_v13, %v4241_v54 }
 0x328   :  { %v1271_v23 = vadd.f32 %v1268_v36, %v1252_v57  ;;  %v1272_v29 = vadd.f32 %v1269_v38, %v1253_v34  ;;  %v1273_v31 = vadd.f32 %v1270_v50, %v1254_v63  ;;  %v1370_v10 = vsel %vm98_vm5, %v4258_v30, %v4234_v5  ;;  %v5867_v63 = vld [vmem:[#allocation19_spill] sm:$0xff] }
 0x329   :  { %v1432_v20 = vpop.permute.xlu1 %1431  ;;  %v1337_v12 = vmul.f32 %v4269_v27, %v1331_v53  ;;  %v1338_v6 = vmul.f32 %v4269_v27, %v1330_v60  ;;  %v1339_v56 = vmul.f32 %v4269_v27, %v1329_v3  ;;  %v1349_v52 = vsel %vm78_vm3, %v4303_v0, %v4200_v62  ;;  %v1468_v34 = vpop.permute.xlu0 %1467 }
 0x32a   :  { %v1290_v37 = vadd.f32 %v1287_v22, %v1271_v23  ;;  %v1291_v14 = vadd.f32 %v1288_v42, %v1272_v29  ;;  %v1292_v11 = vadd.f32 %v1289_v18, %v1273_v31  ;;  %v1350_v13 = vsel %vm78_vm3, %v4176_v4, %v4303_v0  ;;  %v5869_v23 = vld [vmem:[#allocation21_spill] sm:$0xff] }
 0x32b   :  { %v1356_v9 = vmul.f32 %v4309_v33, %v1351_v55  ;;  %v1389_v45 = vsel %vm118_vm6, %v4307_v16, %v4292_v47  ;;  %v1357_v36 = vmul.f32 %v4309_v33, %v1350_v13  ;;  %v1358_v62 = vmul.f32 %v4309_v33, %v1349_v52 }
 0x32c   :  { %v1309_v54 = vadd.f32 %v1306_v8, %v1290_v37  ;;  %v1310_v41 = vadd.f32 %v1307_v19, %v1291_v14  ;;  %v1311_v27 = vadd.f32 %v1308_v61, %v1292_v11  ;;  %v1368_v4 = vsel %vm98_vm5, %v4319_v40, %v4258_v30  ;;  %v5868_v8 = vld [vmem:[#allocation22_spill] sm:$0xff] }
 0x32d   :  { %v1440_v46 = vpop.permute.xlu1 %1439  ;;  %v1369_v38 = vsel %vm98_vm5, %v4234_v5, %v4319_v40  ;;  %v1375_v50 = vmul.f32 %v4365_v15, %v1370_v10  ;;  %v1377_v32 = vmul.f32 %v4365_v15, %v1368_v4  ;;  %v1387_v33 = vsel %vm118_vm6, %v4392_v17, %v4307_v16  ;;  %v1472_v13 = vpop.permute.xlu0 %1471 }
 0x32e   :  { %v1340_v0 = vadd.f32 %v1337_v12, %v1309_v54  ;;  %v1341_v28 = vadd.f32 %v1338_v6, %v1310_v41  ;;  %v1342_v43 = vadd.f32 %v1339_v56, %v1311_v27  ;;  %v1376_v58 = vmul.f32 %v4365_v15, %v1369_v38 }
 0x32f   :  { %v1388_v44 = vsel %vm118_vm6, %v4292_v47, %v4392_v17  ;;  %v1394_v22 = vmul.f32 %v4418_v48, %v1389_v45  ;;  %v1396_v15 = vmul.f32 %v4418_v48, %v1387_v33  ;;  %v1417_v16 = vsel %vm148_vm8, %v4447_v35, %v4394_v25 }
 0x330   :  { %v1359_v30 = vadd.f32 %v1356_v9, %v1340_v0  ;;  %v1360_v5 = vadd.f32 %v1357_v36, %v1341_v28  ;;  %v1361_v40 = vadd.f32 %v1358_v62, %v1342_v43  ;;  %v1395_v57 = vmul.f32 %v4418_v48, %v1388_v44 }
 0x331   :  { %v1451_v42 = vpop.permute.xlu1 %1450  ;;  %v1416_v47 = vsel %vm148_vm8, %v4394_v25, %v4479_v49  ;;  %v1418_v17 = vsel %vm148_vm8, %v4479_v49, %v4447_v35  ;;  %v1404_v48 = vmul.f32 %v4317_v39, %v5867_v63  ;;  %v1405_v55 = vmul.f32 %v4317_v39, %v5868_v8 }
 0x332   :  { %v1378_v53 = vadd.f32 %v1375_v50, %v1359_v30  ;;  %v1379_v18 = vadd.f32 %v1376_v58, %v1360_v5  ;;  %v1380_v24 = vadd.f32 %v1377_v32, %v1361_v40  ;;  %v1406_v19 = vmul.f32 %v4317_v39, %v5869_v23 }
 0x333   :  { %v1423_v3 = vmul.f32 %v4436_v7, %v1417_v16  ;;  %v1424_v60 = vmul.f32 %v4436_v7, %v1416_v47  ;;  %v1425_v35 = vmul.f32 %v4436_v7, %v1418_v17  ;;  %v1435_v37 = vsel %vm168_vm7, %v1432_v20, %v4477_v51  ;;  %v5871_v16 = vld [vmem:[#allocation16_spill] sm:$0xff] }
 0x334   :  { %v1397_v1 = vadd.f32 %v1394_v22, %v1378_v53  ;;  %v1398_v61 = vadd.f32 %v1395_v57, %v1379_v18  ;;  %v1399_v29 = vadd.f32 %v1396_v15, %v1380_v24  ;;  %v1436_v39 = vsel %vm168_vm7, %v4506_v21, %v1432_v20  ;;  %v5870_v57 = vld [vmem:[#allocation11_spill] sm:$0xff]  ;;  %v5872_v24 = vld [vmem:[#allocation14_spill] sm:$0xff] }
 0x335   :  { %v1459_v31 = vpop.permute.xlu1 %1458  ;;  %v1437_v6 = vsel %vm168_vm7, %v4477_v51, %v4506_v21  ;;  %v1442_v14 = vmul.f32 %v1440_v46, %v1436_v39  ;;  %v1443_v11 = vmul.f32 %v1440_v46, %v1435_v37  ;;  %v1455_v54 = vsel %vm188_vm9, %v4519_v26, %v1451_v42 }
 0x336   :  { %v1407_v25 = vadd.f32 %v1404_v48, %v1397_v1  ;;  %v1408_v49 = vadd.f32 %v1405_v55, %v1398_v61  ;;  %v1409_v10 = vadd.f32 %v1406_v19, %v1399_v29  ;;  %v1444_v52 = vmul.f32 %v1440_v46, %v1437_v6 }
 0x337   :  { %v1456_v20 = vsel %vm188_vm9, %v1453_v2, %v4519_v26  ;;  %v1454_v41 = vsel %vm188_vm9, %v1451_v42, %v1453_v2  ;;  %v1461_v51 = vmul.f32 %v1459_v31, %v1455_v54  ;;  %v1475_v46 = vsel %vm208_vm10, %v1472_v13, %v1468_v34 }
 0x338   :  { %v1426_v12 = vadd.f32 %v1423_v3, %v1407_v25  ;;  %v1427_v56 = vadd.f32 %v1424_v60, %v1408_v49  ;;  %v1428_v7 = vadd.f32 %v1425_v35, %v1409_v10  ;;  %v1462_v36 = vmul.f32 %v1459_v31, %v1454_v41 }
 0x339   :  { %v1470_v9 = vpop.permute.xlu1 %1469  ;;  %v1463_v62 = vmul.f32 %v1459_v31, %v1456_v20 }
 0x33a   :  { %v1445_v45 = vadd.f32 %v1442_v14, %v1426_v12  ;;  %v1446_v21 = vadd.f32 %v1443_v11, %v1427_v56  ;;  %v1447_v27 = vadd.f32 %v1444_v52, %v1428_v7  ;;  %v1473_v50 = vsel %vm208_vm10, %v1470_v9, %v1472_v13  ;;  %v4692_v14 = vld [vmem:[%s5461_s1 + $0x40] sm:$0xff] }
 0x33b   :  { %v1474_v26 = vsel %vm208_vm10, %v1468_v34, %v1470_v9 }
 0x33c   :  { %v1464_v4 = vadd.f32 %v1461_v51, %v1445_v45  ;;  %v1465_v0 = vadd.f32 %v1462_v36, %v1446_v21  ;;  %v1466_v38 = vadd.f32 %v1463_v62, %v1447_v27 }
 0x33d   :  { %v1478_v28 = vpop.permute.xlu1 %1477 }
 0x33e   :  { %v1480_v43 = vmul.f32 %v1478_v28, %v1474_v26  ;;  %v1481_v2 = vmul.f32 %v1478_v28, %v1473_v50  ;;  %v1482_v58 = vmul.f32 %v1478_v28, %v1475_v46  ;;  %v5879_v50 = vmov 3  }
 0x33f   :  { %v5880_v26 = vmov 5   ;;  %v5881_v28 = vmov 6  }
 0x340   :  { %v1483_v32 = vadd.f32 %v1480_v43, %v1464_v4  ;;  %v1484_v33 = vadd.f32 %v1481_v2, %v1465_v0  ;;  %v1485_v30 = vadd.f32 %v1482_v58, %v1466_v38  ;;  %v5877_v0 = vmov 1  }
 0x341   :  { %v5878_v38 = vmov 2   ;;  %v5882_v2 = vmov 7  }
 0x342   :  { %vm1486_vm14 = vcmp.ge.f32.partialorder %v1483_v32, 0.0  ;;  %vm1487_vm15 = vcmp.ge.f32.partialorder %v1484_v33, 0.0  ;;  %vm1488_vm11 = vcmp.ge.f32.partialorder %v1485_v30, 0.0  ;;  %v1489_v44 = vmul.f32 0.2, %v1483_v32 }
 0x343   :  { %v1490_v5 = vmul.f32 0.2, %v1484_v33  ;;  %v1491_v40 = vmul.f32 0.2, %v1485_v30 }
 0x344   :  { %v1492_v22 = vsel %vm1486_vm14, %v1483_v32, %v1489_v44  ;;  %v5884_v44 = vmov 8  }
 0x345   :  { %v1493_v42 = vsel %vm1487_vm15, %v1484_v33, %v1490_v5  ;;  %v1494_v53 = vsel %vm1488_vm11, %v1485_v30, %v1491_v40  ;;  %v4630_v15 = vmul.f32 %v1492_v22, %v5870_v57  ;;  %v5886_v40 = vmov 0   ;;  %v2236_v22 = vld [vmem:[%s5461_s1 + $0x48] sm:$0xff] }
 0x346   :  { %v1496_v18 = vmul.f32 %v1493_v42, %v5871_v16  ;;  %v4634_v47 = vmul.f32 %v1494_v53, %v5872_v24  ;;  %v5887_v42 = vmov 4  }
 0x347   :  { %v4637_v17 = vrot.slane %v4630_v15, 6  ;;  %v4640_v34 = vrot.slane %v4630_v15, 4  ;;  %v4646_v55 = vrot.slane %v4630_v15, 2 }
 0x348   :  { %v1502_v63 = vrot.slane %v1496_v18, 6  ;;  %v1508_v48 = vrot.slane %v1496_v18, 4  ;;  %v1514_v1 = vrot.slane %v1496_v18, 2  ;;  %v4643_v8 = vrot.slane %v4634_v47, 6 }
 0x349   :  { %v1519_v23 = vsel %vm39_vm0, %v4630_v15, %v4637_v17  ;;  %v4652_v19 = vrot.slane %v4634_v47, 4  ;;  %v4655_v61 = vrot.slane %v4634_v47, 2  ;;  %v1864_v39 = vsel %vm39_vm0, %v4640_v34, %v4646_v55 }
 0x34a   :  { %v1522_v29 = vsel %vm43_vm1, %v1519_v23, %v4640_v34  ;;  %v1520_v31 = vsel %vm39_vm0, %v1496_v18, %v1502_v63  ;;  %v1521_v25 = vsel %vm39_vm0, %v4634_v47, %v4643_v8  ;;  %v1691_v10 = vsel %vm39_vm0, %v1514_v1, %v1496_v18 }
 0x34b   :  { %v4665_v3 = vsel %vm47_vm2, %v1522_v29, %v4646_v55  ;;  %v1523_v60 = vsel %vm43_vm1, %v1520_v31, %v1508_v48  ;;  %v1524_v35 = vsel %vm43_vm1, %v1521_v25, %v4652_v19  ;;  %v1694_v37 = vsel %vm43_vm1, %v1691_v10, %v1502_v63 }
 0x34c   :  { %1530 = vrot.lane.b32.xlu0 %v4665_v3, %s2356_s0  ;;  %v4673_v49 = vsel %vm47_vm2, %v1523_v60, %v1514_v1  ;;  %v1866_v12 = vsel %vm39_vm0, %v4652_v19, %v4655_v61  ;;  %v4687_v6 = vsel %vm47_vm2, %v1524_v35, %v4655_v61  ;;  %v4695_v11 = vsel %vm47_vm2, %v1694_v37, %v1508_v48 }
 0x34d   :  { %1532 = vrot.lane.b32.xlu1 %v4673_v49, %s2356_s0  ;;  %5873 = vst [vmem:[#allocation60_spill] sm:$0xff] %v4695_v11  ;;  %v1867_v56 = vsel %vm43_vm1, %v1864_v39, %v4630_v15  ;;  %v1869_v7 = vsel %vm43_vm1, %v1866_v12, %v4634_v47  ;;  %v1865_v54 = vsel %vm39_vm0, %v1508_v48, %v1514_v1 }
 0x34e   :  { %v4703_v52 = vsel %vm47_vm2, %v1867_v56, %v4637_v17  ;;  %v4707_v13 = vsel %vm47_vm2, %v1869_v7, %v4643_v8  ;;  %v2038_v9 = vsel %vm39_vm0, %v4637_v17, %v4640_v34  ;;  %v1868_v20 = vsel %vm43_vm1, %v1865_v54, %v1496_v18 }
 0x34f   :  { %5874 = vst [vmem:[#allocation62_spill] sm:$0xff] %v4703_v52  ;;  %5875 = vst [vmem:[#allocation63_spill] sm:$0xff] %v4707_v13  ;;  %v2041_v45 = vsel %vm43_vm1, %v2038_v9, %v4646_v55  ;;  %v2040_v41 = vsel %vm39_vm0, %v4643_v8, %v4652_v19  ;;  %v2039_v51 = vsel %vm39_vm0, %v1502_v63, %v1508_v48  ;;  %v2237_v48 = vld [vmem:[%s5461_s1 + $0x50] sm:$0xff] }
 0x350   :  { %1534 = vrot.lane.b32.xlu0 %v4687_v6, %s2356_s0  ;;  %v4724_v21 = vsel %vm47_vm2, %v1868_v20, %v1502_v63  ;;  %v4728_v27 = vsel %vm47_vm2, %v2041_v45, %v4630_v15  ;;  %v2043_v36 = vsel %vm43_vm1, %v2040_v41, %v4655_v61  ;;  %v2042_v62 = vsel %vm43_vm1, %v2039_v51, %v1514_v1 }
 0x351   :  { %1541 = vperm.xlu1 %2319, %v4692_v14   ;;  %5876 = vst [vmem:[#allocation64_spill] sm:$0xff] %v4724_v21  ;;  %v4735_v46 = vsel %vm47_vm2, %v2043_v36, %v4634_v47  ;;  %v4738_v4 = vsel %vm47_vm2, %v2042_v62, %v1496_v18  ;;  %v1690_v43 = vsel %vm39_vm0, %v4646_v55, %v4630_v15 }
 0x352   :  { %v1693_v58 = vsel %vm43_vm1, %v1690_v43, %v4637_v17  ;;  %v1692_v32 = vsel %vm39_vm0, %v4655_v61, %v4634_v47 }
 0x353   :  { %v4802_v33 = vsel %vm47_vm2, %v1693_v58, %v4640_v34  ;;  %v1695_v30 = vsel %vm43_vm1, %v1692_v32, %v4643_v8 }
 0x354   :  { %1547 = vrot.lane.b32.xlu0 %v4665_v3, %s2357_s20  ;;  %5883 = vst [vmem:[#allocation5_spill] sm:$0xff] %v4802_v33  ;;  %v4813_v5 = vsel %vm47_vm2, %v1695_v30, %v4652_v19 }
 0x355   :  { %1549 = vrot.lane.b32.xlu1 %v4673_v49, %s2357_s20  ;;  %5885 = vst [vmem:[#allocation10_spill] sm:$0xff] %v4813_v5 }
 0x356   :  { %2320 = vset.pattern.permute.xlu1 %v5877_v0 }
 0x358   :  { %1551 = vrot.lane.b32.xlu0 %v4687_v6, %s2357_s20 }
 0x359   :  { %1557 = vperm.xlu1 %2320, %v4692_v14  }
 0x35c   :  { %1566 = vrot.lane.b32.xlu0 %v4665_v3, %s2358_s21 }
 0x35d   :  { %1568 = vrot.lane.b32.xlu1 %v4673_v49, %s2358_s21 }
 0x35e   :  { %2321 = vset.pattern.permute.xlu1 %v5878_v38 }
 0x360   :  { %1570 = vrot.lane.b32.xlu0 %v4687_v6, %s2358_s21 }
 0x361   :  { %1576 = vperm.xlu1 %2321, %v4692_v14  }
 0x364   :  { %1585 = vrot.lane.b32.xlu0 %v4665_v3, %s2360_s22 }
 0x365   :  { %1587 = vrot.lane.b32.xlu1 %v4673_v49, %s2360_s22 }
 0x366   :  { %2322 = vset.pattern.permute.xlu1 %v5879_v50 }
 0x368   :  { %1589 = vrot.lane.b32.xlu0 %v4687_v6, %s2360_s22 }
 0x369   :  { %1595 = vperm.xlu1 %2322, %v4692_v14  }
 0x36c   :  { %1618 = vrot.lane.b32.xlu0 %v4687_v6, %s2362_s23 }
 0x36d   :  { %1614 = vrot.lane.b32.xlu1 %v4665_v3, %s2362_s23 }
 0x36e   :  { %2323 = vset.pattern.permute.xlu1 %v5880_v26 }
 0x370   :  { %1633 = vrot.lane.b32.xlu0 %v4665_v3, %s2363_s24 }
 0x371   :  { %1616 = vrot.lane.b32.xlu1 %v4673_v49, %s2362_s23 }
 0x374   :  { %1637 = vrot.lane.b32.xlu0 %v4687_v6, %s2363_s24 }
 0x375   :  { %1624 = vperm.xlu1 %2323, %v4692_v14  }
 0x378   :  { %1652 = vrot.lane.b32.xlu0 %v4665_v3, %s2365_s25 }
 0x379   :  { %1635 = vrot.lane.b32.xlu1 %v4673_v49, %s2363_s24 }
 0x37a   :  { %2324 = vset.pattern.permute.xlu1 %v5881_v28 }
 0x37c   :  { %1656 = vrot.lane.b32.xlu0 %v4687_v6, %s2365_s25 }
 0x37d   :  { %1643 = vperm.xlu1 %2324, %v4692_v14  }
 0x380   :  { %1671 = vrot.lane.b32.xlu0 %v4665_v3, %s2367_s26 }
 0x381   :  { %1654 = vrot.lane.b32.xlu1 %v4673_v49, %s2365_s25 }
 0x382   :  { %2325 = vset.pattern.permute.xlu1 %v5882_v2 }
 0x384   :  { %1675 = vrot.lane.b32.xlu0 %v4687_v6, %s2367_s26 }
 0x385   :  { %1662 = vperm.xlu1 %2325, %v4692_v14  }
 0x388   :  { %1701 = vrot.lane.b32.xlu0 %v4802_v33, %s2356_s0 }
 0x389   :  { %1673 = vrot.lane.b32.xlu1 %v4673_v49, %s2367_s26 }
 0x38a   :  { %2326 = vset.pattern.permute.xlu1 %v5884_v44 }
 0x38c   :  { %1705 = vrot.lane.b32.xlu0 %v4813_v5, %s2356_s0 }
 0x38d   :  { %1681 = vperm.xlu1 %2326, %v4692_v14  }
 0x390   :  { %1721 = vrot.lane.b32.xlu0 %v4802_v33, %s2357_s20 }
 0x391   :  { %1703 = vrot.lane.b32.xlu1 %v4695_v11, %s2356_s0 }
 0x392   :  { %2327 = vset.pattern.permute.xlu1 %v5886_v40 }
 0x394   :  { %1725 = vrot.lane.b32.xlu0 %v4813_v5, %s2357_s20 }
 0x395   :  { %1712 = vperm.xlu1 %2327, %v2236_v22  }
 0x398   :  { %1740 = vrot.lane.b32.xlu0 %v4802_v33, %s2358_s21 }
 0x399   :  { %1723 = vrot.lane.b32.xlu1 %v4695_v11, %s2357_s20 }
 0x39a   :  { %2328 = vset.pattern.permute.xlu1 %v5877_v0 }
 0x39c   :  { %1744 = vrot.lane.b32.xlu0 %v4813_v5, %s2358_s21 }
 0x39d   :  { %1731 = vperm.xlu1 %2328, %v2236_v22  }
 0x3a0   :  { %1759 = vrot.lane.b32.xlu0 %v4802_v33, %s2360_s22 }
 0x3a1   :  { %1742 = vrot.lane.b32.xlu1 %v4695_v11, %s2358_s21 }
 0x3a2   :  { %2329 = vset.pattern.permute.xlu1 %v5878_v38 }
 0x3a4   :  { %1763 = vrot.lane.b32.xlu0 %v4813_v5, %s2360_s22 }
 0x3a5   :  { %1750 = vperm.xlu1 %2329, %v2236_v22  }
 0x3a8   :  { %1790 = vrot.lane.b32.xlu0 %v4695_v11, %s2362_s23 }
 0x3a9   :  { %1761 = vrot.lane.b32.xlu1 %v4695_v11, %s2360_s22 }
 0x3aa   :  { %2330 = vset.pattern.permute.xlu1 %v5879_v50 }
 0x3ac   :  { %1798 = vperm.xlu0 %2315, %v2236_v22  }
 0x3ad   :  { %1769 = vperm.xlu1 %2330, %v2236_v22  }
 0x3b0   :  { %2331 = vset.pattern.permute.xlu0 %v5887_v42 }
 0x3b1   :  { %1788 = vrot.lane.b32.xlu1 %v4802_v33, %s2362_s23  ;;  %1605 = vperm.xlu0 %2331, %v4692_v14  }
 0x3b2   :  { %2332 = vset.pattern.permute.xlu1 %v5881_v28 }
 0x3b5   :  { %1792 = vrot.lane.b32.xlu1 %v4813_v5, %s2362_s23  ;;  %1779 = vperm.xlu0 %2331, %v2236_v22  }
 0x3b9   :  { %1807 = vrot.lane.b32.xlu1 %v4802_v33, %s2363_s24  ;;  %1811 = vrot.lane.b32.xlu0 %v4813_v5, %s2363_s24 }
 0x3bd   :  { %1809 = vrot.lane.b32.xlu1 %v4695_v11, %s2363_s24  ;;  %1826 = vrot.lane.b32.xlu0 %v4802_v33, %s2365_s25 }
 0x3be   :  { %v4862_v53 = vpop.permute.xlu0 %1530 }
 0x3bf   :  { %v4879_v18 = vpop.permute.xlu1 %1532 }
 0x3c1   :  { %1817 = vperm.xlu1 %2332, %v2236_v22   ;;  %1830 = vrot.lane.b32.xlu0 %v4813_v5, %s2365_s25 }
 0x3c2   :  { %v4866_v57 = vpop.permute.xlu0 %1534 }
 0x3c5   :  { %1828 = vrot.lane.b32.xlu1 %v4695_v11, %s2365_s25  ;;  %1845 = vrot.lane.b32.xlu0 %v4802_v33, %s2367_s26 }
 0x3c6   :  { %v4872_v15 = vpop.permute.xlu0 %1547  ;;  %2333 = vset.pattern.permute.xlu1 %v5882_v2 }
 0x3c9   :  { %1836 = vperm.xlu1 %2333, %v2236_v22   ;;  %1849 = vrot.lane.b32.xlu0 %v4813_v5, %s2367_s26 }
 0x3ca   :  { %v4877_v16 = vpop.permute.xlu0 %1551 }
 0x3cd   :  { %1847 = vrot.lane.b32.xlu1 %v4695_v11, %s2367_s26  ;;  %1875 = vrot.lane.b32.xlu0 %v4703_v52, %s2356_s0 }
 0x3ce   :  { %v4885_v24 = vpop.permute.xlu0 %1566  ;;  %2334 = vset.pattern.permute.xlu1 %v5884_v44 }
 0x3d0   :  { %v4888_v47 = vpop.permute.xlu1 %1541 }
 0x3d1   :  { %1855 = vperm.xlu1 %2334, %v2236_v22   ;;  %1879 = vrot.lane.b32.xlu0 %v4707_v13, %s2356_s0 }
 0x3d2   :  { %v4892_v17 = vpop.permute.xlu0 %1570 }
 0x3d4   :  { %v4894_v34 = vpop.permute.xlu1 %1549 }
 0x3d5   :  { %1877 = vrot.lane.b32.xlu1 %v4724_v21, %s2356_s0  ;;  %1895 = vrot.lane.b32.xlu0 %v4703_v52, %s2357_s20 }
 0x3d6   :  { %v4900_v63 = vpop.permute.xlu0 %1585  ;;  %2335 = vset.pattern.permute.xlu1 %v5886_v40 }
 0x3d8   :  { %v4906_v1 = vpop.permute.xlu1 %1557 }
 0x3d9   :  { %1886 = vperm.xlu1 %2335, %v2237_v48   ;;  %1899 = vrot.lane.b32.xlu0 %v4707_v13, %s2357_s20 }
 0x3da   :  { %v4910_v8 = vpop.permute.xlu0 %1589 }
 0x3dc   :  { %v4912_v55 = vpop.permute.xlu1 %1568 }
 0x3dd   :  { %1897 = vrot.lane.b32.xlu1 %v4724_v21, %s2357_s20  ;;  %1914 = vrot.lane.b32.xlu0 %v4703_v52, %s2358_s21 }
 0x3de   :  { %v4918_v23 = vpop.permute.xlu0 %1618  ;;  %2336 = vset.pattern.permute.xlu1 %v5877_v0 }
 0x3e0   :  { %v4921_v19 = vpop.permute.xlu1 %1576 }
 0x3e1   :  { %1905 = vperm.xlu1 %2336, %v2237_v48   ;;  %1918 = vrot.lane.b32.xlu0 %v4707_v13, %s2358_s21 }
 0x3e2   :  { %v4925_v61 = vpop.permute.xlu0 %1633 }
 0x3e4   :  { %v4927_v29 = vpop.permute.xlu1 %1587 }
 0x3e5   :  { %1916 = vrot.lane.b32.xlu1 %v4724_v21, %s2358_s21  ;;  %1933 = vrot.lane.b32.xlu0 %v4703_v52, %s2360_s22 }
 0x3e6   :  { %v4933_v31 = vpop.permute.xlu0 %1637  ;;  %2337 = vset.pattern.permute.xlu1 %v5878_v38 }
 0x3e8   :  { %v4936_v25 = vpop.permute.xlu1 %1595 }
 0x3e9   :  { %1924 = vperm.xlu1 %2337, %v2237_v48   ;;  %1937 = vrot.lane.b32.xlu0 %v4707_v13, %s2360_s22 }
 0x3ea   :  { %v4940_v60 = vpop.permute.xlu0 %1652 }
 0x3ec   :  { %v4942_v35 = vpop.permute.xlu1 %1614 }
 0x3ed   :  { %1935 = vrot.lane.b32.xlu1 %v4724_v21, %s2360_s22  ;;  %1953 = vperm.xlu0 %2331, %v2237_v48  }
 0x3ee   :  { %v4946_v10 = vpop.permute.xlu0 %1656  ;;  %2338 = vset.pattern.permute.xlu1 %v5879_v50 }
 0x3f0   :  { %v4949_v37 = vpop.permute.xlu1 %1616 }
 0x3f1   :  { %1943 = vperm.xlu1 %2338, %v2237_v48   ;;  %1966 = vrot.lane.b32.xlu0 %v4707_v13, %s2362_s23 }
 0x3f2   :  { %v4953_v39 = vpop.permute.xlu0 %1671  ;;  %2342 = vset.pattern.permute.xlu0 %v5884_v44 }
 0x3f4   :  { %v4956_v12 = vpop.permute.xlu1 %1624 }
 0x3f5   :  { %1962 = vrot.lane.b32.xlu1 %v4703_v52, %s2362_s23  ;;  %1981 = vrot.lane.b32.xlu0 %v4703_v52, %s2363_s24 }
 0x3f6   :  { %v4962_v14 = vpop.permute.xlu0 %1675  ;;  %2339 = vset.pattern.permute.xlu1 %v5880_v26 }
 0x3f8   :  { %v4965_v56 = vpop.permute.xlu1 %1635 }
 0x3f9   :  { %1964 = vrot.lane.b32.xlu1 %v4724_v21, %s2362_s23  ;;  %1985 = vrot.lane.b32.xlu0 %v4707_v13, %s2363_s24 }
 0x3fa   :  { %v4971_v7 = vpop.permute.xlu0 %1701 }
 0x3fc   :  { %v4973_v54 = vpop.permute.xlu1 %1643 }
 0x3fd   :  { %1972 = vperm.xlu1 %2339, %v2237_v48   ;;  %2000 = vrot.lane.b32.xlu0 %v4703_v52, %s2365_s25 }
 0x3fe   :  { %v4977_v9 = vpop.permute.xlu0 %1705 }
 0x3ff   :  { %5888 = vst [vmem:[#allocation6_spill] sm:$0xff] %v4977_v9  ;;  %v4983_v20 = vsel %vm60_vm4, %v4977_v9, %v4971_v7 }
 0x400   :  { %5889 = vst [vmem:[#allocation24_spill] sm:$0xff] %v4983_v20  ;;  %v4985_v45 = vpop.permute.xlu1 %1654 }
 0x401   :  { %1983 = vrot.lane.b32.xlu1 %v4724_v21, %s2363_s24  ;;  %2004 = vrot.lane.b32.xlu0 %v4707_v13, %s2365_s25 }
 0x402   :  { %v1722_v41 = vpop.permute.xlu0 %1721  ;;  %2340 = vset.pattern.permute.xlu1 %v5881_v28 }
 0x404   :  { %v4992_v51 = vpop.permute.xlu1 %1662 }
 0x405   :  { %1991 = vperm.xlu1 %2340, %v2237_v48   ;;  %2019 = vrot.lane.b32.xlu0 %v4703_v52, %s2367_s26 }
 0x406   :  { %v1726_v36 = vpop.permute.xlu0 %1725 }
 0x407   :  { %v1729_v62 = vsel %vm78_vm3, %v1726_v36, %v1722_v41 }
 0x408   :  { %v4998_v43 = vpop.permute.xlu1 %1673 }
 0x409   :  { %2002 = vrot.lane.b32.xlu1 %v4724_v21, %s2365_s25  ;;  %2029 = vperm.xlu0 %2342, %v2237_v48  }
 0x40a   :  { %v1741_v58 = vpop.permute.xlu0 %1740  ;;  %2341 = vset.pattern.permute.xlu1 %v5882_v2 }
 0x40c   :  { %v5003_v32 = vpop.permute.xlu1 %1681 }
 0x40d   :  { %2010 = vperm.xlu1 %2341, %v2237_v48   ;;  %2023 = vrot.lane.b32.xlu0 %v4707_v13, %s2367_s26  ;;  %v5020_v48 = vld [vmem:[%s5461_s1 + $0x58] sm:$0xff] }
 0x40e   :  { %v1745_v30 = vpop.permute.xlu0 %1744  ;;  %2350 = vset.pattern.permute.xlu0 %v5882_v2 }
 0x40f   :  { %v1748_v22 = vsel %vm98_vm5, %v1745_v30, %v1741_v58 }
 0x410   :  { %v5010_v52 = vpop.permute.xlu1 %1703 }
 0x411   :  { %2021 = vrot.lane.b32.xlu1 %v4724_v21, %s2367_s26  ;;  %2049 = vrot.lane.b32.xlu0 %v4728_v27, %s2356_s0 }
 0x412   :  { %v1760_v5 = vpop.permute.xlu0 %1759  ;;  %2343 = vset.pattern.permute.xlu1 %v5886_v40 }
 0x414   :  { %v5022_v2 = vpop.permute.xlu1 %1712 }
 0x415   :  { %5890 = vst [vmem:[#allocation7_spill] sm:$0xff] %v5022_v2  ;;  %2060 = vperm.xlu1 %2343, %v5020_v48   ;;  %2053 = vrot.lane.b32.xlu0 %v4735_v46, %s2356_s0 }
 0x416   :  { %v1764_v13 = vpop.permute.xlu0 %1763 }
 0x417   :  { %v5029_v21 = vsel %vm118_vm6, %v1764_v13, %v1760_v5 }
 0x418   :  { %v1724_v11 = vpop.permute.xlu1 %1723 }
 0x419   :  { %v1727_v40 = vsel %vm78_vm3, %v1724_v11, %v1726_v36  ;;  %v1728_v33 = vsel %vm78_vm3, %v1722_v41, %v1724_v11  ;;  %2344 = vset.pattern.permute.xlu1 %v5877_v0  ;;  %2069 = vrot.lane.b32.xlu0 %v4728_v27, %s2357_s20 }
 0x41a   :  { %2079 = vperm.xlu1 %2344, %v5020_v48  }
 0x41c   :  { %v1732_v28 = vpop.permute.xlu1 %1731 }
 0x41d   :  { %v5039_v2 = vmul.f32 %v1732_v28, %v1729_v62  ;;  %v5041_v20 = vmul.f32 %v1732_v28, %v1728_v33  ;;  %v5043_v9 = vmul.f32 %v1732_v28, %v1727_v40  ;;  %2073 = vrot.lane.b32.xlu0 %v4735_v46, %s2357_s20  ;;  %v1555_v28 = vsel %vm78_vm3, %v4877_v16, %v4872_v15 }
 0x41e   :  { %2345 = vset.pattern.permute.xlu1 %v5878_v38  ;;  %v1537_v38 = vsel %vm60_vm4, %v4862_v53, %v4879_v18  ;;  %v1538_v33 = vsel %vm60_vm4, %v4866_v57, %v4862_v53  ;;  %v1560_v36 = vmul.f32 %v4906_v1, %v1555_v28  ;;  %v1536_v62 = vsel %vm60_vm4, %v4879_v18, %v4866_v57 }
 0x41f   :  { %2098 = vperm.xlu1 %2345, %v5020_v48   ;;  %v1553_v40 = vsel %vm78_vm3, %v4894_v34, %v4877_v16 }
 0x420   :  { %v1743_v11 = vpop.permute.xlu1 %1742 }
 0x421   :  { %v1746_v0 = vsel %vm98_vm5, %v1743_v11, %v1745_v30  ;;  %v1747_v41 = vsel %vm98_vm5, %v1741_v58, %v1743_v11  ;;  %2088 = vrot.lane.b32.xlu0 %v4728_v27, %s2358_s21  ;;  %v1544_v58 = vmul.f32 %v4888_v47, %v1538_v33  ;;  %v1545_v30 = vmul.f32 %v4888_v47, %v1537_v38 }
 0x422   :  { %v1554_v11 = vsel %vm78_vm3, %v4872_v15, %v4894_v34  ;;  %v1546_v38 = vmul.f32 %v4888_v47, %v1536_v62  ;;  %v1562_v15 = vmul.f32 %v4906_v1, %v1553_v40  ;;  %v1573_v47 = vsel %vm98_vm5, %v4885_v24, %v4912_v55 }
 0x423   :  { %2051 = vrot.lane.b32.xlu1 %v4738_v4, %s2356_s0  ;;  %v1561_v16 = vmul.f32 %v4906_v1, %v1554_v11  ;;  %v1563_v34 = vadd.f32 %v1560_v36, %v1544_v58  ;;  %v1593_v1 = vsel %vm118_vm6, %v4910_v8, %v4900_v63  ;;  %v1580_v33 = vmul.f32 %v4921_v19, %v1573_v47 }
 0x424   :  { %v1751_v53 = vpop.permute.xlu1 %1750  ;;  %2346 = vset.pattern.permute.xlu1 %v5879_v50  ;;  %v1574_v50 = vsel %vm98_vm5, %v4892_v17, %v4885_v24  ;;  %v1591_v24 = vsel %vm118_vm6, %v4927_v29, %v4910_v8  ;;  %v1592_v36 = vsel %vm118_vm6, %v4900_v63, %v4927_v29  ;;  %v1598_v62 = vmul.f32 %v4936_v25, %v1593_v1 }
 0x425   :  { %v5085_v28 = vmul.f32 %v1751_v53, %v1748_v22  ;;  %v5087_v57 = vmul.f32 %v1751_v53, %v1747_v41  ;;  %v5089_v18 = vmul.f32 %v1751_v53, %v1746_v0  ;;  %2092 = vrot.lane.b32.xlu0 %v4735_v46, %s2358_s21  ;;  %v1572_v22 = vsel %vm98_vm5, %v4912_v55, %v4892_v17  ;;  %v5109_v41 = vpop.permute.xlu0 %1790 }
 0x426   :  { %v1579_v0 = vmul.f32 %v4921_v19, %v1574_v50  ;;  %v1581_v17 = vmul.f32 %v4921_v19, %v1572_v22  ;;  %v1564_v19 = vadd.f32 %v1561_v16, %v1545_v30  ;;  %v1565_v53 = vadd.f32 %v1562_v15, %v1546_v38 }
 0x427   :  { %2117 = vperm.xlu1 %2346, %v5020_v48   ;;  %v1599_v8 = vmul.f32 %v4936_v25, %v1592_v36  ;;  %v1600_v11 = vmul.f32 %v4936_v25, %v1591_v24  ;;  %v1620_v15 = vsel %vm148_vm8, %v4949_v37, %v4918_v23  ;;  %v1622_v47 = vsel %vm148_vm8, %v4918_v23, %v4942_v35 }
 0x428   :  { %v1762_v55 = vpop.permute.xlu1 %1761  ;;  %v1582_v50 = vadd.f32 %v1579_v0, %v1563_v34  ;;  %v1583_v29 = vadd.f32 %v1580_v33, %v1564_v19  ;;  %v1584_v22 = vadd.f32 %v1581_v17, %v1565_v53  ;;  %v1660_v0 = vsel %vm188_vm9, %v4946_v10, %v4940_v60 }
 0x429   :  { %v1765_v58 = vsel %vm118_vm6, %v1762_v55, %v1764_v13  ;;  %v1766_v40 = vsel %vm118_vm6, %v1760_v5, %v1762_v55  ;;  %2107 = vrot.lane.b32.xlu0 %v4728_v27, %s2360_s22  ;;  %v1641_v13 = vsel %vm168_vm7, %v4933_v31, %v4925_v61  ;;  %v1628_v33 = vmul.f32 %v4956_v12, %v1620_v15 }
 0x42a   :  { %v1601_v16 = vadd.f32 %v1598_v62, %v1582_v50  ;;  %v1603_v34 = vadd.f32 %v1600_v11, %v1584_v22  ;;  %v1679_v17 = vsel %vm208_vm10, %v4962_v14, %v4953_v39  ;;  %v1639_v23 = vsel %vm168_vm7, %v4965_v56, %v4933_v31 }
 0x42b   :  { %2071 = vrot.lane.b32.xlu1 %v4738_v4, %s2357_s20  ;;  %v1799_v63 = vpop.permute.xlu0 %1798  ;;  %v1648_v53 = vmul.f32 %v4973_v54, %v1641_v13 }
 0x42c   :  { %v1770_v5 = vpop.permute.xlu1 %1769  ;;  %2347 = vset.pattern.permute.xlu1 %v5887_v42  ;;  %v1621_v42 = vsel %vm148_vm8, %v4942_v35, %v4949_v37  ;;  %v1629_v37 = vmul.f32 %v4956_v12, %v1622_v47  ;;  %v1640_v35 = vsel %vm168_vm7, %v4925_v61, %v4965_v56  ;;  %v1658_v61 = vsel %vm188_vm9, %v4985_v45, %v4946_v10 }
 0x42d   :  { %v5143_v30 = vmul.f32 %v1770_v5, %v5029_v21  ;;  %v5145_v38 = vmul.f32 %v1770_v5, %v1766_v40  ;;  %v5147_v25 = vmul.f32 %v1770_v5, %v1765_v58  ;;  %2111 = vrot.lane.b32.xlu0 %v4735_v46, %s2360_s22  ;;  %v1602_v21 = vadd.f32 %v1599_v8, %v1583_v29 }
 0x42e   :  { %v1627_v1 = vmul.f32 %v4956_v12, %v1621_v42  ;;  %v1646_v31 = vmul.f32 %v4973_v54, %v1640_v35  ;;  %v1647_v40 = vmul.f32 %v4973_v54, %v1639_v23  ;;  %v1666_v11 = vmul.f32 %v4992_v51, %v1658_v61  ;;  %v5893_v23 = vld [vmem:[#allocation7_spill] sm:$0xff] }
 0x42f   :  { %2127 = vperm.xlu1 %2347, %v5020_v48   ;;  %v1667_v10 = vmul.f32 %v4992_v51, %v1660_v0  ;;  %v1677_v54 = vsel %vm208_vm10, %v4998_v43, %v4962_v14 }
 0x430   :  { %v1789_v24 = vpop.permute.xlu1 %1788  ;;  %v1606_v55 = vpop.permute.xlu0 %1605 }
 0x431   :  { %v1795_v12 = vsel %vm148_vm8, %v1789_v24, %v5109_v41  ;;  %v1608_v36 = vmul.f32 %v1606_v55, %v4665_v3  ;;  %v1609_v62 = vmul.f32 %v1606_v55, %v4673_v49  ;;  %v1610_v58 = vmul.f32 %v1606_v55, %v4687_v6  ;;  %2184 = vperm.xlu0 %2350, %v5020_v48  }
 0x432   :  { %v5196_v56 = vmul.f32 %v1799_v63, %v1795_v12  ;;  %v1659_v3 = vsel %vm188_vm9, %v4940_v60, %v4985_v45 }
 0x433   :  { %v1611_v49 = vadd.f32 %v1608_v36, %v1601_v16  ;;  %v1612_v6 = vadd.f32 %v1609_v62, %v1602_v21  ;;  %v1613_v19 = vadd.f32 %v1610_v58, %v1603_v34  ;;  %2090 = vrot.lane.b32.xlu1 %v4738_v4, %s2358_s21  ;;  %v1665_v8 = vmul.f32 %v4992_v51, %v1659_v3 }
 0x434   :  { %v1793_v50 = vpop.permute.xlu1 %1792  ;;  %v5208_v29 = vpop.permute.xlu0 %1779  ;;  %2348 = vset.pattern.permute.xlu1 %v5880_v26  ;;  %v1678_v26 = vsel %vm208_vm10, %v4953_v39, %v4998_v43  ;;  %v1685_v21 = vmul.f32 %v5003_v32, %v1677_v54  ;;  %v1686_v34 = vmul.f32 %v5003_v32, %v1679_v17  ;;  %v1708_v39 = vsel %vm60_vm4, %v4971_v7, %v5010_v52  ;;  %v5892_v17 = vld [vmem:[#allocation24_spill] sm:$0xff] }
 0x435   :  { %v1630_v60 = vadd.f32 %v1627_v1, %v1611_v49  ;;  %v1631_v45 = vadd.f32 %v1628_v33, %v1612_v6  ;;  %v1632_v22 = vadd.f32 %v1629_v37, %v1613_v19  ;;  %v1794_v5 = vsel %vm148_vm8, %v5109_v41, %v1793_v50  ;;  %2140 = vrot.lane.b32.xlu0 %v4735_v46, %s2362_s23  ;;  %v5891_v37 = vld [vmem:[#allocation6_spill] sm:$0xff] }
 0x436   :  { %v1796_v51 = vsel %vm148_vm8, %v1793_v50, %v1789_v24  ;;  %v5226_v13 = vmul.f32 %v1799_v63, %v1794_v5  ;;  %2352 = vset.pattern.permute.xlu0 %v5884_v44  ;;  %v1684_v14 = vmul.f32 %v5003_v32, %v1678_v26  ;;  %v1707_v32 = vsel %vm60_vm4, %v5010_v52, %v5891_v37 }
 0x437   :  { %v1649_v41 = vadd.f32 %v1646_v31, %v1630_v60  ;;  %v1650_v16 = vadd.f32 %v1647_v40, %v1631_v45  ;;  %v1651_v15 = vadd.f32 %v1648_v53, %v1632_v22  ;;  %v1803_v42 = vmul.f32 %v1799_v63, %v1796_v51  ;;  %2146 = vperm.xlu1 %2348, %v5020_v48  }
 0x438   :  { %v1808_v43 = vpop.permute.xlu1 %1807  ;;  %v1812_v47 = vpop.permute.xlu0 %1811  ;;  %v1715_v35 = vmul.f32 %v5893_v23, %v5892_v17  ;;  %v1716_v7 = vmul.f32 %v5893_v23, %v1708_v39  ;;  %v1717_v24 = vmul.f32 %v5893_v23, %v1707_v32  ;;  %v5894_v31 = vmov 6  }
 0x439   :  { %v1668_v0 = vadd.f32 %v1665_v8, %v1649_v41  ;;  %v1669_v1 = vadd.f32 %v1666_v11, %v1650_v16  ;;  %v1670_v33 = vadd.f32 %v1667_v10, %v1651_v15  ;;  %v1815_v63 = vsel %vm168_vm7, %v1812_v47, %v1808_v43  ;;  %2155 = vrot.lane.b32.xlu0 %v4728_v27, %s2363_s24  ;;  %v5895_v8 = vld [vmem:[#allocation5_spill] sm:$0xff]  ;;  %v5897_v41 = vld [vmem:[#allocation10_spill] sm:$0xff] }
 0x43a   :  { %v1782_v11 = vmul.f32 %v5208_v29, %v5895_v8 }
 0x43b   :  { %v1687_v55 = vadd.f32 %v1684_v14, %v1668_v0  ;;  %v1688_v12 = vadd.f32 %v1685_v21, %v1669_v1  ;;  %v1689_v36 = vadd.f32 %v1686_v34, %v1670_v33  ;;  %2109 = vrot.lane.b32.xlu1 %v4738_v4, %s2360_s22 }
 0x43c   :  { %v1810_v62 = vpop.permute.xlu1 %1809  ;;  %v1827_v58 = vpop.permute.xlu0 %1826  ;;  %2349 = vset.pattern.permute.xlu1 %v5894_v31 }
 0x43d   :  { %v1718_v40 = vadd.f32 %v1715_v35, %v1687_v55  ;;  %v1719_v61 = vadd.f32 %v1716_v7, %v1688_v12  ;;  %v1720_v52 = vadd.f32 %v1717_v24, %v1689_v36  ;;  %v1813_v3 = vsel %vm168_vm7, %v1810_v62, %v1812_v47  ;;  %2159 = vrot.lane.b32.xlu0 %v4735_v46, %s2363_s24 }
 0x43e   :  { %v1814_v49 = vsel %vm168_vm7, %v1808_v43, %v1810_v62 }
 0x43f   :  { %v1737_v6 = vadd.f32 %v5039_v2, %v1718_v40  ;;  %v1738_v19 = vadd.f32 %v5041_v20, %v1719_v61  ;;  %v1739_v53 = vadd.f32 %v5043_v9, %v1720_v52  ;;  %2165 = vperm.xlu1 %2349, %v5020_v48   ;;  %v5896_v20 = vld [vmem:[#allocation60_spill] sm:$0xff] }
 0x440   :  { %v1818_v10 = vpop.permute.xlu1 %1817  ;;  %v1831_v50 = vpop.permute.xlu0 %1830  ;;  %v1783_v9 = vmul.f32 %v5208_v29, %v5896_v20 }
 0x441   :  { %v1756_v60 = vadd.f32 %v5085_v28, %v1737_v6  ;;  %v1757_v45 = vadd.f32 %v5087_v57, %v1738_v19  ;;  %v1758_v22 = vadd.f32 %v5089_v18, %v1739_v53  ;;  %v1820_v5 = vmul.f32 %v1818_v10, %v1814_v49  ;;  %2176 = vrot.lane.b32.xlu0 %v4738_v4, %s2365_s25 }
 0x442   :  { %v1821_v2 = vmul.f32 %v1818_v10, %v1813_v3  ;;  %v1822_v54 = vmul.f32 %v1818_v10, %v1815_v63  ;;  %v1834_v26 = vsel %vm188_vm9, %v1831_v50, %v1827_v58  ;;  %v1784_v18 = vmul.f32 %v5208_v29, %v5897_v41 }
 0x443   :  { %v1775_v51 = vadd.f32 %v5143_v30, %v1756_v60  ;;  %v1776_v28 = vadd.f32 %v5145_v38, %v1757_v45  ;;  %v1777_v57 = vadd.f32 %v5147_v25, %v1758_v22  ;;  %2136 = vrot.lane.b32.xlu1 %v4728_v27, %s2362_s23 }
 0x444   :  { %v1829_v16 = vpop.permute.xlu1 %1828  ;;  %v1846_v15 = vpop.permute.xlu0 %1845  ;;  %2351 = vset.pattern.permute.xlu1 %v5884_v44 }
 0x445   :  { %v1785_v14 = vadd.f32 %v1782_v11, %v1775_v51  ;;  %v1786_v21 = vadd.f32 %v1783_v9, %v1776_v28  ;;  %v1787_v34 = vadd.f32 %v1784_v18, %v1777_v57  ;;  %v1832_v30 = vsel %vm188_vm9, %v1829_v16, %v1831_v50  ;;  %2193 = vrot.lane.b32.xlu0 %v4728_v27, %s2367_s26 }
 0x446   :  { %v1833_v38 = vsel %vm188_vm9, %v1827_v58, %v1829_v16 }
 0x447   :  { %v1804_v25 = vadd.f32 %v5196_v56, %v1785_v14  ;;  %v1805_v29 = vadd.f32 %v5226_v13, %v1786_v21  ;;  %v1806_v39 = vadd.f32 %v1803_v42, %v1787_v34  ;;  %2138 = vrot.lane.b32.xlu1 %v4738_v4, %s2362_s23 }
 0x448   :  { %v1837_v44 = vpop.permute.xlu1 %1836  ;;  %v1850_v43 = vpop.permute.xlu0 %1849 }
 0x449   :  { %v1823_v47 = vadd.f32 %v1820_v5, %v1804_v25  ;;  %v1824_v0 = vadd.f32 %v1821_v2, %v1805_v29  ;;  %v1825_v1 = vadd.f32 %v1822_v54, %v1806_v39  ;;  %v1839_v33 = vmul.f32 %v1837_v44, %v1833_v38  ;;  %2197 = vrot.lane.b32.xlu0 %v4735_v46, %s2367_s26 }
 0x44a   :  { %v1840_v63 = vmul.f32 %v1837_v44, %v1832_v30  ;;  %v1841_v37 = vmul.f32 %v1837_v44, %v1834_v26  ;;  %v1853_v56 = vsel %vm208_vm10, %v1850_v43, %v1846_v15 }
 0x44b   :  { %v1842_v32 = vadd.f32 %v1839_v33, %v1823_v47  ;;  %2203 = vperm.xlu1 %2351, %v5020_v48  }
 0x44c   :  { %v1843_v13 = vadd.f32 %v1840_v63, %v1824_v0  ;;  %v1844_v42 = vadd.f32 %v1841_v37, %v1825_v1  ;;  %v1848_v17 = vpop.permute.xlu1 %1847  ;;  %v1876_v23 = vpop.permute.xlu0 %1875 }
 0x44d   :  { %v1851_v35 = vsel %vm208_vm10, %v1848_v17, %v1850_v43  ;;  %v1852_v7 = vsel %vm208_vm10, %v1846_v15, %v1848_v17 }
 0x44f   :  { %2157 = vrot.lane.b32.xlu1 %v4738_v4, %s2363_s24 }
 0x450   :  { %v1856_v24 = vpop.permute.xlu1 %1855  ;;  %v1880_v55 = vpop.permute.xlu0 %1879 }
 0x451   :  { %v1858_v12 = vmul.f32 %v1856_v24, %v1852_v7  ;;  %v1859_v36 = vmul.f32 %v1856_v24, %v1851_v35  ;;  %v1860_v62 = vmul.f32 %v1856_v24, %v1853_v56  ;;  %v1883_v48 = vsel %vm60_vm4, %v1880_v55, %v1876_v23  ;;  %v5899_v7 = vld [vmem:[#allocation64_spill] sm:$0xff] }
 0x453   :  { %v1861_v58 = vadd.f32 %v1858_v12, %v1842_v32  ;;  %v1862_v31 = vadd.f32 %v1859_v36, %v1843_v13  ;;  %v1863_v40 = vadd.f32 %v1860_v62, %v1844_v42  ;;  %2174 = vrot.lane.b32.xlu1 %v4728_v27, %s2365_s25 }
 0x454   :  { %v1878_v61 = vpop.permute.xlu1 %1877  ;;  %v1896_v52 = vpop.permute.xlu0 %1895 }
 0x455   :  { %v1881_v3 = vsel %vm60_vm4, %v1878_v61, %v1880_v55  ;;  %v1882_v49 = vsel %vm60_vm4, %v1876_v23, %v1878_v61  ;;  %v5898_v23 = vld [vmem:[#allocation62_spill] sm:$0xff]  ;;  %v5900_v55 = vld [vmem:[#allocation63_spill] sm:$0xff] }
 0x457   :  { %2178 = vrot.lane.b32.xlu1 %v4735_v46, %s2365_s25 }
 0x458   :  { %v1887_v6 = vpop.permute.xlu1 %1886  ;;  %v1900_v19 = vpop.permute.xlu0 %1899 }
 0x459   :  { %v1889_v53 = vmul.f32 %v1887_v6, %v1883_v48  ;;  %v1890_v8 = vmul.f32 %v1887_v6, %v1882_v49  ;;  %v1891_v11 = vmul.f32 %v1887_v6, %v1881_v3  ;;  %v1903_v10 = vsel %vm78_vm3, %v1900_v19, %v1896_v52 }
 0x45b   :  { %v1892_v50 = vadd.f32 %v1889_v53, %v1861_v58  ;;  %v1893_v60 = vadd.f32 %v1890_v8, %v1862_v31  ;;  %v1894_v45 = vadd.f32 %v1891_v11, %v1863_v40  ;;  %2195 = vrot.lane.b32.xlu1 %v4738_v4, %s2367_s26 }
 0x45c   :  { %v1898_v22 = vpop.permute.xlu1 %1897  ;;  %v1915_v5 = vpop.permute.xlu0 %1914 }
 0x45d   :  { %v1901_v20 = vsel %vm78_vm3, %v1898_v22, %v1900_v19  ;;  %v1902_v9 = vsel %vm78_vm3, %v1896_v52, %v1898_v22 }
 0x460   :  { %v1906_v2 = vpop.permute.xlu1 %1905  ;;  %v1919_v54 = vpop.permute.xlu0 %1918 }
 0x461   :  { %v1908_v26 = vmul.f32 %v1906_v2, %v1903_v10  ;;  %v1909_v51 = vmul.f32 %v1906_v2, %v1902_v9  ;;  %v1910_v28 = vmul.f32 %v1906_v2, %v1901_v20  ;;  %v1922_v57 = vsel %vm98_vm5, %v1919_v54, %v1915_v5 }
 0x463   :  { %v1911_v41 = vadd.f32 %v1908_v26, %v1892_v50  ;;  %v1912_v18 = vadd.f32 %v1909_v51, %v1893_v60  ;;  %v1913_v16 = vadd.f32 %v1910_v28, %v1894_v45 }
 0x464   :  { %v1917_v15 = vpop.permute.xlu1 %1916  ;;  %v1934_v14 = vpop.permute.xlu0 %1933 }
 0x465   :  { %v1920_v21 = vsel %vm98_vm5, %v1917_v15, %v1919_v54  ;;  %v1921_v34 = vsel %vm98_vm5, %v1915_v5, %v1917_v15 }
 0x468   :  { %v1925_v30 = vpop.permute.xlu1 %1924  ;;  %v1938_v38 = vpop.permute.xlu0 %1937 }
 0x469   :  { %v1927_v25 = vmul.f32 %v1925_v30, %v1922_v57  ;;  %v1928_v29 = vmul.f32 %v1925_v30, %v1921_v34  ;;  %v1929_v39 = vmul.f32 %v1925_v30, %v1920_v21  ;;  %v1941_v44 = vsel %vm118_vm6, %v1938_v38, %v1934_v14 }
 0x46b   :  { %v1930_v43 = vadd.f32 %v1927_v25, %v1911_v41  ;;  %v1931_v47 = vadd.f32 %v1928_v29, %v1912_v18  ;;  %v1932_v0 = vadd.f32 %v1929_v39, %v1913_v16 }
 0x46c   :  { %v1936_v1 = vpop.permute.xlu1 %1935  ;;  %v1954_v33 = vpop.permute.xlu0 %1953 }
 0x46d   :  { %v1939_v63 = vsel %vm118_vm6, %v1936_v1, %v1938_v38  ;;  %v1940_v37 = vsel %vm118_vm6, %v1934_v14, %v1936_v1  ;;  %v1956_v35 = vmul.f32 %v1954_v33, %v5898_v23  ;;  %v1957_v24 = vmul.f32 %v1954_v33, %v5899_v7 }
 0x46e   :  { %v1958_v12 = vmul.f32 %v1954_v33, %v5900_v55 }
 0x470   :  { %v1944_v56 = vpop.permute.xlu1 %1943  ;;  %v1967_v32 = vpop.permute.xlu0 %1966 }
 0x471   :  { %v1946_v13 = vmul.f32 %v1944_v56, %v1941_v44  ;;  %v1947_v42 = vmul.f32 %v1944_v56, %v1940_v37  ;;  %v1948_v17 = vmul.f32 %v1944_v56, %v1939_v63 }
 0x473   :  { %v1949_v36 = vadd.f32 %v1946_v13, %v1930_v43  ;;  %v1950_v62 = vadd.f32 %v1947_v42, %v1931_v47  ;;  %v1951_v48 = vadd.f32 %v1948_v17, %v1932_v0 }
 0x474   :  { %v1963_v58 = vpop.permute.xlu1 %1962  ;;  %v1982_v31 = vpop.permute.xlu0 %1981 }
 0x475   :  { %v1970_v40 = vsel %vm148_vm8, %v1967_v32, %v1963_v58  ;;  %v1959_v61 = vadd.f32 %v1956_v35, %v1949_v36  ;;  %v1960_v52 = vadd.f32 %v1957_v24, %v1950_v62  ;;  %v1961_v3 = vadd.f32 %v1958_v12, %v1951_v48 }
 0x478   :  { %v1965_v49 = vpop.permute.xlu1 %1964  ;;  %v1986_v6 = vpop.permute.xlu0 %1985 }
 0x479   :  { %v1968_v19 = vsel %vm148_vm8, %v1965_v49, %v1967_v32  ;;  %v1969_v53 = vsel %vm148_vm8, %v1963_v58, %v1965_v49  ;;  %v1989_v7 = vsel %vm168_vm7, %v1986_v6, %v1982_v31 }
 0x47c   :  { %v1973_v8 = vpop.permute.xlu1 %1972  ;;  %v2001_v11 = vpop.permute.xlu0 %2000 }
 0x47d   :  { %v1975_v10 = vmul.f32 %v1973_v8, %v1969_v53  ;;  %v1976_v50 = vmul.f32 %v1973_v8, %v1968_v19  ;;  %v1977_v60 = vmul.f32 %v1973_v8, %v1970_v40 }
 0x47f   :  { %v1978_v45 = vadd.f32 %v1975_v10, %v1959_v61  ;;  %v1979_v22 = vadd.f32 %v1976_v50, %v1960_v52  ;;  %v1980_v5 = vadd.f32 %v1977_v60, %v1961_v3 }
 0x480   :  { %v1984_v20 = vpop.permute.xlu1 %1983  ;;  %v2005_v9 = vpop.permute.xlu0 %2004 }
 0x481   :  { %v1988_v2 = vsel %vm168_vm7, %v1982_v31, %v1984_v20  ;;  %v1987_v54 = vsel %vm168_vm7, %v1984_v20, %v1986_v6  ;;  %v2008_v12 = vsel %vm188_vm9, %v2005_v9, %v2001_v11 }
 0x484   :  { %v1992_v26 = vpop.permute.xlu1 %1991  ;;  %v2020_v51 = vpop.permute.xlu0 %2019 }
 0x485   :  { %v1994_v28 = vmul.f32 %v1992_v26, %v1988_v2  ;;  %v1995_v57 = vmul.f32 %v1992_v26, %v1987_v54  ;;  %v1996_v55 = vmul.f32 %v1992_v26, %v1989_v7 }
 0x487   :  { %v1997_v41 = vadd.f32 %v1994_v28, %v1978_v45  ;;  %v1998_v18 = vadd.f32 %v1995_v57, %v1979_v22  ;;  %v1999_v58 = vadd.f32 %v1996_v55, %v1980_v5 }
 0x488   :  { %v2003_v16 = vpop.permute.xlu1 %2002  ;;  %v2030_v15 = vpop.permute.xlu0 %2029 }
 0x489   :  { %v2007_v40 = vsel %vm188_vm9, %v2001_v11, %v2003_v16  ;;  %v2006_v61 = vsel %vm188_vm9, %v2003_v16, %v2005_v9 }
 0x48c   :  { %v2011_v14 = vpop.permute.xlu1 %2010  ;;  %v2024_v21 = vpop.permute.xlu0 %2023 }
 0x48d   :  { %v2015_v36 = vmul.f32 %v2011_v14, %v2008_v12  ;;  %v2027_v48 = vsel %vm208_vm10, %v2024_v21, %v2020_v51  ;;  %v2013_v31 = vmul.f32 %v2011_v14, %v2007_v40  ;;  %v2014_v10 = vmul.f32 %v2011_v14, %v2006_v61 }
 0x48e   :  { %v2034_v6 = vmul.f32 %v2030_v15, %v2027_v48 }
 0x48f   :  { %v2018_v49 = vadd.f32 %v2015_v36, %v1999_v58  ;;  %v2016_v9 = vadd.f32 %v2013_v31, %v1997_v41  ;;  %v2017_v28 = vadd.f32 %v2014_v10, %v1998_v18 }
 0x490   :  { %v2022_v34 = vpop.permute.xlu1 %2021  ;;  %v2050_v30 = vpop.permute.xlu0 %2049 }
 0x491   :  { %v2025_v19 = vsel %vm208_vm10, %v2022_v34, %v2024_v21  ;;  %v2026_v53 = vsel %vm208_vm10, %v2020_v51, %v2022_v34  ;;  %v2037_v2 = vadd.f32 %v2034_v6, %v2018_v49 }
 0x492   :  { %v2032_v45 = vmul.f32 %v2030_v15, %v2026_v53  ;;  %v2033_v22 = vmul.f32 %v2030_v15, %v2025_v19 }
 0x494   :  { %v2061_v38 = vpop.permute.xlu1 %2060  ;;  %v2054_v25 = vpop.permute.xlu0 %2053 }
 0x495   :  { %v2057_v50 = vsel %vm60_vm4, %v2054_v25, %v2050_v30 }
 0x496   :  { %v2063_v57 = vmul.f32 %v2061_v38, %v2057_v50 }
 0x498   :  { %v2070_v29 = vpop.permute.xlu0 %2069 }
 0x499   :  { %v2080_v39 = vpop.permute.xlu1 %2079 }
 0x49c   :  { %v2074_v44 = vpop.permute.xlu0 %2073 }
 0x49d   :  { %v2077_v54 = vsel %vm78_vm3, %v2074_v44, %v2070_v29 }
 0x49e   :  { %v5345_v43 = vpop.permute.xlu1 %2098 }
 0x4a0   :  { %v2089_v47 = vpop.permute.xlu0 %2088 }
 0x4a2   :  { %v2052_v0 = vpop.permute.xlu1 %2051 }
 0x4a3   :  { %v2055_v52 = vsel %vm60_vm4, %v2052_v0, %v2054_v25  ;;  %v2056_v5 = vsel %vm60_vm4, %v2050_v30, %v2052_v0  ;;  %v2035_v25 = vadd.f32 %v2032_v45, %v2016_v9  ;;  %v2082_v0 = vmul.f32 %v2080_v39, %v2077_v54 }
 0x4a4   :  { %v2093_v1 = vpop.permute.xlu0 %2092  ;;  %v2065_v60 = vmul.f32 %v2061_v38, %v2055_v52  ;;  %v2064_v21 = vmul.f32 %v2061_v38, %v2056_v5 }
 0x4a5   :  { %v2096_v41 = vsel %vm98_vm5, %v2093_v1, %v2089_v47  ;;  %v2066_v12 = vadd.f32 %v2063_v57, %v2035_v25 }
 0x4a6   :  { %v5347_v33 = vpop.permute.xlu1 %2117  ;;  %v2068_v34 = vadd.f32 %v2065_v60, %v2037_v2  ;;  %v2101_v36 = vmul.f32 %v5345_v43, %v2096_v41 }
 0x4a7   :  { %v2085_v61 = vadd.f32 %v2082_v0, %v2066_v12 }
 0x4a8   :  { %v2108_v63 = vpop.permute.xlu0 %2107 }
 0x4a9   :  { %v2104_v6 = vadd.f32 %v2101_v36, %v2085_v61 }
 0x4aa   :  { %v2072_v37 = vpop.permute.xlu1 %2071 }
 0x4ab   :  { %v2075_v11 = vsel %vm78_vm3, %v2072_v37, %v2074_v44  ;;  %v2076_v16 = vsel %vm78_vm3, %v2070_v29, %v2072_v37  ;;  %v2036_v44 = vadd.f32 %v2033_v22, %v2017_v28 }
 0x4ac   :  { %v2112_v56 = vpop.permute.xlu0 %2111  ;;  %v2084_v26 = vmul.f32 %v2080_v39, %v2075_v11  ;;  %v2083_v7 = vmul.f32 %v2080_v39, %v2076_v16 }
 0x4ad   :  { %v2115_v29 = vsel %vm118_vm6, %v2112_v56, %v2108_v63  ;;  %v2067_v48 = vadd.f32 %v2064_v21, %v2036_v44 }
 0x4ae   :  { %v5349_v32 = vpop.permute.xlu1 %2127  ;;  %v2087_v55 = vadd.f32 %v2084_v26, %v2068_v34  ;;  %v2120_v39 = vmul.f32 %v5347_v33, %v2115_v29 }
 0x4af   :  { %v2131_v5 = vmul.f32 %v5349_v32, %v4738_v4 }
 0x4b0   :  { %v5351_v13 = vpop.permute.xlu0 %2184  ;;  %v2123_v53 = vadd.f32 %v2120_v39, %v2104_v6 }
 0x4b2   :  { %v2091_v42 = vpop.permute.xlu1 %2090 }
 0x4b3   :  { %v2094_v20 = vsel %vm98_vm5, %v2091_v42, %v2093_v1  ;;  %v2095_v18 = vsel %vm98_vm5, %v2089_v47, %v2091_v42  ;;  %v2086_v42 = vadd.f32 %v2083_v7, %v2067_v48 }
 0x4b4   :  { %v5353_v17 = vpop.permute.xlu0 %2140  ;;  %v2103_v30 = vmul.f32 %v5345_v43, %v2094_v20  ;;  %v2102_v58 = vmul.f32 %v5345_v43, %v2095_v18 }
 0x4b6   :  { %v5355_v23 = vpop.permute.xlu1 %2146  ;;  %v2106_v40 = vadd.f32 %v2103_v30, %v2087_v55 }
 0x4b8   :  { %v5359_v24 = vpop.permute.xlu0 %2155 }
 0x4ba   :  { %v2110_v35 = vpop.permute.xlu1 %2109 }
 0x4bb   :  { %v2113_v15 = vsel %vm118_vm6, %v2110_v35, %v2112_v56  ;;  %v2114_v1 = vsel %vm118_vm6, %v2108_v63, %v2110_v35  ;;  %v2132_v63 = vmul.f32 %v5349_v32, %v4735_v46  ;;  %v2105_v35 = vadd.f32 %v2102_v58, %v2086_v42 }
 0x4bc   :  { %v5373_v3 = vpop.permute.xlu0 %2159  ;;  %v2122_v37 = vmul.f32 %v5347_v33, %v2113_v15  ;;  %v2121_v31 = vmul.f32 %v5347_v33, %v2114_v1  ;;  %v2130_v46 = vmul.f32 %v5349_v32, %v4728_v27 }
 0x4be   :  { %v5363_v62 = vpop.permute.xlu1 %2165  ;;  %v2125_v52 = vadd.f32 %v2122_v37, %v2106_v40  ;;  %v2124_v11 = vadd.f32 %v2121_v31, %v2105_v35  ;;  %v2133_v2 = vadd.f32 %v2130_v46, %v2123_v53 }
 0x4c0   :  { %v2177_v14 = vpop.permute.xlu0 %2176  ;;  %v2135_v50 = vadd.f32 %v2132_v63, %v2125_v52  ;;  %v2134_v26 = vadd.f32 %v2131_v5, %v2124_v11 }
 0x4c2   :  { %v2137_v8 = vpop.permute.xlu1 %2136 }
 0x4c3   :  { %v2144_v47 = vsel %vm148_vm8, %v5353_v17, %v2137_v8 }
 0x4c4   :  { %v2194_v56 = vpop.permute.xlu0 %2193  ;;  %v2151_v43 = vmul.f32 %v5355_v23, %v2144_v47 }
 0x4c6   :  { %v2139_v51 = vpop.permute.xlu1 %2138  ;;  %v2154_v20 = vadd.f32 %v2151_v43, %v2135_v50 }
 0x4c7   :  { %v2143_v19 = vsel %vm148_vm8, %v2137_v8, %v2139_v51  ;;  %v2142_v10 = vsel %vm148_vm8, %v2139_v51, %v5353_v17  ;;  %v2163_v8 = vsel %vm168_vm7, %v5373_v3, %v5359_v24 }
 0x4c8   :  { %v2149_v45 = vmul.f32 %v5355_v23, %v2143_v19  ;;  %v2198_v22 = vpop.permute.xlu0 %2197  ;;  %v2150_v9 = vmul.f32 %v5355_v23, %v2142_v10 }
 0x4c9   :  { %v2201_v51 = vsel %vm208_vm10, %v2198_v22, %v2194_v56 }
 0x4ca   :  { %v2204_v38 = vpop.permute.xlu1 %2203  ;;  %v2152_v57 = vadd.f32 %v2149_v45, %v2133_v2  ;;  %v2153_v16 = vadd.f32 %v2150_v9, %v2134_v26 }
 0x4cb   :  { %v2208_v30 = vmul.f32 %v2204_v38, %v2201_v51 }
 0x4ce   :  { %v2158_v49 = vpop.permute.xlu1 %2157 }
 0x4cf   :  { %v2162_v33 = vsel %vm168_vm7, %v5359_v24, %v2158_v49  ;;  %v2161_v17 = vsel %vm168_vm7, %v2158_v49, %v5373_v3  ;;  %v2170_v24 = vmul.f32 %v5363_v62, %v2163_v8 }
 0x4d0   :  { %v2168_v54 = vmul.f32 %v5363_v62, %v2162_v33  ;;  %v2169_v3 = vmul.f32 %v5363_v62, %v2161_v17 }
 0x4d1   :  { %v2173_v15 = vadd.f32 %v2170_v24, %v2154_v20 }
 0x4d2   :  { %v2175_v60 = vpop.permute.xlu1 %2174  ;;  %v2171_v41 = vadd.f32 %v2168_v54, %v2152_v57  ;;  %v2172_v25 = vadd.f32 %v2169_v3, %v2153_v16 }
 0x4d3   :  { %v2181_v27 = vsel %vm188_vm9, %v2175_v60, %v2177_v14 }
 0x4d4   :  { %v2187_v4 = vmul.f32 %v5351_v13, %v2181_v27 }
 0x4d6   :  { %v2179_v28 = vpop.permute.xlu1 %2178  ;;  %v2190_v0 = vadd.f32 %v2187_v4, %v2171_v41 }
 0x4d7   :  { %v2180_v32 = vsel %vm188_vm9, %v2177_v14, %v2179_v28  ;;  %v2182_v23 = vsel %vm188_vm9, %v2179_v28, %v2175_v60 }
 0x4d8   :  { %v2188_v21 = vmul.f32 %v5351_v13, %v2180_v32  ;;  %v2189_v34 = vmul.f32 %v5351_v13, %v2182_v23 }
 0x4da   :  { %v2192_v62 = vadd.f32 %v2189_v34, %v2173_v15  ;;  %v2196_v44 = vpop.permute.xlu1 %2195  ;;  %v2191_v7 = vadd.f32 %v2188_v21, %v2172_v25 }
 0x4db   :  { %v2199_v18 = vsel %vm208_vm10, %v2196_v44, %v2198_v22  ;;  %v2200_v14 = vsel %vm208_vm10, %v2194_v56, %v2196_v44 }
 0x4dc   :  { %v2211_v55 = vadd.f32 %v2208_v30, %v2192_v62  ;;  %v2206_v29 = vmul.f32 %v2204_v38, %v2200_v14  ;;  %v2207_v37 = vmul.f32 %v2204_v38, %v2199_v18 }
 0x4de   :  { %vm2214_vm0 = vcmp.ge.f32.partialorder %v2211_v55, 0.0  ;;  %v2217_v12 = vmul.f32 0.2, %v2211_v55  ;;  %v2209_v36 = vadd.f32 %v2206_v29, %v2190_v0  ;;  %v2210_v13 = vadd.f32 %v2207_v37, %v2191_v7 }
 0x4e0   :  { %v2220_v1 = vsel %vm2214_vm0, %v2211_v55, %v2217_v12  ;;  %vm2212_vm1 = vcmp.ge.f32.partialorder %v2209_v36, 0.0  ;;  %vm2213_vm2 = vcmp.ge.f32.partialorder %v2210_v13, 0.0  ;;  %v2215_v48 = vmul.f32 0.2, %v2209_v36 }
 0x4e1   :  { %2223 = vst [vmem:[%s5464_s3 + $0x10] sm:$0xff] %v2220_v1  ;;  %v2216_v58 = vmul.f32 0.2, %v2210_v13 }
 0x4e2   :  { %v2218_v40 = vsel %vm2212_vm1, %v2209_v36, %v2215_v48 }
 0x4e3   :  { %v2219_v59 = vsel %vm2213_vm2, %v2210_v13, %v2216_v58  ;;  %2221 = vst [vmem:[%s5464_s3] sm:$0xff] %v2218_v40 }
 0x4e4   :  { %2222 = vst [vmem:[%s5464_s3 + $0x8] sm:$0xff] %v2219_v59 }

</bundles_post_ra>
